<compile_context>
chip_gen: v7x
topology: tpu7x:2x2x1
jax: 0.10.0
libtpu: 0.0.40
codegen_flags: <defaults>
</compile_context>

<pallas_src>
import functools

import jax
import jax.numpy as jnp
from jax.experimental import pallas as pl
from jax.experimental.pallas import tpu as pltpu

N_PAD = 128  # lane-dense FC output width; real num_cls columns sliced in wrapper


# ----------------------------------------------------------------------------
# Fused Pallas kernel: all LSTM layers/directions + FC + sigmoid
# ----------------------------------------------------------------------------
def fused_lstm_kernel(x_ref, *refs, T, B, H, num_layers, num_dirs):
    seq_scr = refs[-1]        # VMEM scratch (B, T, num_dirs*H): per-layer outputs
    out_ref = refs[-2]        # (B, T, N_PAD)
    fc_b_ref = refs[-3]       # (1, N_PAD)
    fc_w_ref = refs[-4]       # (num_dirs*H, N_PAD)
    layer_refs = refs[:-4]    # num_layers * (w_ih_packed, w_hh_packed, bias_packed)

    G = num_dirs * 4 * H      # packed gate width (both directions side by side)

    def cell(gates, c_prev):
        i = jax.nn.sigmoid(gates[:, 0 * H:1 * H])
        f = jax.nn.sigmoid(gates[:, 1 * H:2 * H])
        g = jnp.tanh(gates[:, 2 * H:3 * H])
        o = jax.nn.sigmoid(gates[:, 3 * H:4 * H])
        c = f * c_prev + i * g
        h = o * jnp.tanh(c)
        return h, c

    layer_in = x_ref[...]     # (B, T, In0), batch-major throughout (no transposes)

    for l in range(num_layers):
        w_ih = layer_refs[3 * l][...]        # (F_l, G)
        w_hh = layer_refs[3 * l + 1][...]    # (num_dirs*H, G), block-diag for bidir
        bias = layer_refs[3 * l + 2][...]    # (1, G)

        F_l = layer_in.shape[-1]
        x_flat = layer_in.reshape(B * T, F_l)
        # Hoisted input projection: one matmul covers all timesteps + both dirs.
        gates_x = (jnp.dot(x_flat, w_ih, preferred_element_type=jnp.float32)
                   + bias).reshape(B, T, G)

        zero = jnp.zeros((B, H), jnp.float32)
        h_f, c_f = zero, zero
        h_b, c_b = zero, zero

        for t in range(T):                   # statically unrolled (T is a Python int)
            if num_dirs == 2:
                h_cat = jnp.concatenate([h_f, h_b], axis=-1)       # (B, 2H)
            else:
                h_cat = h_f
            # Single MXU push for both directions via block-diagonal W_hh.
            gates_h = jnp.dot(h_cat, w_hh, preferred_element_type=jnp.float32)

            # forward direction, time t
            g_fwd = gates_x[:, t, 0:4 * H] + gates_h[:, 0:4 * H]
            h_f, c_f = cell(g_fwd, c_f)
            seq_scr[:, t, 0:H] = h_f

            if num_dirs == 2:
                tb = T - 1 - t               # backward direction walks time reversed
                g_bwd = gates_x[:, tb, 4 * H:8 * H] + gates_h[:, 4 * H:8 * H]
                h_b, c_b = cell(g_bwd, c_b)
                seq_scr[:, tb, H:2 * H] = h_b

        # Safe to reuse the scratch across layers: the next layer's gates_x is
        # computed from this value before any new writes happen.
        layer_in = seq_scr[...]              # (B, T, num_dirs*H)

    # Fused FC + sigmoid, lane-dense (N_PAD) output.
    feat = layer_in.reshape(B * T, num_dirs * H)
    y = jnp.dot(feat, fc_w_ref[...], preferred_element_type=jnp.float32) + fc_b_ref[...]
    out_ref[...] = jax.nn.sigmoid(y).reshape(B, T, N_PAD)


# ----------------------------------------------------------------------------
# Wrapper
# ----------------------------------------------------------------------------
def _full_spec(shape):
    ndim = len(shape)
    return pl.BlockSpec(tuple(shape), lambda *_: (0,) * ndim)


def lstm_model_forward(x, packed_params, *, hidden_size, num_layers, bidirectional,
                       num_cls):
    """Equivalent of LSTM.forward: sigmoid(fc(rnn(x)[0])), x batch-first."""
    B, T, _ = x.shape
    num_dirs = 2 if bidirectional else 1
    H = hidden_size

    operands = [x] + list(packed_params)
    kernel = functools.partial(fused_lstm_kernel, T=T, B=B, H=H,
                               num_layers=num_layers, num_dirs=num_dirs)
    out = pl.pallas_call(
        kernel,
        out_shape=jax.ShapeDtypeStruct((B, T, N_PAD), jnp.float32),
        in_specs=[_full_spec(op.shape) for op in operands],
        out_specs=_full_spec((B, T, N_PAD)),
        scratch_shapes=[pltpu.VMEM((B, T, num_dirs * H), jnp.float32)],
    )(*operands)
    return out[:, :, :num_cls]


# ----------------------------------------------------------------------------
# Parameters (PyTorch-style uniform(-1/sqrt(H), 1/sqrt(H))) + kernel packing
# ----------------------------------------------------------------------------
def init_params(key, input_size, hidden_size, num_layers, bidirectional, num_cls):
    num_dirs = 2 if bidirectional else 1
    k = 1.0 / jnp.sqrt(hidden_size)
    params = {"rnn": {}}
    for layer in range(num_layers):
        in_sz = input_size if layer == 0 else hidden_size * num_dirs
        for d in range(num_dirs):
            key, k1, k2, k3, k4 = jax.random.split(key, 5)
            # Stored pre-transposed: (in, 4H) / (H, 4H); combined bias (1, 4H).
            w_ih = jax.random.uniform(k1, (in_sz, 4 * hidden_size), jnp.float32, -k, k)
            w_hh = jax.random.uniform(k2, (hidden_size, 4 * hidden_size), jnp.float32, -k, k)
            b_ih = jax.random.uniform(k3, (4 * hidden_size,), jnp.float32, -k, k)
            b_hh = jax.random.uniform(k4, (4 * hidden_size,), jnp.float32, -k, k)
            params["rnn"][(layer, d)] = (w_ih, w_hh, (b_ih + b_hh)[None, :])
    fc_in = hidden_size * num_dirs
    kf = 1.0 / jnp.sqrt(fc_in)
    key, k1, k2 = jax.random.split(key, 3)
    params["fc_w"] = jax.random.uniform(k1, (fc_in, num_cls), jnp.float32, -kf, kf)
    params["fc_b"] = jax.random.uniform(k2, (1, num_cls), jnp.float32, -kf, kf)
    return params


def pack_params(params, hidden_size, num_layers, bidirectional, num_cls):
    """Pack per-direction weights into fused-kernel operands."""
    num_dirs = 2 if bidirectional else 1
    H = hidden_size
    packed = []
    for l in range(num_layers):
        w_ihs = [params["rnn"][(l, d)][0] for d in range(num_dirs)]
        biases = [params["rnn"][(l, d)][2] for d in range(num_dirs)]
        w_ih_packed = jnp.concatenate(w_ihs, axis=1)       # (F_l, num_dirs*4H)
        bias_packed = jnp.concatenate(biases, axis=1)      # (1, num_dirs*4H)
        if num_dirs == 2:
            # Block-diagonal recurrent weight: [h_f | h_b] @ W gives both dirs' gates.
            w_hh_packed = jnp.zeros((2 * H, 8 * H), jnp.float32)
            w_hh_packed = w_hh_packed.at[:H, :4 * H].set(params["rnn"][(l, 0)][1])
            w_hh_packed = w_hh_packed.at[H:, 4 * H:].set(params["rnn"][(l, 1)][1])
        else:
            w_hh_packed = params["rnn"][(l, 0)][1]
        packed += [w_ih_packed, w_hh_packed, bias_packed]
    # FC padded to a lane-dense 128-wide output slab (extra columns sliced later).
    fc_w = params["fc_w"]
    fc_b = params["fc_b"]
    fc_w_pad = jnp.zeros((fc_w.shape[0], N_PAD), jnp.float32).at[:, :num_cls].set(fc_w)
    fc_b_pad = jnp.zeros((1, N_PAD), jnp.float32).at[:, :num_cls].set(fc_b)
    packed += [fc_w_pad, fc_b_pad]
    return packed


# ----------------------------------------------------------------------------
# Pure-JAX reference for a sanity check
# ----------------------------------------------------------------------------
def reference_forward(x, params, num_layers, bidirectional):
    num_dirs = 2 if bidirectional else 1

    def one_dir(x_tbf, w_ih, w_hh, b):
        T, B, _ = x_tbf.shape
        H = w_hh.shape[0]

        def step(carry, x_t):
            h, c = carry
            gates = x_t @ w_ih + h @ w_hh + b
            i = jax.nn.sigmoid(gates[:, 0 * H:1 * H])
            f = jax.nn.sigmoid(gates[:, 1 * H:2 * H])
            g = jnp.tanh(gates[:, 2 * H:3 * H])
            o = jax.nn.sigmoid(gates[:, 3 * H:4 * H])
            c = f * c + i * g
            h = o * jnp.tanh(c)
            return (h, c), h

        init = (jnp.zeros((B, H), jnp.float32), jnp.zeros((B, H), jnp.float32))
        _, hs = jax.lax.scan(step, init, x_tbf)
        return hs

    xt = jnp.transpose(x, (1, 0, 2))
    layer_in = xt
    for layer in range(num_layers):
        outs = []
        for d in range(num_dirs):
            w_ih, w_hh, b = params["rnn"][(layer, d)]
            inp = layer_in if d == 0 else layer_in[::-1]
            out = one_dir(inp, w_ih, w_hh, b)
            if d == 1:
                out = out[::-1]
            outs.append(out)
        layer_in = outs[0] if num_dirs == 1 else jnp.concatenate(outs, axis=-1)
    outputs = jnp.transpose(layer_in, (1, 0, 2))
    return jax.nn.sigmoid(outputs @ params["fc_w"] + params["fc_b"])


# ----------------------------------------------------------------------------
if __name__ == "__main__":
    INPUT_SIZE = 16
    HIDDEN_SIZE = 32
    NUM_LAYERS = 2
    BIDIRECTIONAL = True
    NUM_CLS = 3
    BATCH = 2
    SEQ = 8

    key = jax.random.PRNGKey(0)
    key, kx, kp = jax.random.split(key, 3)
    x = jax.random.normal(kx, (BATCH, SEQ, INPUT_SIZE), jnp.float32)   # batch_first
    params = init_params(kp, INPUT_SIZE, HIDDEN_SIZE, NUM_LAYERS, BIDIRECTIONAL, NUM_CLS)
    packed = pack_params(params, HIDDEN_SIZE, NUM_LAYERS, BIDIRECTIONAL, NUM_CLS)

    fwd = jax.jit(functools.partial(
        lstm_model_forward, hidden_size=HIDDEN_SIZE, num_layers=NUM_LAYERS,
        bidirectional=BIDIRECTIONAL, num_cls=NUM_CLS))
    y = jax.block_until_ready(fwd(x, packed))

    y_ref = reference_forward(x, params, NUM_LAYERS, BIDIRECTIONAL)
    assert y.shape == (BATCH, SEQ, NUM_CLS), y.shape
    assert jnp.allclose(y, y_ref, atol=1e-4, rtol=1e-4), float(jnp.max(jnp.abs(y - y_ref)))

    print("KERNEL_OK")
</pallas_src>

<mosaic_0001>
module attributes {stable_mosaic.version = 11 : i64} {
  func.func @fused_lstm_kernel(%arg0: memref<2x8x16xf32, #tpu.memory_space<vmem>>, %arg1: memref<16x256xf32, #tpu.memory_space<vmem>>, %arg2: memref<64x256xf32, #tpu.memory_space<vmem>>, %arg3: memref<1x256xf32, #tpu.memory_space<vmem>>, %arg4: memref<64x256xf32, #tpu.memory_space<vmem>>, %arg5: memref<64x256xf32, #tpu.memory_space<vmem>>, %arg6: memref<1x256xf32, #tpu.memory_space<vmem>>, %arg7: memref<64x128xf32, #tpu.memory_space<vmem>>, %arg8: memref<1x128xf32, #tpu.memory_space<vmem>>, %arg9: memref<2x8x128xf32, #tpu.memory_space<vmem>>, %arg10: memref<2x8x64xf32, #tpu.memory_space<vmem>>) attributes {dimension_semantics = [], scalar_prefetch = 0 : i64, scratch_operands = 1 : i64, tpu.core_type = #tpu.core_type<tc>} {
    %c0 = arith.constant 0 : index
    %c0_0 = arith.constant 0 : index
    %c0_1 = arith.constant 0 : index
    %0 = vector.load %arg0[%c0, %c0_0, %c0_1] : memref<2x8x16xf32, #tpu.memory_space<vmem>>, vector<2x8x16xf32>
    %c0_2 = arith.constant 0 : index
    %c0_3 = arith.constant 0 : index
    %1 = vector.load %arg1[%c0_2, %c0_3] : memref<16x256xf32, #tpu.memory_space<vmem>>, vector<16x256xf32>
    %c0_4 = arith.constant 0 : index
    %c0_5 = arith.constant 0 : index
    %2 = vector.load %arg2[%c0_4, %c0_5] : memref<64x256xf32, #tpu.memory_space<vmem>>, vector<64x256xf32>
    %c0_6 = arith.constant 0 : index
    %c0_7 = arith.constant 0 : index
    %3 = vector.load %arg3[%c0_6, %c0_7] : memref<1x256xf32, #tpu.memory_space<vmem>>, vector<1x256xf32>
    %4 = vector.shape_cast %0 : vector<2x8x16xf32> to vector<16x16xf32>
    %cst = arith.constant dense<0.000000e+00> : vector<16x256xf32>
    %5 = tpu.matmul %4, %1, %cst {dimension_numbers = #tpu.dot_dimension_numbers<[1], [0], [0], [1], [0, 0, 1, 1], [], []>} : vector<16x16xf32>, vector<16x256xf32>, vector<16x256xf32> -> vector<16x256xf32>
    %6 = vector.broadcast %3 : vector<1x256xf32> to vector<16x256xf32>
    %7 = arith.addf %5, %6 : vector<16x256xf32>
    %8 = vector.shape_cast %7 : vector<16x256xf32> to vector<2x8x256xf32>
    %cst_8 = arith.constant 0.000000e+00 : f32
    %9 = vector.broadcast %cst_8 : f32 to vector<2x32xf32>
    %10 = tpu.concatenate %9, %9 in 1 : vector<2x32xf32>, vector<2x32xf32> -> vector<2x64xf32>
    %cst_9 = arith.constant dense<0.000000e+00> : vector<2x256xf32>
    %11 = tpu.matmul %10, %2, %cst_9 {dimension_numbers = #tpu.dot_dimension_numbers<[1], [0], [0], [1], [0, 0, 1, 1], [], []>} : vector<2x64xf32>, vector<64x256xf32>, vector<2x256xf32> -> vector<2x256xf32>
    %12 = vector.extract_strided_slice %8 {offsets = [0, 0, 0], sizes = [2, 1, 128], strides = [1, 1, 1]} : vector<2x8x256xf32> to vector<2x1x128xf32>
    %13 = vector.shape_cast %12 : vector<2x1x128xf32> to vector<2x128xf32>
    %14 = vector.extract_strided_slice %11 {offsets = [0, 0], sizes = [2, 128], strides = [1, 1]} : vector<2x256xf32> to vector<2x128xf32>
    %15 = arith.addf %13, %14 : vector<2x128xf32>
    %16 = vector.extract_strided_slice %15 {offsets = [0, 0], sizes = [2, 32], strides = [1, 1]} : vector<2x128xf32> to vector<2x32xf32>
    %17 = arith.negf %16 : vector<2x32xf32>
    %18 = math.exp %17 : vector<2x32xf32>
    %cst_10 = arith.constant 1.000000e+00 : f32
    %19 = vector.broadcast %cst_10 : f32 to vector<2x32xf32>
    %20 = arith.addf %19, %18 : vector<2x32xf32>
    %21 = arith.divf %19, %20 : vector<2x32xf32>
    %22 = vector.extract_strided_slice %15 {offsets = [0, 32], sizes = [2, 32], strides = [1, 1]} : vector<2x128xf32> to vector<2x32xf32>
    %23 = arith.negf %22 : vector<2x32xf32>
    %24 = math.exp %23 : vector<2x32xf32>
    %cst_11 = arith.constant 1.000000e+00 : f32
    %25 = vector.broadcast %cst_11 : f32 to vector<2x32xf32>
    %26 = arith.addf %25, %24 : vector<2x32xf32>
    %27 = arith.divf %25, %26 : vector<2x32xf32>
    %28 = vector.extract_strided_slice %15 {offsets = [0, 64], sizes = [2, 32], strides = [1, 1]} : vector<2x128xf32> to vector<2x32xf32>
    %29 = math.tanh %28 : vector<2x32xf32>
    %30 = vector.extract_strided_slice %15 {offsets = [0, 96], sizes = [2, 32], strides = [1, 1]} : vector<2x128xf32> to vector<2x32xf32>
    %31 = arith.negf %30 : vector<2x32xf32>
    %32 = math.exp %31 : vector<2x32xf32>
    %cst_12 = arith.constant 1.000000e+00 : f32
    %33 = vector.broadcast %cst_12 : f32 to vector<2x32xf32>
    %34 = arith.addf %33, %32 : vector<2x32xf32>
    %35 = arith.divf %33, %34 : vector<2x32xf32>
    %36 = arith.mulf %27, %9 : vector<2x32xf32>
    %37 = arith.mulf %21, %29 : vector<2x32xf32>
    %38 = arith.addf %36, %37 : vector<2x32xf32>
    %39 = math.tanh %38 : vector<2x32xf32>
    %40 = arith.mulf %35, %39 : vector<2x32xf32>
    %c0_13 = arith.constant 0 : index
    %c0_14 = arith.constant 0 : index
    %c0_15 = arith.constant 0 : index
    %41 = vector.load %arg10[%c0_13, %c0_14, %c0_15] : memref<2x8x64xf32, #tpu.memory_space<vmem>>, vector<2x1x32xf32>
    %42 = vector.shape_cast %41 : vector<2x1x32xf32> to vector<2x32xf32>
    %43 = vector.shape_cast %40 : vector<2x32xf32> to vector<2x1x32xf32>
    tpu.vector_store %arg10[%c0_13, %c0_14, %c0_15], %43 {strides = array<i32>} : memref<2x8x64xf32, #tpu.memory_space<vmem>>, vector<2x1x32xf32>,
    %44 = vector.extract_strided_slice %8 {offsets = [0, 7, 128], sizes = [2, 1, 128], strides = [1, 1, 1]} : vector<2x8x256xf32> to vector<2x1x128xf32>
    %45 = vector.shape_cast %44 : vector<2x1x128xf32> to vector<2x128xf32>
    %46 = vector.extract_strided_slice %11 {offsets = [0, 128], sizes = [2, 128], strides = [1, 1]} : vector<2x256xf32> to vector<2x128xf32>
    %47 = arith.addf %45, %46 : vector<2x128xf32>
    %48 = vector.extract_strided_slice %47 {offsets = [0, 0], sizes = [2, 32], strides = [1, 1]} : vector<2x128xf32> to vector<2x32xf32>
    %49 = arith.negf %48 : vector<2x32xf32>
    %50 = math.exp %49 : vector<2x32xf32>
    %cst_16 = arith.constant 1.000000e+00 : f32
    %51 = vector.broadcast %cst_16 : f32 to vector<2x32xf32>
    %52 = arith.addf %51, %50 : vector<2x32xf32>
    %53 = arith.divf %51, %52 : vector<2x32xf32>
    %54 = vector.extract_strided_slice %47 {offsets = [0, 32], sizes = [2, 32], strides = [1, 1]} : vector<2x128xf32> to vector<2x32xf32>
    %55 = arith.negf %54 : vector<2x32xf32>
    %56 = math.exp %55 : vector<2x32xf32>
    %cst_17 = arith.constant 1.000000e+00 : f32
    %57 = vector.broadcast %cst_17 : f32 to vector<2x32xf32>
    %58 = arith.addf %57, %56 : vector<2x32xf32>
    %59 = arith.divf %57, %58 : vector<2x32xf32>
    %60 = vector.extract_strided_slice %47 {offsets = [0, 64], sizes = [2, 32], strides = [1, 1]} : vector<2x128xf32> to vector<2x32xf32>
    %61 = math.tanh %60 : vector<2x32xf32>
    %62 = vector.extract_strided_slice %47 {offsets = [0, 96], sizes = [2, 32], strides = [1, 1]} : vector<2x128xf32> to vector<2x32xf32>
    %63 = arith.negf %62 : vector<2x32xf32>
    %64 = math.exp %63 : vector<2x32xf32>
    %cst_18 = arith.constant 1.000000e+00 : f32
    %65 = vector.broadcast %cst_18 : f32 to vector<2x32xf32>
    %66 = arith.addf %65, %64 : vector<2x32xf32>
    %67 = arith.divf %65, %66 : vector<2x32xf32>
    %68 = arith.mulf %59, %9 : vector<2x32xf32>
    %69 = arith.mulf %53, %61 : vector<2x32xf32>
    %70 = arith.addf %68, %69 : vector<2x32xf32>
    %71 = math.tanh %70 : vector<2x32xf32>
    %72 = arith.mulf %67, %71 : vector<2x32xf32>
    %c0_19 = arith.constant 0 : index
    %c7 = arith.constant 7 : index
    %c32 = arith.constant 32 : index
    %73 = vector.load %arg10[%c0_19, %c7, %c32] : memref<2x8x64xf32, #tpu.memory_space<vmem>>, vector<2x1x32xf32>
    %74 = vector.shape_cast %73 : vector<2x1x32xf32> to vector<2x32xf32>
    %75 = vector.shape_cast %72 : vector<2x32xf32> to vector<2x1x32xf32>
    tpu.vector_store %arg10[%c0_19, %c7, %c32], %75 {strides = array<i32>} : memref<2x8x64xf32, #tpu.memory_space<vmem>>, vector<2x1x32xf32>,
    %76 = tpu.concatenate %40, %72 in 1 : vector<2x32xf32>, vector<2x32xf32> -> vector<2x64xf32>
    %cst_20 = arith.constant dense<0.000000e+00> : vector<2x256xf32>
    %77 = tpu.matmul %76, %2, %cst_20 {dimension_numbers = #tpu.dot_dimension_numbers<[1], [0], [0], [1], [0, 0, 1, 1], [], []>} : vector<2x64xf32>, vector<64x256xf32>, vector<2x256xf32> -> vector<2x256xf32>
    %78 = vector.extract_strided_slice %8 {offsets = [0, 1, 0], sizes = [2, 1, 128], strides = [1, 1, 1]} : vector<2x8x256xf32> to vector<2x1x128xf32>
    %79 = vector.shape_cast %78 : vector<2x1x128xf32> to vector<2x128xf32>
    %80 = vector.extract_strided_slice %77 {offsets = [0, 0], sizes = [2, 128], strides = [1, 1]} : vector<2x256xf32> to vector<2x128xf32>
    %81 = arith.addf %79, %80 : vector<2x128xf32>
    %82 = vector.extract_strided_slice %81 {offsets = [0, 0], sizes = [2, 32], strides = [1, 1]} : vector<2x128xf32> to vector<2x32xf32>
    %83 = arith.negf %82 : vector<2x32xf32>
    %84 = math.exp %83 : vector<2x32xf32>
    %cst_21 = arith.constant 1.000000e+00 : f32
    %85 = vector.broadcast %cst_21 : f32 to vector<2x32xf32>
    %86 = arith.addf %85, %84 : vector<2x32xf32>
    %87 = arith.divf %85, %86 : vector<2x32xf32>
    %88 = vector.extract_strided_slice %81 {offsets = [0, 32], sizes = [2, 32], strides = [1, 1]} : vector<2x128xf32> to vector<2x32xf32>
    %89 = arith.negf %88 : vector<2x32xf32>
    %90 = math.exp %89 : vector<2x32xf32>
    %cst_22 = arith.constant 1.000000e+00 : f32
    %91 = vector.broadcast %cst_22 : f32 to vector<2x32xf32>
    %92 = arith.addf %91, %90 : vector<2x32xf32>
    %93 = arith.divf %91, %92 : vector<2x32xf32>
    %94 = vector.extract_strided_slice %81 {offsets = [0, 64], sizes = [2, 32], strides = [1, 1]} : vector<2x128xf32> to vector<2x32xf32>
    %95 = math.tanh %94 : vector<2x32xf32>
    %96 = vector.extract_strided_slice %81 {offsets = [0, 96], sizes = [2, 32], strides = [1, 1]} : vector<2x128xf32> to vector<2x32xf32>
    %97 = arith.negf %96 : vector<2x32xf32>
    %98 = math.exp %97 : vector<2x32xf32>
    %cst_23 = arith.constant 1.000000e+00 : f32
    %99 = vector.broadcast %cst_23 : f32 to vector<2x32xf32>
    %100 = arith.addf %99, %98 : vector<2x32xf32>
    %101 = arith.divf %99, %100 : vector<2x32xf32>
    %102 = arith.mulf %93, %38 : vector<2x32xf32>
    %103 = arith.mulf %87, %95 : vector<2x32xf32>
    %104 = arith.addf %102, %103 : vector<2x32xf32>
    %105 = math.tanh %104 : vector<2x32xf32>
    %106 = arith.mulf %101, %105 : vector<2x32xf32>
    %c0_24 = arith.constant 0 : index
    %c1 = arith.constant 1 : index
    %c0_25 = arith.constant 0 : index
    %107 = vector.load %arg10[%c0_24, %c1, %c0_25] : memref<2x8x64xf32, #tpu.memory_space<vmem>>, vector<2x1x32xf32>
    %108 = vector.shape_cast %107 : vector<2x1x32xf32> to vector<2x32xf32>
    %109 = vector.shape_cast %106 : vector<2x32xf32> to vector<2x1x32xf32>
    tpu.vector_store %arg10[%c0_24, %c1, %c0_25], %109 {strides = array<i32>} : memref<2x8x64xf32, #tpu.memory_space<vmem>>, vector<2x1x32xf32>,
    %110 = vector.extract_strided_slice %8 {offsets = [0, 6, 128], sizes = [2, 1, 128], strides = [1, 1, 1]} : vector<2x8x256xf32> to vector<2x1x128xf32>
    %111 = vector.shape_cast %110 : vector<2x1x128xf32> to vector<2x128xf32>
    %112 = vector.extract_strided_slice %77 {offsets = [0, 128], sizes = [2, 128], strides = [1, 1]} : vector<2x256xf32> to vector<2x128xf32>
    %113 = arith.addf %111, %112 : vector<2x128xf32>
    %114 = vector.extract_strided_slice %113 {offsets = [0, 0], sizes = [2, 32], strides = [1, 1]} : vector<2x128xf32> to vector<2x32xf32>
    %115 = arith.negf %114 : vector<2x32xf32>
    %116 = math.exp %115 : vector<2x32xf32>
    %cst_26 = arith.constant 1.000000e+00 : f32
    %117 = vector.broadcast %cst_26 : f32 to vector<2x32xf32>
    %118 = arith.addf %117, %116 : vector<2x32xf32>
    %119 = arith.divf %117, %118 : vector<2x32xf32>
    %120 = vector.extract_strided_slice %113 {offsets = [0, 32], sizes = [2, 32], strides = [1, 1]} : vector<2x128xf32> to vector<2x32xf32>
    %121 = arith.negf %120 : vector<2x32xf32>
    %122 = math.exp %121 : vector<2x32xf32>
    %cst_27 = arith.constant 1.000000e+00 : f32
    %123 = vector.broadcast %cst_27 : f32 to vector<2x32xf32>
    %124 = arith.addf %123, %122 : vector<2x32xf32>
    %125 = arith.divf %123, %124 : vector<2x32xf32>
    %126 = vector.extract_strided_slice %113 {offsets = [0, 64], sizes = [2, 32], strides = [1, 1]} : vector<2x128xf32> to vector<2x32xf32>
    %127 = math.tanh %126 : vector<2x32xf32>
    %128 = vector.extract_strided_slice %113 {offsets = [0, 96], sizes = [2, 32], strides = [1, 1]} : vector<2x128xf32> to vector<2x32xf32>
    %129 = arith.negf %128 : vector<2x32xf32>
    %130 = math.exp %129 : vector<2x32xf32>
    %cst_28 = arith.constant 1.000000e+00 : f32
    %131 = vector.broadcast %cst_28 : f32 to vector<2x32xf32>
    %132 = arith.addf %131, %130 : vector<2x32xf32>
    %133 = arith.divf %131, %132 : vector<2x32xf32>
    %134 = arith.mulf %125, %70 : vector<2x32xf32>
    %135 = arith.mulf %119, %127 : vector<2x32xf32>
    %136 = arith.addf %134, %135 : vector<2x32xf32>
    %137 = math.tanh %136 : vector<2x32xf32>
    %138 = arith.mulf %133, %137 : vector<2x32xf32>
    %c0_29 = arith.constant 0 : index
    %c6 = arith.constant 6 : index
    %c32_30 = arith.constant 32 : index
    %139 = vector.load %arg10[%c0_29, %c6, %c32_30] : memref<2x8x64xf32, #tpu.memory_space<vmem>>, vector<2x1x32xf32>
    %140 = vector.shape_cast %139 : vector<2x1x32xf32> to vector<2x32xf32>
    %141 = vector.shape_cast %138 : vector<2x32xf32> to vector<2x1x32xf32>
    tpu.vector_store %arg10[%c0_29, %c6, %c32_30], %141 {strides = array<i32>} : memref<2x8x64xf32, #tpu.memory_space<vmem>>, vector<2x1x32xf32>,
    %142 = tpu.concatenate %106, %138 in 1 : vector<2x32xf32>, vector<2x32xf32> -> vector<2x64xf32>
    %cst_31 = arith.constant dense<0.000000e+00> : vector<2x256xf32>
    %143 = tpu.matmul %142, %2, %cst_31 {dimension_numbers = #tpu.dot_dimension_numbers<[1], [0], [0], [1], [0, 0, 1, 1], [], []>} : vector<2x64xf32>, vector<64x256xf32>, vector<2x256xf32> -> vector<2x256xf32>
    %144 = vector.extract_strided_slice %8 {offsets = [0, 2, 0], sizes = [2, 1, 128], strides = [1, 1, 1]} : vector<2x8x256xf32> to vector<2x1x128xf32>
    %145 = vector.shape_cast %144 : vector<2x1x128xf32> to vector<2x128xf32>
    %146 = vector.extract_strided_slice %143 {offsets = [0, 0], sizes = [2, 128], strides = [1, 1]} : vector<2x256xf32> to vector<2x128xf32>
    %147 = arith.addf %145, %146 : vector<2x128xf32>
    %148 = vector.extract_strided_slice %147 {offsets = [0, 0], sizes = [2, 32], strides = [1, 1]} : vector<2x128xf32> to vector<2x32xf32>
    %149 = arith.negf %148 : vector<2x32xf32>
    %150 = math.exp %149 : vector<2x32xf32>
    %cst_32 = arith.constant 1.000000e+00 : f32
    %151 = vector.broadcast %cst_32 : f32 to vector<2x32xf32>
    %152 = arith.addf %151, %150 : vector<2x32xf32>
    %153 = arith.divf %151, %152 : vector<2x32xf32>
    %154 = vector.extract_strided_slice %147 {offsets = [0, 32], sizes = [2, 32], strides = [1, 1]} : vector<2x128xf32> to vector<2x32xf32>
    %155 = arith.negf %154 : vector<2x32xf32>
    %156 = math.exp %155 : vector<2x32xf32>
    %cst_33 = arith.constant 1.000000e+00 : f32
    %157 = vector.broadcast %cst_33 : f32 to vector<2x32xf32>
    %158 = arith.addf %157, %156 : vector<2x32xf32>
    %159 = arith.divf %157, %158 : vector<2x32xf32>
    %160 = vector.extract_strided_slice %147 {offsets = [0, 64], sizes = [2, 32], strides = [1, 1]} : vector<2x128xf32> to vector<2x32xf32>
    %161 = math.tanh %160 : vector<2x32xf32>
    %162 = vector.extract_strided_slice %147 {offsets = [0, 96], sizes = [2, 32], strides = [1, 1]} : vector<2x128xf32> to vector<2x32xf32>
    %163 = arith.negf %162 : vector<2x32xf32>
    %164 = math.exp %163 : vector<2x32xf32>
    %cst_34 = arith.constant 1.000000e+00 : f32
    %165 = vector.broadcast %cst_34 : f32 to vector<2x32xf32>
    %166 = arith.addf %165, %164 : vector<2x32xf32>
    %167 = arith.divf %165, %166 : vector<2x32xf32>
    %168 = arith.mulf %159, %104 : vector<2x32xf32>
    %169 = arith.mulf %153, %161 : vector<2x32xf32>
    %170 = arith.addf %168, %169 : vector<2x32xf32>
    %171 = math.tanh %170 : vector<2x32xf32>
    %172 = arith.mulf %167, %171 : vector<2x32xf32>
    %c0_35 = arith.constant 0 : index
    %c2 = arith.constant 2 : index
    %c0_36 = arith.constant 0 : index
    %173 = vector.load %arg10[%c0_35, %c2, %c0_36] : memref<2x8x64xf32, #tpu.memory_space<vmem>>, vector<2x1x32xf32>
    %174 = vector.shape_cast %173 : vector<2x1x32xf32> to vector<2x32xf32>
    %175 = vector.shape_cast %172 : vector<2x32xf32> to vector<2x1x32xf32>
    tpu.vector_store %arg10[%c0_35, %c2, %c0_36], %175 {strides = array<i32>} : memref<2x8x64xf32, #tpu.memory_space<vmem>>, vector<2x1x32xf32>,
    %176 = vector.extract_strided_slice %8 {offsets = [0, 5, 128], sizes = [2, 1, 128], strides = [1, 1, 1]} : vector<2x8x256xf32> to vector<2x1x128xf32>
    %177 = vector.shape_cast %176 : vector<2x1x128xf32> to vector<2x128xf32>
    %178 = vector.extract_strided_slice %143 {offsets = [0, 128], sizes = [2, 128], strides = [1, 1]} : vector<2x256xf32> to vector<2x128xf32>
    %179 = arith.addf %177, %178 : vector<2x128xf32>
    %180 = vector.extract_strided_slice %179 {offsets = [0, 0], sizes = [2, 32], strides = [1, 1]} : vector<2x128xf32> to vector<2x32xf32>
    %181 = arith.negf %180 : vector<2x32xf32>
    %182 = math.exp %181 : vector<2x32xf32>
    %cst_37 = arith.constant 1.000000e+00 : f32
    %183 = vector.broadcast %cst_37 : f32 to vector<2x32xf32>
    %184 = arith.addf %183, %182 : vector<2x32xf32>
    %185 = arith.divf %183, %184 : vector<2x32xf32>
    %186 = vector.extract_strided_slice %179 {offsets = [0, 32], sizes = [2, 32], strides = [1, 1]} : vector<2x128xf32> to vector<2x32xf32>
    %187 = arith.negf %186 : vector<2x32xf32>
    %188 = math.exp %187 : vector<2x32xf32>
    %cst_38 = arith.constant 1.000000e+00 : f32
    %189 = vector.broadcast %cst_38 : f32 to vector<2x32xf32>
    %190 = arith.addf %189, %188 : vector<2x32xf32>
    %191 = arith.divf %189, %190 : vector<2x32xf32>
    %192 = vector.extract_strided_slice %179 {offsets = [0, 64], sizes = [2, 32], strides = [1, 1]} : vector<2x128xf32> to vector<2x32xf32>
    %193 = math.tanh %192 : vector<2x32xf32>
    %194 = vector.extract_strided_slice %179 {offsets = [0, 96], sizes = [2, 32], strides = [1, 1]} : vector<2x128xf32> to vector<2x32xf32>
    %195 = arith.negf %194 : vector<2x32xf32>
    %196 = math.exp %195 : vector<2x32xf32>
    %cst_39 = arith.constant 1.000000e+00 : f32
    %197 = vector.broadcast %cst_39 : f32 to vector<2x32xf32>
    %198 = arith.addf %197, %196 : vector<2x32xf32>
    %199 = arith.divf %197, %198 : vector<2x32xf32>
    %200 = arith.mulf %191, %136 : vector<2x32xf32>
    %201 = arith.mulf %185, %193 : vector<2x32xf32>
    %202 = arith.addf %200, %201 : vector<2x32xf32>
    %203 = math.tanh %202 : vector<2x32xf32>
    %204 = arith.mulf %199, %203 : vector<2x32xf32>
    %c0_40 = arith.constant 0 : index
    %c5 = arith.constant 5 : index
    %c32_41 = arith.constant 32 : index
    %205 = vector.load %arg10[%c0_40, %c5, %c32_41] : memref<2x8x64xf32, #tpu.memory_space<vmem>>, vector<2x1x32xf32>
    %206 = vector.shape_cast %205 : vector<2x1x32xf32> to vector<2x32xf32>
    %207 = vector.shape_cast %204 : vector<2x32xf32> to vector<2x1x32xf32>
    tpu.vector_store %arg10[%c0_40, %c5, %c32_41], %207 {strides = array<i32>} : memref<2x8x64xf32, #tpu.memory_space<vmem>>, vector<2x1x32xf32>,
    %208 = tpu.concatenate %172, %204 in 1 : vector<2x32xf32>, vector<2x32xf32> -> vector<2x64xf32>
    %cst_42 = arith.constant dense<0.000000e+00> : vector<2x256xf32>
    %209 = tpu.matmul %208, %2, %cst_42 {dimension_numbers = #tpu.dot_dimension_numbers<[1], [0], [0], [1], [0, 0, 1, 1], [], []>} : vector<2x64xf32>, vector<64x256xf32>, vector<2x256xf32> -> vector<2x256xf32>
    %210 = vector.extract_strided_slice %8 {offsets = [0, 3, 0], sizes = [2, 1, 128], strides = [1, 1, 1]} : vector<2x8x256xf32> to vector<2x1x128xf32>
    %211 = vector.shape_cast %210 : vector<2x1x128xf32> to vector<2x128xf32>
    %212 = vector.extract_strided_slice %209 {offsets = [0, 0], sizes = [2, 128], strides = [1, 1]} : vector<2x256xf32> to vector<2x128xf32>
    %213 = arith.addf %211, %212 : vector<2x128xf32>
    %214 = vector.extract_strided_slice %213 {offsets = [0, 0], sizes = [2, 32], strides = [1, 1]} : vector<2x128xf32> to vector<2x32xf32>
    %215 = arith.negf %214 : vector<2x32xf32>
    %216 = math.exp %215 : vector<2x32xf32>
    %cst_43 = arith.constant 1.000000e+00 : f32
    %217 = vector.broadcast %cst_43 : f32 to vector<2x32xf32>
    %218 = arith.addf %217, %216 : vector<2x32xf32>
    %219 = arith.divf %217, %218 : vector<2x32xf32>
    %220 = vector.extract_strided_slice %213 {offsets = [0, 32], sizes = [2, 32], strides = [1, 1]} : vector<2x128xf32> to vector<2x32xf32>
    %221 = arith.negf %220 : vector<2x32xf32>
    %222 = math.exp %221 : vector<2x32xf32>
    %cst_44 = arith.constant 1.000000e+00 : f32
    %223 = vector.broadcast %cst_44 : f32 to vector<2x32xf32>
    %224 = arith.addf %223, %222 : vector<2x32xf32>
    %225 = arith.divf %223, %224 : vector<2x32xf32>
    %226 = vector.extract_strided_slice %213 {offsets = [0, 64], sizes = [2, 32], strides = [1, 1]} : vector<2x128xf32> to vector<2x32xf32>
    %227 = math.tanh %226 : vector<2x32xf32>
    %228 = vector.extract_strided_slice %213 {offsets = [0, 96], sizes = [2, 32], strides = [1, 1]} : vector<2x128xf32> to vector<2x32xf32>
    %229 = arith.negf %228 : vector<2x32xf32>
    %230 = math.exp %229 : vector<2x32xf32>
    %cst_45 = arith.constant 1.000000e+00 : f32
    %231 = vector.broadcast %cst_45 : f32 to vector<2x32xf32>
    %232 = arith.addf %231, %230 : vector<2x32xf32>
    %233 = arith.divf %231, %232 : vector<2x32xf32>
    %234 = arith.mulf %225, %170 : vector<2x32xf32>
    %235 = arith.mulf %219, %227 : vector<2x32xf32>
    %236 = arith.addf %234, %235 : vector<2x32xf32>
    %237 = math.tanh %236 : vector<2x32xf32>
    %238 = arith.mulf %233, %237 : vector<2x32xf32>
    %c0_46 = arith.constant 0 : index
    %c3 = arith.constant 3 : index
    %c0_47 = arith.constant 0 : index
    %239 = vector.load %arg10[%c0_46, %c3, %c0_47] : memref<2x8x64xf32, #tpu.memory_space<vmem>>, vector<2x1x32xf32>
    %240 = vector.shape_cast %239 : vector<2x1x32xf32> to vector<2x32xf32>
    %241 = vector.shape_cast %238 : vector<2x32xf32> to vector<2x1x32xf32>
    tpu.vector_store %arg10[%c0_46, %c3, %c0_47], %241 {strides = array<i32>} : memref<2x8x64xf32, #tpu.memory_space<vmem>>, vector<2x1x32xf32>,
    %242 = vector.extract_strided_slice %8 {offsets = [0, 4, 128], sizes = [2, 1, 128], strides = [1, 1, 1]} : vector<2x8x256xf32> to vector<2x1x128xf32>
    %243 = vector.shape_cast %242 : vector<2x1x128xf32> to vector<2x128xf32>
    %244 = vector.extract_strided_slice %209 {offsets = [0, 128], sizes = [2, 128], strides = [1, 1]} : vector<2x256xf32> to vector<2x128xf32>
    %245 = arith.addf %243, %244 : vector<2x128xf32>
    %246 = vector.extract_strided_slice %245 {offsets = [0, 0], sizes = [2, 32], strides = [1, 1]} : vector<2x128xf32> to vector<2x32xf32>
    %247 = arith.negf %246 : vector<2x32xf32>
    %248 = math.exp %247 : vector<2x32xf32>
    %cst_48 = arith.constant 1.000000e+00 : f32
    %249 = vector.broadcast %cst_48 : f32 to vector<2x32xf32>
    %250 = arith.addf %249, %248 : vector<2x32xf32>
    %251 = arith.divf %249, %250 : vector<2x32xf32>
    %252 = vector.extract_strided_slice %245 {offsets = [0, 32], sizes = [2, 32], strides = [1, 1]} : vector<2x128xf32> to vector<2x32xf32>
    %253 = arith.negf %252 : vector<2x32xf32>
    %254 = math.exp %253 : vector<2x32xf32>
    %cst_49 = arith.constant 1.000000e+00 : f32
    %255 = vector.broadcast %cst_49 : f32 to vector<2x32xf32>
    %256 = arith.addf %255, %254 : vector<2x32xf32>
    %257 = arith.divf %255, %256 : vector<2x32xf32>
    %258 = vector.extract_strided_slice %245 {offsets = [0, 64], sizes = [2, 32], strides = [1, 1]} : vector<2x128xf32> to vector<2x32xf32>
    %259 = math.tanh %258 : vector<2x32xf32>
    %260 = vector.extract_strided_slice %245 {offsets = [0, 96], sizes = [2, 32], strides = [1, 1]} : vector<2x128xf32> to vector<2x32xf32>
    %261 = arith.negf %260 : vector<2x32xf32>
    %262 = math.exp %261 : vector<2x32xf32>
    %cst_50 = arith.constant 1.000000e+00 : f32
    %263 = vector.broadcast %cst_50 : f32 to vector<2x32xf32>
    %264 = arith.addf %263, %262 : vector<2x32xf32>
    %265 = arith.divf %263, %264 : vector<2x32xf32>
    %266 = arith.mulf %257, %202 : vector<2x32xf32>
    %267 = arith.mulf %251, %259 : vector<2x32xf32>
    %268 = arith.addf %266, %267 : vector<2x32xf32>
    %269 = math.tanh %268 : vector<2x32xf32>
    %270 = arith.mulf %265, %269 : vector<2x32xf32>
    %c0_51 = arith.constant 0 : index
    %c4 = arith.constant 4 : index
    %c32_52 = arith.constant 32 : index
    %271 = vector.load %arg10[%c0_51, %c4, %c32_52] : memref<2x8x64xf32, #tpu.memory_space<vmem>>, vector<2x1x32xf32>
    %272 = vector.shape_cast %271 : vector<2x1x32xf32> to vector<2x32xf32>
    %273 = vector.shape_cast %270 : vector<2x32xf32> to vector<2x1x32xf32>
    tpu.vector_store %arg10[%c0_51, %c4, %c32_52], %273 {strides = array<i32>} : memref<2x8x64xf32, #tpu.memory_space<vmem>>, vector<2x1x32xf32>,
    %274 = tpu.concatenate %238, %270 in 1 : vector<2x32xf32>, vector<2x32xf32> -> vector<2x64xf32>
    %cst_53 = arith.constant dense<0.000000e+00> : vector<2x256xf32>
    %275 = tpu.matmul %274, %2, %cst_53 {dimension_numbers = #tpu.dot_dimension_numbers<[1], [0], [0], [1], [0, 0, 1, 1], [], []>} : vector<2x64xf32>, vector<64x256xf32>, vector<2x256xf32> -> vector<2x256xf32>
    %276 = vector.extract_strided_slice %8 {offsets = [0, 4, 0], sizes = [2, 1, 128], strides = [1, 1, 1]} : vector<2x8x256xf32> to vector<2x1x128xf32>
    %277 = vector.shape_cast %276 : vector<2x1x128xf32> to vector<2x128xf32>
    %278 = vector.extract_strided_slice %275 {offsets = [0, 0], sizes = [2, 128], strides = [1, 1]} : vector<2x256xf32> to vector<2x128xf32>
    %279 = arith.addf %277, %278 : vector<2x128xf32>
    %280 = vector.extract_strided_slice %279 {offsets = [0, 0], sizes = [2, 32], strides = [1, 1]} : vector<2x128xf32> to vector<2x32xf32>
    %281 = arith.negf %280 : vector<2x32xf32>
    %282 = math.exp %281 : vector<2x32xf32>
    %cst_54 = arith.constant 1.000000e+00 : f32
    %283 = vector.broadcast %cst_54 : f32 to vector<2x32xf32>
    %284 = arith.addf %283, %282 : vector<2x32xf32>
    %285 = arith.divf %283, %284 : vector<2x32xf32>
    %286 = vector.extract_strided_slice %279 {offsets = [0, 32], sizes = [2, 32], strides = [1, 1]} : vector<2x128xf32> to vector<2x32xf32>
    %287 = arith.negf %286 : vector<2x32xf32>
    %288 = math.exp %287 : vector<2x32xf32>
    %cst_55 = arith.constant 1.000000e+00 : f32
    %289 = vector.broadcast %cst_55 : f32 to vector<2x32xf32>
    %290 = arith.addf %289, %288 : vector<2x32xf32>
    %291 = arith.divf %289, %290 : vector<2x32xf32>
    %292 = vector.extract_strided_slice %279 {offsets = [0, 64], sizes = [2, 32], strides = [1, 1]} : vector<2x128xf32> to vector<2x32xf32>
    %293 = math.tanh %292 : vector<2x32xf32>
    %294 = vector.extract_strided_slice %279 {offsets = [0, 96], sizes = [2, 32], strides = [1, 1]} : vector<2x128xf32> to vector<2x32xf32>
    %295 = arith.negf %294 : vector<2x32xf32>
    %296 = math.exp %295 : vector<2x32xf32>
    %cst_56 = arith.constant 1.000000e+00 : f32
    %297 = vector.broadcast %cst_56 : f32 to vector<2x32xf32>
    %298 = arith.addf %297, %296 : vector<2x32xf32>
    %299 = arith.divf %297, %298 : vector<2x32xf32>
    %300 = arith.mulf %291, %236 : vector<2x32xf32>
    %301 = arith.mulf %285, %293 : vector<2x32xf32>
    %302 = arith.addf %300, %301 : vector<2x32xf32>
    %303 = math.tanh %302 : vector<2x32xf32>
    %304 = arith.mulf %299, %303 : vector<2x32xf32>
    %c0_57 = arith.constant 0 : index
    %c4_58 = arith.constant 4 : index
    %c0_59 = arith.constant 0 : index
    %305 = vector.load %arg10[%c0_57, %c4_58, %c0_59] : memref<2x8x64xf32, #tpu.memory_space<vmem>>, vector<2x1x32xf32>
    %306 = vector.shape_cast %305 : vector<2x1x32xf32> to vector<2x32xf32>
    %307 = vector.shape_cast %304 : vector<2x32xf32> to vector<2x1x32xf32>
    tpu.vector_store %arg10[%c0_57, %c4_58, %c0_59], %307 {strides = array<i32>} : memref<2x8x64xf32, #tpu.memory_space<vmem>>, vector<2x1x32xf32>,
    %308 = vector.extract_strided_slice %8 {offsets = [0, 3, 128], sizes = [2, 1, 128], strides = [1, 1, 1]} : vector<2x8x256xf32> to vector<2x1x128xf32>
    %309 = vector.shape_cast %308 : vector<2x1x128xf32> to vector<2x128xf32>
    %310 = vector.extract_strided_slice %275 {offsets = [0, 128], sizes = [2, 128], strides = [1, 1]} : vector<2x256xf32> to vector<2x128xf32>
    %311 = arith.addf %309, %310 : vector<2x128xf32>
    %312 = vector.extract_strided_slice %311 {offsets = [0, 0], sizes = [2, 32], strides = [1, 1]} : vector<2x128xf32> to vector<2x32xf32>
    %313 = arith.negf %312 : vector<2x32xf32>
    %314 = math.exp %313 : vector<2x32xf32>
    %cst_60 = arith.constant 1.000000e+00 : f32
    %315 = vector.broadcast %cst_60 : f32 to vector<2x32xf32>
    %316 = arith.addf %315, %314 : vector<2x32xf32>
    %317 = arith.divf %315, %316 : vector<2x32xf32>
    %318 = vector.extract_strided_slice %311 {offsets = [0, 32], sizes = [2, 32], strides = [1, 1]} : vector<2x128xf32> to vector<2x32xf32>
    %319 = arith.negf %318 : vector<2x32xf32>
    %320 = math.exp %319 : vector<2x32xf32>
    %cst_61 = arith.constant 1.000000e+00 : f32
    %321 = vector.broadcast %cst_61 : f32 to vector<2x32xf32>
    %322 = arith.addf %321, %320 : vector<2x32xf32>
    %323 = arith.divf %321, %322 : vector<2x32xf32>
    %324 = vector.extract_strided_slice %311 {offsets = [0, 64], sizes = [2, 32], strides = [1, 1]} : vector<2x128xf32> to vector<2x32xf32>
    %325 = math.tanh %324 : vector<2x32xf32>
    %326 = vector.extract_strided_slice %311 {offsets = [0, 96], sizes = [2, 32], strides = [1, 1]} : vector<2x128xf32> to vector<2x32xf32>
    %327 = arith.negf %326 : vector<2x32xf32>
    %328 = math.exp %327 : vector<2x32xf32>
    %cst_62 = arith.constant 1.000000e+00 : f32
    %329 = vector.broadcast %cst_62 : f32 to vector<2x32xf32>
    %330 = arith.addf %329, %328 : vector<2x32xf32>
    %331 = arith.divf %329, %330 : vector<2x32xf32>
    %332 = arith.mulf %323, %268 : vector<2x32xf32>
    %333 = arith.mulf %317, %325 : vector<2x32xf32>
    %334 = arith.addf %332, %333 : vector<2x32xf32>
    %335 = math.tanh %334 : vector<2x32xf32>
    %336 = arith.mulf %331, %335 : vector<2x32xf32>
    %c0_63 = arith.constant 0 : index
    %c3_64 = arith.constant 3 : index
    %c32_65 = arith.constant 32 : index
    %337 = vector.load %arg10[%c0_63, %c3_64, %c32_65] : memref<2x8x64xf32, #tpu.memory_space<vmem>>, vector<2x1x32xf32>
    %338 = vector.shape_cast %337 : vector<2x1x32xf32> to vector<2x32xf32>
    %339 = vector.shape_cast %336 : vector<2x32xf32> to vector<2x1x32xf32>
    tpu.vector_store %arg10[%c0_63, %c3_64, %c32_65], %339 {strides = array<i32>} : memref<2x8x64xf32, #tpu.memory_space<vmem>>, vector<2x1x32xf32>,
    %340 = tpu.concatenate %304, %336 in 1 : vector<2x32xf32>, vector<2x32xf32> -> vector<2x64xf32>
    %cst_66 = arith.constant dense<0.000000e+00> : vector<2x256xf32>
    %341 = tpu.matmul %340, %2, %cst_66 {dimension_numbers = #tpu.dot_dimension_numbers<[1], [0], [0], [1], [0, 0, 1, 1], [], []>} : vector<2x64xf32>, vector<64x256xf32>, vector<2x256xf32> -> vector<2x256xf32>
    %342 = vector.extract_strided_slice %8 {offsets = [0, 5, 0], sizes = [2, 1, 128], strides = [1, 1, 1]} : vector<2x8x256xf32> to vector<2x1x128xf32>
    %343 = vector.shape_cast %342 : vector<2x1x128xf32> to vector<2x128xf32>
    %344 = vector.extract_strided_slice %341 {offsets = [0, 0], sizes = [2, 128], strides = [1, 1]} : vector<2x256xf32> to vector<2x128xf32>
    %345 = arith.addf %343, %344 : vector<2x128xf32>
    %346 = vector.extract_strided_slice %345 {offsets = [0, 0], sizes = [2, 32], strides = [1, 1]} : vector<2x128xf32> to vector<2x32xf32>
    %347 = arith.negf %346 : vector<2x32xf32>
    %348 = math.exp %347 : vector<2x32xf32>
    %cst_67 = arith.constant 1.000000e+00 : f32
    %349 = vector.broadcast %cst_67 : f32 to vector<2x32xf32>
    %350 = arith.addf %349, %348 : vector<2x32xf32>
    %351 = arith.divf %349, %350 : vector<2x32xf32>
    %352 = vector.extract_strided_slice %345 {offsets = [0, 32], sizes = [2, 32], strides = [1, 1]} : vector<2x128xf32> to vector<2x32xf32>
    %353 = arith.negf %352 : vector<2x32xf32>
    %354 = math.exp %353 : vector<2x32xf32>
    %cst_68 = arith.constant 1.000000e+00 : f32
    %355 = vector.broadcast %cst_68 : f32 to vector<2x32xf32>
    %356 = arith.addf %355, %354 : vector<2x32xf32>
    %357 = arith.divf %355, %356 : vector<2x32xf32>
    %358 = vector.extract_strided_slice %345 {offsets = [0, 64], sizes = [2, 32], strides = [1, 1]} : vector<2x128xf32> to vector<2x32xf32>
    %359 = math.tanh %358 : vector<2x32xf32>
    %360 = vector.extract_strided_slice %345 {offsets = [0, 96], sizes = [2, 32], strides = [1, 1]} : vector<2x128xf32> to vector<2x32xf32>
    %361 = arith.negf %360 : vector<2x32xf32>
    %362 = math.exp %361 : vector<2x32xf32>
    %cst_69 = arith.constant 1.000000e+00 : f32
    %363 = vector.broadcast %cst_69 : f32 to vector<2x32xf32>
    %364 = arith.addf %363, %362 : vector<2x32xf32>
    %365 = arith.divf %363, %364 : vector<2x32xf32>
    %366 = arith.mulf %357, %302 : vector<2x32xf32>
    %367 = arith.mulf %351, %359 : vector<2x32xf32>
    %368 = arith.addf %366, %367 : vector<2x32xf32>
    %369 = math.tanh %368 : vector<2x32xf32>
    %370 = arith.mulf %365, %369 : vector<2x32xf32>
    %c0_70 = arith.constant 0 : index
    %c5_71 = arith.constant 5 : index
    %c0_72 = arith.constant 0 : index
    %371 = vector.load %arg10[%c0_70, %c5_71, %c0_72] : memref<2x8x64xf32, #tpu.memory_space<vmem>>, vector<2x1x32xf32>
    %372 = vector.shape_cast %371 : vector<2x1x32xf32> to vector<2x32xf32>
    %373 = vector.shape_cast %370 : vector<2x32xf32> to vector<2x1x32xf32>
    tpu.vector_store %arg10[%c0_70, %c5_71, %c0_72], %373 {strides = array<i32>} : memref<2x8x64xf32, #tpu.memory_space<vmem>>, vector<2x1x32xf32>,
    %374 = vector.extract_strided_slice %8 {offsets = [0, 2, 128], sizes = [2, 1, 128], strides = [1, 1, 1]} : vector<2x8x256xf32> to vector<2x1x128xf32>
    %375 = vector.shape_cast %374 : vector<2x1x128xf32> to vector<2x128xf32>
    %376 = vector.extract_strided_slice %341 {offsets = [0, 128], sizes = [2, 128], strides = [1, 1]} : vector<2x256xf32> to vector<2x128xf32>
    %377 = arith.addf %375, %376 : vector<2x128xf32>
    %378 = vector.extract_strided_slice %377 {offsets = [0, 0], sizes = [2, 32], strides = [1, 1]} : vector<2x128xf32> to vector<2x32xf32>
    %379 = arith.negf %378 : vector<2x32xf32>
    %380 = math.exp %379 : vector<2x32xf32>
    %cst_73 = arith.constant 1.000000e+00 : f32
    %381 = vector.broadcast %cst_73 : f32 to vector<2x32xf32>
    %382 = arith.addf %381, %380 : vector<2x32xf32>
    %383 = arith.divf %381, %382 : vector<2x32xf32>
    %384 = vector.extract_strided_slice %377 {offsets = [0, 32], sizes = [2, 32], strides = [1, 1]} : vector<2x128xf32> to vector<2x32xf32>
    %385 = arith.negf %384 : vector<2x32xf32>
    %386 = math.exp %385 : vector<2x32xf32>
    %cst_74 = arith.constant 1.000000e+00 : f32
    %387 = vector.broadcast %cst_74 : f32 to vector<2x32xf32>
    %388 = arith.addf %387, %386 : vector<2x32xf32>
    %389 = arith.divf %387, %388 : vector<2x32xf32>
    %390 = vector.extract_strided_slice %377 {offsets = [0, 64], sizes = [2, 32], strides = [1, 1]} : vector<2x128xf32> to vector<2x32xf32>
    %391 = math.tanh %390 : vector<2x32xf32>
    %392 = vector.extract_strided_slice %377 {offsets = [0, 96], sizes = [2, 32], strides = [1, 1]} : vector<2x128xf32> to vector<2x32xf32>
    %393 = arith.negf %392 : vector<2x32xf32>
    %394 = math.exp %393 : vector<2x32xf32>
    %cst_75 = arith.constant 1.000000e+00 : f32
    %395 = vector.broadcast %cst_75 : f32 to vector<2x32xf32>
    %396 = arith.addf %395, %394 : vector<2x32xf32>
    %397 = arith.divf %395, %396 : vector<2x32xf32>
    %398 = arith.mulf %389, %334 : vector<2x32xf32>
    %399 = arith.mulf %383, %391 : vector<2x32xf32>
    %400 = arith.addf %398, %399 : vector<2x32xf32>
    %401 = math.tanh %400 : vector<2x32xf32>
    %402 = arith.mulf %397, %401 : vector<2x32xf32>
    %c0_76 = arith.constant 0 : index
    %c2_77 = arith.constant 2 : index
    %c32_78 = arith.constant 32 : index
    %403 = vector.load %arg10[%c0_76, %c2_77, %c32_78] : memref<2x8x64xf32, #tpu.memory_space<vmem>>, vector<2x1x32xf32>
    %404 = vector.shape_cast %403 : vector<2x1x32xf32> to vector<2x32xf32>
    %405 = vector.shape_cast %402 : vector<2x32xf32> to vector<2x1x32xf32>
    tpu.vector_store %arg10[%c0_76, %c2_77, %c32_78], %405 {strides = array<i32>} : memref<2x8x64xf32, #tpu.memory_space<vmem>>, vector<2x1x32xf32>,
    %406 = tpu.concatenate %370, %402 in 1 : vector<2x32xf32>, vector<2x32xf32> -> vector<2x64xf32>
    %cst_79 = arith.constant dense<0.000000e+00> : vector<2x256xf32>
    %407 = tpu.matmul %406, %2, %cst_79 {dimension_numbers = #tpu.dot_dimension_numbers<[1], [0], [0], [1], [0, 0, 1, 1], [], []>} : vector<2x64xf32>, vector<64x256xf32>, vector<2x256xf32> -> vector<2x256xf32>
    %408 = vector.extract_strided_slice %8 {offsets = [0, 6, 0], sizes = [2, 1, 128], strides = [1, 1, 1]} : vector<2x8x256xf32> to vector<2x1x128xf32>
    %409 = vector.shape_cast %408 : vector<2x1x128xf32> to vector<2x128xf32>
    %410 = vector.extract_strided_slice %407 {offsets = [0, 0], sizes = [2, 128], strides = [1, 1]} : vector<2x256xf32> to vector<2x128xf32>
    %411 = arith.addf %409, %410 : vector<2x128xf32>
    %412 = vector.extract_strided_slice %411 {offsets = [0, 0], sizes = [2, 32], strides = [1, 1]} : vector<2x128xf32> to vector<2x32xf32>
    %413 = arith.negf %412 : vector<2x32xf32>
    %414 = math.exp %413 : vector<2x32xf32>
    %cst_80 = arith.constant 1.000000e+00 : f32
    %415 = vector.broadcast %cst_80 : f32 to vector<2x32xf32>
    %416 = arith.addf %415, %414 : vector<2x32xf32>
    %417 = arith.divf %415, %416 : vector<2x32xf32>
    %418 = vector.extract_strided_slice %411 {offsets = [0, 32], sizes = [2, 32], strides = [1, 1]} : vector<2x128xf32> to vector<2x32xf32>
    %419 = arith.negf %418 : vector<2x32xf32>
    %420 = math.exp %419 : vector<2x32xf32>
    %cst_81 = arith.constant 1.000000e+00 : f32
    %421 = vector.broadcast %cst_81 : f32 to vector<2x32xf32>
    %422 = arith.addf %421, %420 : vector<2x32xf32>
    %423 = arith.divf %421, %422 : vector<2x32xf32>
    %424 = vector.extract_strided_slice %411 {offsets = [0, 64], sizes = [2, 32], strides = [1, 1]} : vector<2x128xf32> to vector<2x32xf32>
    %425 = math.tanh %424 : vector<2x32xf32>
    %426 = vector.extract_strided_slice %411 {offsets = [0, 96], sizes = [2, 32], strides = [1, 1]} : vector<2x128xf32> to vector<2x32xf32>
    %427 = arith.negf %426 : vector<2x32xf32>
    %428 = math.exp %427 : vector<2x32xf32>
    %cst_82 = arith.constant 1.000000e+00 : f32
    %429 = vector.broadcast %cst_82 : f32 to vector<2x32xf32>
    %430 = arith.addf %429, %428 : vector<2x32xf32>
    %431 = arith.divf %429, %430 : vector<2x32xf32>
    %432 = arith.mulf %423, %368 : vector<2x32xf32>
    %433 = arith.mulf %417, %425 : vector<2x32xf32>
    %434 = arith.addf %432, %433 : vector<2x32xf32>
    %435 = math.tanh %434 : vector<2x32xf32>
    %436 = arith.mulf %431, %435 : vector<2x32xf32>
    %c0_83 = arith.constant 0 : index
    %c6_84 = arith.constant 6 : index
    %c0_85 = arith.constant 0 : index
    %437 = vector.load %arg10[%c0_83, %c6_84, %c0_85] : memref<2x8x64xf32, #tpu.memory_space<vmem>>, vector<2x1x32xf32>
    %438 = vector.shape_cast %437 : vector<2x1x32xf32> to vector<2x32xf32>
    %439 = vector.shape_cast %436 : vector<2x32xf32> to vector<2x1x32xf32>
    tpu.vector_store %arg10[%c0_83, %c6_84, %c0_85], %439 {strides = array<i32>} : memref<2x8x64xf32, #tpu.memory_space<vmem>>, vector<2x1x32xf32>,
    %440 = vector.extract_strided_slice %8 {offsets = [0, 1, 128], sizes = [2, 1, 128], strides = [1, 1, 1]} : vector<2x8x256xf32> to vector<2x1x128xf32>
    %441 = vector.shape_cast %440 : vector<2x1x128xf32> to vector<2x128xf32>
    %442 = vector.extract_strided_slice %407 {offsets = [0, 128], sizes = [2, 128], strides = [1, 1]} : vector<2x256xf32> to vector<2x128xf32>
    %443 = arith.addf %441, %442 : vector<2x128xf32>
    %444 = vector.extract_strided_slice %443 {offsets = [0, 0], sizes = [2, 32], strides = [1, 1]} : vector<2x128xf32> to vector<2x32xf32>
    %445 = arith.negf %444 : vector<2x32xf32>
    %446 = math.exp %445 : vector<2x32xf32>
    %cst_86 = arith.constant 1.000000e+00 : f32
    %447 = vector.broadcast %cst_86 : f32 to vector<2x32xf32>
    %448 = arith.addf %447, %446 : vector<2x32xf32>
    %449 = arith.divf %447, %448 : vector<2x32xf32>
    %450 = vector.extract_strided_slice %443 {offsets = [0, 32], sizes = [2, 32], strides = [1, 1]} : vector<2x128xf32> to vector<2x32xf32>
    %451 = arith.negf %450 : vector<2x32xf32>
    %452 = math.exp %451 : vector<2x32xf32>
    %cst_87 = arith.constant 1.000000e+00 : f32
    %453 = vector.broadcast %cst_87 : f32 to vector<2x32xf32>
    %454 = arith.addf %453, %452 : vector<2x32xf32>
    %455 = arith.divf %453, %454 : vector<2x32xf32>
    %456 = vector.extract_strided_slice %443 {offsets = [0, 64], sizes = [2, 32], strides = [1, 1]} : vector<2x128xf32> to vector<2x32xf32>
    %457 = math.tanh %456 : vector<2x32xf32>
    %458 = vector.extract_strided_slice %443 {offsets = [0, 96], sizes = [2, 32], strides = [1, 1]} : vector<2x128xf32> to vector<2x32xf32>
    %459 = arith.negf %458 : vector<2x32xf32>
    %460 = math.exp %459 : vector<2x32xf32>
    %cst_88 = arith.constant 1.000000e+00 : f32
    %461 = vector.broadcast %cst_88 : f32 to vector<2x32xf32>
    %462 = arith.addf %461, %460 : vector<2x32xf32>
    %463 = arith.divf %461, %462 : vector<2x32xf32>
    %464 = arith.mulf %455, %400 : vector<2x32xf32>
    %465 = arith.mulf %449, %457 : vector<2x32xf32>
    %466 = arith.addf %464, %465 : vector<2x32xf32>
    %467 = math.tanh %466 : vector<2x32xf32>
    %468 = arith.mulf %463, %467 : vector<2x32xf32>
    %c0_89 = arith.constant 0 : index
    %c1_90 = arith.constant 1 : index
    %c32_91 = arith.constant 32 : index
    %469 = vector.load %arg10[%c0_89, %c1_90, %c32_91] : memref<2x8x64xf32, #tpu.memory_space<vmem>>, vector<2x1x32xf32>
    %470 = vector.shape_cast %469 : vector<2x1x32xf32> to vector<2x32xf32>
    %471 = vector.shape_cast %468 : vector<2x32xf32> to vector<2x1x32xf32>
    tpu.vector_store %arg10[%c0_89, %c1_90, %c32_91], %471 {strides = array<i32>} : memref<2x8x64xf32, #tpu.memory_space<vmem>>, vector<2x1x32xf32>,
    %472 = tpu.concatenate %436, %468 in 1 : vector<2x32xf32>, vector<2x32xf32> -> vector<2x64xf32>
    %cst_92 = arith.constant dense<0.000000e+00> : vector<2x256xf32>
    %473 = tpu.matmul %472, %2, %cst_92 {dimension_numbers = #tpu.dot_dimension_numbers<[1], [0], [0], [1], [0, 0, 1, 1], [], []>} : vector<2x64xf32>, vector<64x256xf32>, vector<2x256xf32> -> vector<2x256xf32>
    %474 = vector.extract_strided_slice %8 {offsets = [0, 7, 0], sizes = [2, 1, 128], strides = [1, 1, 1]} : vector<2x8x256xf32> to vector<2x1x128xf32>
    %475 = vector.shape_cast %474 : vector<2x1x128xf32> to vector<2x128xf32>
    %476 = vector.extract_strided_slice %473 {offsets = [0, 0], sizes = [2, 128], strides = [1, 1]} : vector<2x256xf32> to vector<2x128xf32>
    %477 = arith.addf %475, %476 : vector<2x128xf32>
    %478 = vector.extract_strided_slice %477 {offsets = [0, 0], sizes = [2, 32], strides = [1, 1]} : vector<2x128xf32> to vector<2x32xf32>
    %479 = arith.negf %478 : vector<2x32xf32>
    %480 = math.exp %479 : vector<2x32xf32>
    %cst_93 = arith.constant 1.000000e+00 : f32
    %481 = vector.broadcast %cst_93 : f32 to vector<2x32xf32>
    %482 = arith.addf %481, %480 : vector<2x32xf32>
    %483 = arith.divf %481, %482 : vector<2x32xf32>
    %484 = vector.extract_strided_slice %477 {offsets = [0, 32], sizes = [2, 32], strides = [1, 1]} : vector<2x128xf32> to vector<2x32xf32>
    %485 = arith.negf %484 : vector<2x32xf32>
    %486 = math.exp %485 : vector<2x32xf32>
    %cst_94 = arith.constant 1.000000e+00 : f32
    %487 = vector.broadcast %cst_94 : f32 to vector<2x32xf32>
    %488 = arith.addf %487, %486 : vector<2x32xf32>
    %489 = arith.divf %487, %488 : vector<2x32xf32>
    %490 = vector.extract_strided_slice %477 {offsets = [0, 64], sizes = [2, 32], strides = [1, 1]} : vector<2x128xf32> to vector<2x32xf32>
    %491 = math.tanh %490 : vector<2x32xf32>
    %492 = vector.extract_strided_slice %477 {offsets = [0, 96], sizes = [2, 32], strides = [1, 1]} : vector<2x128xf32> to vector<2x32xf32>
    %493 = arith.negf %492 : vector<2x32xf32>
    %494 = math.exp %493 : vector<2x32xf32>
    %cst_95 = arith.constant 1.000000e+00 : f32
    %495 = vector.broadcast %cst_95 : f32 to vector<2x32xf32>
    %496 = arith.addf %495, %494 : vector<2x32xf32>
    %497 = arith.divf %495, %496 : vector<2x32xf32>
    %498 = arith.mulf %489, %434 : vector<2x32xf32>
    %499 = arith.mulf %483, %491 : vector<2x32xf32>
    %500 = arith.addf %498, %499 : vector<2x32xf32>
    %501 = math.tanh %500 : vector<2x32xf32>
    %502 = arith.mulf %497, %501 : vector<2x32xf32>
    %c0_96 = arith.constant 0 : index
    %c7_97 = arith.constant 7 : index
    %c0_98 = arith.constant 0 : index
    %503 = vector.load %arg10[%c0_96, %c7_97, %c0_98] : memref<2x8x64xf32, #tpu.memory_space<vmem>>, vector<2x1x32xf32>
    %504 = vector.shape_cast %503 : vector<2x1x32xf32> to vector<2x32xf32>
    %505 = vector.shape_cast %502 : vector<2x32xf32> to vector<2x1x32xf32>
    tpu.vector_store %arg10[%c0_96, %c7_97, %c0_98], %505 {strides = array<i32>} : memref<2x8x64xf32, #tpu.memory_space<vmem>>, vector<2x1x32xf32>,
    %506 = vector.extract_strided_slice %8 {offsets = [0, 0, 128], sizes = [2, 1, 128], strides = [1, 1, 1]} : vector<2x8x256xf32> to vector<2x1x128xf32>
    %507 = vector.shape_cast %506 : vector<2x1x128xf32> to vector<2x128xf32>
    %508 = vector.extract_strided_slice %473 {offsets = [0, 128], sizes = [2, 128], strides = [1, 1]} : vector<2x256xf32> to vector<2x128xf32>
    %509 = arith.addf %507, %508 : vector<2x128xf32>
    %510 = vector.extract_strided_slice %509 {offsets = [0, 0], sizes = [2, 32], strides = [1, 1]} : vector<2x128xf32> to vector<2x32xf32>
    %511 = arith.negf %510 : vector<2x32xf32>
    %512 = math.exp %511 : vector<2x32xf32>
    %cst_99 = arith.constant 1.000000e+00 : f32
    %513 = vector.broadcast %cst_99 : f32 to vector<2x32xf32>
    %514 = arith.addf %513, %512 : vector<2x32xf32>
    %515 = arith.divf %513, %514 : vector<2x32xf32>
    %516 = vector.extract_strided_slice %509 {offsets = [0, 32], sizes = [2, 32], strides = [1, 1]} : vector<2x128xf32> to vector<2x32xf32>
    %517 = arith.negf %516 : vector<2x32xf32>
    %518 = math.exp %517 : vector<2x32xf32>
    %cst_100 = arith.constant 1.000000e+00 : f32
    %519 = vector.broadcast %cst_100 : f32 to vector<2x32xf32>
    %520 = arith.addf %519, %518 : vector<2x32xf32>
    %521 = arith.divf %519, %520 : vector<2x32xf32>
    %522 = vector.extract_strided_slice %509 {offsets = [0, 64], sizes = [2, 32], strides = [1, 1]} : vector<2x128xf32> to vector<2x32xf32>
    %523 = math.tanh %522 : vector<2x32xf32>
    %524 = vector.extract_strided_slice %509 {offsets = [0, 96], sizes = [2, 32], strides = [1, 1]} : vector<2x128xf32> to vector<2x32xf32>
    %525 = arith.negf %524 : vector<2x32xf32>
    %526 = math.exp %525 : vector<2x32xf32>
    %cst_101 = arith.constant 1.000000e+00 : f32
    %527 = vector.broadcast %cst_101 : f32 to vector<2x32xf32>
    %528 = arith.addf %527, %526 : vector<2x32xf32>
    %529 = arith.divf %527, %528 : vector<2x32xf32>
    %530 = arith.mulf %521, %466 : vector<2x32xf32>
    %531 = arith.mulf %515, %523 : vector<2x32xf32>
    %532 = arith.addf %530, %531 : vector<2x32xf32>
    %533 = math.tanh %532 : vector<2x32xf32>
    %534 = arith.mulf %529, %533 : vector<2x32xf32>
    %c0_102 = arith.constant 0 : index
    %c0_103 = arith.constant 0 : index
    %c32_104 = arith.constant 32 : index
    %535 = vector.load %arg10[%c0_102, %c0_103, %c32_104] : memref<2x8x64xf32, #tpu.memory_space<vmem>>, vector<2x1x32xf32>
    %536 = vector.shape_cast %535 : vector<2x1x32xf32> to vector<2x32xf32>
    %537 = vector.shape_cast %534 : vector<2x32xf32> to vector<2x1x32xf32>
    tpu.vector_store %arg10[%c0_102, %c0_103, %c32_104], %537 {strides = array<i32>} : memref<2x8x64xf32, #tpu.memory_space<vmem>>, vector<2x1x32xf32>,
    %c0_105 = arith.constant 0 : index
    %c0_106 = arith.constant 0 : index
    %c0_107 = arith.constant 0 : index
    %538 = vector.load %arg10[%c0_105, %c0_106, %c0_107] : memref<2x8x64xf32, #tpu.memory_space<vmem>>, vector<2x8x64xf32>
    %c0_108 = arith.constant 0 : index
    %c0_109 = arith.constant 0 : index
    %539 = vector.load %arg4[%c0_108, %c0_109] : memref<64x256xf32, #tpu.memory_space<vmem>>, vector<64x256xf32>
    %c0_110 = arith.constant 0 : index
    %c0_111 = arith.constant 0 : index
    %540 = vector.load %arg5[%c0_110, %c0_111] : memref<64x256xf32, #tpu.memory_space<vmem>>, vector<64x256xf32>
    %c0_112 = arith.constant 0 : index
    %c0_113 = arith.constant 0 : index
    %541 = vector.load %arg6[%c0_112, %c0_113] : memref<1x256xf32, #tpu.memory_space<vmem>>, vector<1x256xf32>
    %542 = vector.shape_cast %538 : vector<2x8x64xf32> to vector<16x64xf32>
    %cst_114 = arith.constant dense<0.000000e+00> : vector<16x256xf32>
    %543 = tpu.matmul %542, %539, %cst_114 {dimension_numbers = #tpu.dot_dimension_numbers<[1], [0], [0], [1], [0, 0, 1, 1], [], []>} : vector<16x64xf32>, vector<64x256xf32>, vector<16x256xf32> -> vector<16x256xf32>
    %544 = vector.broadcast %541 : vector<1x256xf32> to vector<16x256xf32>
    %545 = arith.addf %543, %544 : vector<16x256xf32>
    %546 = vector.shape_cast %545 : vector<16x256xf32> to vector<2x8x256xf32>
    %cst_115 = arith.constant 0.000000e+00 : f32
    %547 = vector.broadcast %cst_115 : f32 to vector<2x32xf32>
    %548 = tpu.concatenate %547, %547 in 1 : vector<2x32xf32>, vector<2x32xf32> -> vector<2x64xf32>
    %cst_116 = arith.constant dense<0.000000e+00> : vector<2x256xf32>
    %549 = tpu.matmul %548, %540, %cst_116 {dimension_numbers = #tpu.dot_dimension_numbers<[1], [0], [0], [1], [0, 0, 1, 1], [], []>} : vector<2x64xf32>, vector<64x256xf32>, vector<2x256xf32> -> vector<2x256xf32>
    %550 = vector.extract_strided_slice %546 {offsets = [0, 0, 0], sizes = [2, 1, 128], strides = [1, 1, 1]} : vector<2x8x256xf32> to vector<2x1x128xf32>
    %551 = vector.shape_cast %550 : vector<2x1x128xf32> to vector<2x128xf32>
    %552 = vector.extract_strided_slice %549 {offsets = [0, 0], sizes = [2, 128], strides = [1, 1]} : vector<2x256xf32> to vector<2x128xf32>
    %553 = arith.addf %551, %552 : vector<2x128xf32>
    %554 = vector.extract_strided_slice %553 {offsets = [0, 0], sizes = [2, 32], strides = [1, 1]} : vector<2x128xf32> to vector<2x32xf32>
    %555 = arith.negf %554 : vector<2x32xf32>
    %556 = math.exp %555 : vector<2x32xf32>
    %cst_117 = arith.constant 1.000000e+00 : f32
    %557 = vector.broadcast %cst_117 : f32 to vector<2x32xf32>
    %558 = arith.addf %557, %556 : vector<2x32xf32>
    %559 = arith.divf %557, %558 : vector<2x32xf32>
    %560 = vector.extract_strided_slice %553 {offsets = [0, 32], sizes = [2, 32], strides = [1, 1]} : vector<2x128xf32> to vector<2x32xf32>
    %561 = arith.negf %560 : vector<2x32xf32>
    %562 = math.exp %561 : vector<2x32xf32>
    %cst_118 = arith.constant 1.000000e+00 : f32
    %563 = vector.broadcast %cst_118 : f32 to vector<2x32xf32>
    %564 = arith.addf %563, %562 : vector<2x32xf32>
    %565 = arith.divf %563, %564 : vector<2x32xf32>
    %566 = vector.extract_strided_slice %553 {offsets = [0, 64], sizes = [2, 32], strides = [1, 1]} : vector<2x128xf32> to vector<2x32xf32>
    %567 = math.tanh %566 : vector<2x32xf32>
    %568 = vector.extract_strided_slice %553 {offsets = [0, 96], sizes = [2, 32], strides = [1, 1]} : vector<2x128xf32> to vector<2x32xf32>
    %569 = arith.negf %568 : vector<2x32xf32>
    %570 = math.exp %569 : vector<2x32xf32>
    %cst_119 = arith.constant 1.000000e+00 : f32
    %571 = vector.broadcast %cst_119 : f32 to vector<2x32xf32>
    %572 = arith.addf %571, %570 : vector<2x32xf32>
    %573 = arith.divf %571, %572 : vector<2x32xf32>
    %574 = arith.mulf %565, %547 : vector<2x32xf32>
    %575 = arith.mulf %559, %567 : vector<2x32xf32>
    %576 = arith.addf %574, %575 : vector<2x32xf32>
    %577 = math.tanh %576 : vector<2x32xf32>
    %578 = arith.mulf %573, %577 : vector<2x32xf32>
    %c0_120 = arith.constant 0 : index
    %c0_121 = arith.constant 0 : index
    %c0_122 = arith.constant 0 : index
    %579 = vector.load %arg10[%c0_120, %c0_121, %c0_122] : memref<2x8x64xf32, #tpu.memory_space<vmem>>, vector<2x1x32xf32>
    %580 = vector.shape_cast %579 : vector<2x1x32xf32> to vector<2x32xf32>
    %581 = vector.shape_cast %578 : vector<2x32xf32> to vector<2x1x32xf32>
    tpu.vector_store %arg10[%c0_120, %c0_121, %c0_122], %581 {strides = array<i32>} : memref<2x8x64xf32, #tpu.memory_space<vmem>>, vector<2x1x32xf32>,
    %582 = vector.extract_strided_slice %546 {offsets = [0, 7, 128], sizes = [2, 1, 128], strides = [1, 1, 1]} : vector<2x8x256xf32> to vector<2x1x128xf32>
    %583 = vector.shape_cast %582 : vector<2x1x128xf32> to vector<2x128xf32>
    %584 = vector.extract_strided_slice %549 {offsets = [0, 128], sizes = [2, 128], strides = [1, 1]} : vector<2x256xf32> to vector<2x128xf32>
    %585 = arith.addf %583, %584 : vector<2x128xf32>
    %586 = vector.extract_strided_slice %585 {offsets = [0, 0], sizes = [2, 32], strides = [1, 1]} : vector<2x128xf32> to vector<2x32xf32>
    %587 = arith.negf %586 : vector<2x32xf32>
    %588 = math.exp %587 : vector<2x32xf32>
    %cst_123 = arith.constant 1.000000e+00 : f32
    %589 = vector.broadcast %cst_123 : f32 to vector<2x32xf32>
    %590 = arith.addf %589, %588 : vector<2x32xf32>
    %591 = arith.divf %589, %590 : vector<2x32xf32>
    %592 = vector.extract_strided_slice %585 {offsets = [0, 32], sizes = [2, 32], strides = [1, 1]} : vector<2x128xf32> to vector<2x32xf32>
    %593 = arith.negf %592 : vector<2x32xf32>
    %594 = math.exp %593 : vector<2x32xf32>
    %cst_124 = arith.constant 1.000000e+00 : f32
    %595 = vector.broadcast %cst_124 : f32 to vector<2x32xf32>
    %596 = arith.addf %595, %594 : vector<2x32xf32>
    %597 = arith.divf %595, %596 : vector<2x32xf32>
    %598 = vector.extract_strided_slice %585 {offsets = [0, 64], sizes = [2, 32], strides = [1, 1]} : vector<2x128xf32> to vector<2x32xf32>
    %599 = math.tanh %598 : vector<2x32xf32>
    %600 = vector.extract_strided_slice %585 {offsets = [0, 96], sizes = [2, 32], strides = [1, 1]} : vector<2x128xf32> to vector<2x32xf32>
    %601 = arith.negf %600 : vector<2x32xf32>
    %602 = math.exp %601 : vector<2x32xf32>
    %cst_125 = arith.constant 1.000000e+00 : f32
    %603 = vector.broadcast %cst_125 : f32 to vector<2x32xf32>
    %604 = arith.addf %603, %602 : vector<2x32xf32>
    %605 = arith.divf %603, %604 : vector<2x32xf32>
    %606 = arith.mulf %597, %547 : vector<2x32xf32>
    %607 = arith.mulf %591, %599 : vector<2x32xf32>
    %608 = arith.addf %606, %607 : vector<2x32xf32>
    %609 = math.tanh %608 : vector<2x32xf32>
    %610 = arith.mulf %605, %609 : vector<2x32xf32>
    %c0_126 = arith.constant 0 : index
    %c7_127 = arith.constant 7 : index
    %c32_128 = arith.constant 32 : index
    %611 = vector.load %arg10[%c0_126, %c7_127, %c32_128] : memref<2x8x64xf32, #tpu.memory_space<vmem>>, vector<2x1x32xf32>
    %612 = vector.shape_cast %611 : vector<2x1x32xf32> to vector<2x32xf32>
    %613 = vector.shape_cast %610 : vector<2x32xf32> to vector<2x1x32xf32>
    tpu.vector_store %arg10[%c0_126, %c7_127, %c32_128], %613 {strides = array<i32>} : memref<2x8x64xf32, #tpu.memory_space<vmem>>, vector<2x1x32xf32>,
    %614 = tpu.concatenate %578, %610 in 1 : vector<2x32xf32>, vector<2x32xf32> -> vector<2x64xf32>
    %cst_129 = arith.constant dense<0.000000e+00> : vector<2x256xf32>
    %615 = tpu.matmul %614, %540, %cst_129 {dimension_numbers = #tpu.dot_dimension_numbers<[1], [0], [0], [1], [0, 0, 1, 1], [], []>} : vector<2x64xf32>, vector<64x256xf32>, vector<2x256xf32> -> vector<2x256xf32>
    %616 = vector.extract_strided_slice %546 {offsets = [0, 1, 0], sizes = [2, 1, 128], strides = [1, 1, 1]} : vector<2x8x256xf32> to vector<2x1x128xf32>
    %617 = vector.shape_cast %616 : vector<2x1x128xf32> to vector<2x128xf32>
    %618 = vector.extract_strided_slice %615 {offsets = [0, 0], sizes = [2, 128], strides = [1, 1]} : vector<2x256xf32> to vector<2x128xf32>
    %619 = arith.addf %617, %618 : vector<2x128xf32>
    %620 = vector.extract_strided_slice %619 {offsets = [0, 0], sizes = [2, 32], strides = [1, 1]} : vector<2x128xf32> to vector<2x32xf32>
    %621 = arith.negf %620 : vector<2x32xf32>
    %622 = math.exp %621 : vector<2x32xf32>
    %cst_130 = arith.constant 1.000000e+00 : f32
    %623 = vector.broadcast %cst_130 : f32 to vector<2x32xf32>
    %624 = arith.addf %623, %622 : vector<2x32xf32>
    %625 = arith.divf %623, %624 : vector<2x32xf32>
    %626 = vector.extract_strided_slice %619 {offsets = [0, 32], sizes = [2, 32], strides = [1, 1]} : vector<2x128xf32> to vector<2x32xf32>
    %627 = arith.negf %626 : vector<2x32xf32>
    %628 = math.exp %627 : vector<2x32xf32>
    %cst_131 = arith.constant 1.000000e+00 : f32
    %629 = vector.broadcast %cst_131 : f32 to vector<2x32xf32>
    %630 = arith.addf %629, %628 : vector<2x32xf32>
    %631 = arith.divf %629, %630 : vector<2x32xf32>
    %632 = vector.extract_strided_slice %619 {offsets = [0, 64], sizes = [2, 32], strides = [1, 1]} : vector<2x128xf32> to vector<2x32xf32>
    %633 = math.tanh %632 : vector<2x32xf32>
    %634 = vector.extract_strided_slice %619 {offsets = [0, 96], sizes = [2, 32], strides = [1, 1]} : vector<2x128xf32> to vector<2x32xf32>
    %635 = arith.negf %634 : vector<2x32xf32>
    %636 = math.exp %635 : vector<2x32xf32>
    %cst_132 = arith.constant 1.000000e+00 : f32
    %637 = vector.broadcast %cst_132 : f32 to vector<2x32xf32>
    %638 = arith.addf %637, %636 : vector<2x32xf32>
    %639 = arith.divf %637, %638 : vector<2x32xf32>
    %640 = arith.mulf %631, %576 : vector<2x32xf32>
    %641 = arith.mulf %625, %633 : vector<2x32xf32>
    %642 = arith.addf %640, %641 : vector<2x32xf32>
    %643 = math.tanh %642 : vector<2x32xf32>
    %644 = arith.mulf %639, %643 : vector<2x32xf32>
    %c0_133 = arith.constant 0 : index
    %c1_134 = arith.constant 1 : index
    %c0_135 = arith.constant 0 : index
    %645 = vector.load %arg10[%c0_133, %c1_134, %c0_135] : memref<2x8x64xf32, #tpu.memory_space<vmem>>, vector<2x1x32xf32>
    %646 = vector.shape_cast %645 : vector<2x1x32xf32> to vector<2x32xf32>
    %647 = vector.shape_cast %644 : vector<2x32xf32> to vector<2x1x32xf32>
    tpu.vector_store %arg10[%c0_133, %c1_134, %c0_135], %647 {strides = array<i32>} : memref<2x8x64xf32, #tpu.memory_space<vmem>>, vector<2x1x32xf32>,
    %648 = vector.extract_strided_slice %546 {offsets = [0, 6, 128], sizes = [2, 1, 128], strides = [1, 1, 1]} : vector<2x8x256xf32> to vector<2x1x128xf32>
    %649 = vector.shape_cast %648 : vector<2x1x128xf32> to vector<2x128xf32>
    %650 = vector.extract_strided_slice %615 {offsets = [0, 128], sizes = [2, 128], strides = [1, 1]} : vector<2x256xf32> to vector<2x128xf32>
    %651 = arith.addf %649, %650 : vector<2x128xf32>
    %652 = vector.extract_strided_slice %651 {offsets = [0, 0], sizes = [2, 32], strides = [1, 1]} : vector<2x128xf32> to vector<2x32xf32>
    %653 = arith.negf %652 : vector<2x32xf32>
    %654 = math.exp %653 : vector<2x32xf32>
    %cst_136 = arith.constant 1.000000e+00 : f32
    %655 = vector.broadcast %cst_136 : f32 to vector<2x32xf32>
    %656 = arith.addf %655, %654 : vector<2x32xf32>
    %657 = arith.divf %655, %656 : vector<2x32xf32>
    %658 = vector.extract_strided_slice %651 {offsets = [0, 32], sizes = [2, 32], strides = [1, 1]} : vector<2x128xf32> to vector<2x32xf32>
    %659 = arith.negf %658 : vector<2x32xf32>
    %660 = math.exp %659 : vector<2x32xf32>
    %cst_137 = arith.constant 1.000000e+00 : f32
    %661 = vector.broadcast %cst_137 : f32 to vector<2x32xf32>
    %662 = arith.addf %661, %660 : vector<2x32xf32>
    %663 = arith.divf %661, %662 : vector<2x32xf32>
    %664 = vector.extract_strided_slice %651 {offsets = [0, 64], sizes = [2, 32], strides = [1, 1]} : vector<2x128xf32> to vector<2x32xf32>
    %665 = math.tanh %664 : vector<2x32xf32>
    %666 = vector.extract_strided_slice %651 {offsets = [0, 96], sizes = [2, 32], strides = [1, 1]} : vector<2x128xf32> to vector<2x32xf32>
    %667 = arith.negf %666 : vector<2x32xf32>
    %668 = math.exp %667 : vector<2x32xf32>
    %cst_138 = arith.constant 1.000000e+00 : f32
    %669 = vector.broadcast %cst_138 : f32 to vector<2x32xf32>
    %670 = arith.addf %669, %668 : vector<2x32xf32>
    %671 = arith.divf %669, %670 : vector<2x32xf32>
    %672 = arith.mulf %663, %608 : vector<2x32xf32>
    %673 = arith.mulf %657, %665 : vector<2x32xf32>
    %674 = arith.addf %672, %673 : vector<2x32xf32>
    %675 = math.tanh %674 : vector<2x32xf32>
    %676 = arith.mulf %671, %675 : vector<2x32xf32>
    %c0_139 = arith.constant 0 : index
    %c6_140 = arith.constant 6 : index
    %c32_141 = arith.constant 32 : index
    %677 = vector.load %arg10[%c0_139, %c6_140, %c32_141] : memref<2x8x64xf32, #tpu.memory_space<vmem>>, vector<2x1x32xf32>
    %678 = vector.shape_cast %677 : vector<2x1x32xf32> to vector<2x32xf32>
    %679 = vector.shape_cast %676 : vector<2x32xf32> to vector<2x1x32xf32>
    tpu.vector_store %arg10[%c0_139, %c6_140, %c32_141], %679 {strides = array<i32>} : memref<2x8x64xf32, #tpu.memory_space<vmem>>, vector<2x1x32xf32>,
    %680 = tpu.concatenate %644, %676 in 1 : vector<2x32xf32>, vector<2x32xf32> -> vector<2x64xf32>
    %cst_142 = arith.constant dense<0.000000e+00> : vector<2x256xf32>
    %681 = tpu.matmul %680, %540, %cst_142 {dimension_numbers = #tpu.dot_dimension_numbers<[1], [0], [0], [1], [0, 0, 1, 1], [], []>} : vector<2x64xf32>, vector<64x256xf32>, vector<2x256xf32> -> vector<2x256xf32>
    %682 = vector.extract_strided_slice %546 {offsets = [0, 2, 0], sizes = [2, 1, 128], strides = [1, 1, 1]} : vector<2x8x256xf32> to vector<2x1x128xf32>
    %683 = vector.shape_cast %682 : vector<2x1x128xf32> to vector<2x128xf32>
    %684 = vector.extract_strided_slice %681 {offsets = [0, 0], sizes = [2, 128], strides = [1, 1]} : vector<2x256xf32> to vector<2x128xf32>
    %685 = arith.addf %683, %684 : vector<2x128xf32>
    %686 = vector.extract_strided_slice %685 {offsets = [0, 0], sizes = [2, 32], strides = [1, 1]} : vector<2x128xf32> to vector<2x32xf32>
    %687 = arith.negf %686 : vector<2x32xf32>
    %688 = math.exp %687 : vector<2x32xf32>
    %cst_143 = arith.constant 1.000000e+00 : f32
    %689 = vector.broadcast %cst_143 : f32 to vector<2x32xf32>
    %690 = arith.addf %689, %688 : vector<2x32xf32>
    %691 = arith.divf %689, %690 : vector<2x32xf32>
    %692 = vector.extract_strided_slice %685 {offsets = [0, 32], sizes = [2, 32], strides = [1, 1]} : vector<2x128xf32> to vector<2x32xf32>
    %693 = arith.negf %692 : vector<2x32xf32>
    %694 = math.exp %693 : vector<2x32xf32>
    %cst_144 = arith.constant 1.000000e+00 : f32
    %695 = vector.broadcast %cst_144 : f32 to vector<2x32xf32>
    %696 = arith.addf %695, %694 : vector<2x32xf32>
    %697 = arith.divf %695, %696 : vector<2x32xf32>
    %698 = vector.extract_strided_slice %685 {offsets = [0, 64], sizes = [2, 32], strides = [1, 1]} : vector<2x128xf32> to vector<2x32xf32>
    %699 = math.tanh %698 : vector<2x32xf32>
    %700 = vector.extract_strided_slice %685 {offsets = [0, 96], sizes = [2, 32], strides = [1, 1]} : vector<2x128xf32> to vector<2x32xf32>
    %701 = arith.negf %700 : vector<2x32xf32>
    %702 = math.exp %701 : vector<2x32xf32>
    %cst_145 = arith.constant 1.000000e+00 : f32
    %703 = vector.broadcast %cst_145 : f32 to vector<2x32xf32>
    %704 = arith.addf %703, %702 : vector<2x32xf32>
    %705 = arith.divf %703, %704 : vector<2x32xf32>
    %706 = arith.mulf %697, %642 : vector<2x32xf32>
    %707 = arith.mulf %691, %699 : vector<2x32xf32>
    %708 = arith.addf %706, %707 : vector<2x32xf32>
    %709 = math.tanh %708 : vector<2x32xf32>
    %710 = arith.mulf %705, %709 : vector<2x32xf32>
    %c0_146 = arith.constant 0 : index
    %c2_147 = arith.constant 2 : index
    %c0_148 = arith.constant 0 : index
    %711 = vector.load %arg10[%c0_146, %c2_147, %c0_148] : memref<2x8x64xf32, #tpu.memory_space<vmem>>, vector<2x1x32xf32>
    %712 = vector.shape_cast %711 : vector<2x1x32xf32> to vector<2x32xf32>
    %713 = vector.shape_cast %710 : vector<2x32xf32> to vector<2x1x32xf32>
    tpu.vector_store %arg10[%c0_146, %c2_147, %c0_148], %713 {strides = array<i32>} : memref<2x8x64xf32, #tpu.memory_space<vmem>>, vector<2x1x32xf32>,
    %714 = vector.extract_strided_slice %546 {offsets = [0, 5, 128], sizes = [2, 1, 128], strides = [1, 1, 1]} : vector<2x8x256xf32> to vector<2x1x128xf32>
    %715 = vector.shape_cast %714 : vector<2x1x128xf32> to vector<2x128xf32>
    %716 = vector.extract_strided_slice %681 {offsets = [0, 128], sizes = [2, 128], strides = [1, 1]} : vector<2x256xf32> to vector<2x128xf32>
    %717 = arith.addf %715, %716 : vector<2x128xf32>
    %718 = vector.extract_strided_slice %717 {offsets = [0, 0], sizes = [2, 32], strides = [1, 1]} : vector<2x128xf32> to vector<2x32xf32>
    %719 = arith.negf %718 : vector<2x32xf32>
    %720 = math.exp %719 : vector<2x32xf32>
    %cst_149 = arith.constant 1.000000e+00 : f32
    %721 = vector.broadcast %cst_149 : f32 to vector<2x32xf32>
    %722 = arith.addf %721, %720 : vector<2x32xf32>
    %723 = arith.divf %721, %722 : vector<2x32xf32>
    %724 = vector.extract_strided_slice %717 {offsets = [0, 32], sizes = [2, 32], strides = [1, 1]} : vector<2x128xf32> to vector<2x32xf32>
    %725 = arith.negf %724 : vector<2x32xf32>
    %726 = math.exp %725 : vector<2x32xf32>
    %cst_150 = arith.constant 1.000000e+00 : f32
    %727 = vector.broadcast %cst_150 : f32 to vector<2x32xf32>
    %728 = arith.addf %727, %726 : vector<2x32xf32>
    %729 = arith.divf %727, %728 : vector<2x32xf32>
    %730 = vector.extract_strided_slice %717 {offsets = [0, 64], sizes = [2, 32], strides = [1, 1]} : vector<2x128xf32> to vector<2x32xf32>
    %731 = math.tanh %730 : vector<2x32xf32>
    %732 = vector.extract_strided_slice %717 {offsets = [0, 96], sizes = [2, 32], strides = [1, 1]} : vector<2x128xf32> to vector<2x32xf32>
    %733 = arith.negf %732 : vector<2x32xf32>
    %734 = math.exp %733 : vector<2x32xf32>
    %cst_151 = arith.constant 1.000000e+00 : f32
    %735 = vector.broadcast %cst_151 : f32 to vector<2x32xf32>
    %736 = arith.addf %735, %734 : vector<2x32xf32>
    %737 = arith.divf %735, %736 : vector<2x32xf32>
    %738 = arith.mulf %729, %674 : vector<2x32xf32>
    %739 = arith.mulf %723, %731 : vector<2x32xf32>
    %740 = arith.addf %738, %739 : vector<2x32xf32>
    %741 = math.tanh %740 : vector<2x32xf32>
    %742 = arith.mulf %737, %741 : vector<2x32xf32>
    %c0_152 = arith.constant 0 : index
    %c5_153 = arith.constant 5 : index
    %c32_154 = arith.constant 32 : index
    %743 = vector.load %arg10[%c0_152, %c5_153, %c32_154] : memref<2x8x64xf32, #tpu.memory_space<vmem>>, vector<2x1x32xf32>
    %744 = vector.shape_cast %743 : vector<2x1x32xf32> to vector<2x32xf32>
    %745 = vector.shape_cast %742 : vector<2x32xf32> to vector<2x1x32xf32>
    tpu.vector_store %arg10[%c0_152, %c5_153, %c32_154], %745 {strides = array<i32>} : memref<2x8x64xf32, #tpu.memory_space<vmem>>, vector<2x1x32xf32>,
    %746 = tpu.concatenate %710, %742 in 1 : vector<2x32xf32>, vector<2x32xf32> -> vector<2x64xf32>
    %cst_155 = arith.constant dense<0.000000e+00> : vector<2x256xf32>
    %747 = tpu.matmul %746, %540, %cst_155 {dimension_numbers = #tpu.dot_dimension_numbers<[1], [0], [0], [1], [0, 0, 1, 1], [], []>} : vector<2x64xf32>, vector<64x256xf32>, vector<2x256xf32> -> vector<2x256xf32>
    %748 = vector.extract_strided_slice %546 {offsets = [0, 3, 0], sizes = [2, 1, 128], strides = [1, 1, 1]} : vector<2x8x256xf32> to vector<2x1x128xf32>
    %749 = vector.shape_cast %748 : vector<2x1x128xf32> to vector<2x128xf32>
    %750 = vector.extract_strided_slice %747 {offsets = [0, 0], sizes = [2, 128], strides = [1, 1]} : vector<2x256xf32> to vector<2x128xf32>
    %751 = arith.addf %749, %750 : vector<2x128xf32>
    %752 = vector.extract_strided_slice %751 {offsets = [0, 0], sizes = [2, 32], strides = [1, 1]} : vector<2x128xf32> to vector<2x32xf32>
    %753 = arith.negf %752 : vector<2x32xf32>
    %754 = math.exp %753 : vector<2x32xf32>
    %cst_156 = arith.constant 1.000000e+00 : f32
    %755 = vector.broadcast %cst_156 : f32 to vector<2x32xf32>
    %756 = arith.addf %755, %754 : vector<2x32xf32>
    %757 = arith.divf %755, %756 : vector<2x32xf32>
    %758 = vector.extract_strided_slice %751 {offsets = [0, 32], sizes = [2, 32], strides = [1, 1]} : vector<2x128xf32> to vector<2x32xf32>
    %759 = arith.negf %758 : vector<2x32xf32>
    %760 = math.exp %759 : vector<2x32xf32>
    %cst_157 = arith.constant 1.000000e+00 : f32
    %761 = vector.broadcast %cst_157 : f32 to vector<2x32xf32>
    %762 = arith.addf %761, %760 : vector<2x32xf32>
    %763 = arith.divf %761, %762 : vector<2x32xf32>
    %764 = vector.extract_strided_slice %751 {offsets = [0, 64], sizes = [2, 32], strides = [1, 1]} : vector<2x128xf32> to vector<2x32xf32>
    %765 = math.tanh %764 : vector<2x32xf32>
    %766 = vector.extract_strided_slice %751 {offsets = [0, 96], sizes = [2, 32], strides = [1, 1]} : vector<2x128xf32> to vector<2x32xf32>
    %767 = arith.negf %766 : vector<2x32xf32>
    %768 = math.exp %767 : vector<2x32xf32>
    %cst_158 = arith.constant 1.000000e+00 : f32
    %769 = vector.broadcast %cst_158 : f32 to vector<2x32xf32>
    %770 = arith.addf %769, %768 : vector<2x32xf32>
    %771 = arith.divf %769, %770 : vector<2x32xf32>
    %772 = arith.mulf %763, %708 : vector<2x32xf32>
    %773 = arith.mulf %757, %765 : vector<2x32xf32>
    %774 = arith.addf %772, %773 : vector<2x32xf32>
    %775 = math.tanh %774 : vector<2x32xf32>
    %776 = arith.mulf %771, %775 : vector<2x32xf32>
    %c0_159 = arith.constant 0 : index
    %c3_160 = arith.constant 3 : index
    %c0_161 = arith.constant 0 : index
    %777 = vector.load %arg10[%c0_159, %c3_160, %c0_161] : memref<2x8x64xf32, #tpu.memory_space<vmem>>, vector<2x1x32xf32>
    %778 = vector.shape_cast %777 : vector<2x1x32xf32> to vector<2x32xf32>
    %779 = vector.shape_cast %776 : vector<2x32xf32> to vector<2x1x32xf32>
    tpu.vector_store %arg10[%c0_159, %c3_160, %c0_161], %779 {strides = array<i32>} : memref<2x8x64xf32, #tpu.memory_space<vmem>>, vector<2x1x32xf32>,
    %780 = vector.extract_strided_slice %546 {offsets = [0, 4, 128], sizes = [2, 1, 128], strides = [1, 1, 1]} : vector<2x8x256xf32> to vector<2x1x128xf32>
    %781 = vector.shape_cast %780 : vector<2x1x128xf32> to vector<2x128xf32>
    %782 = vector.extract_strided_slice %747 {offsets = [0, 128], sizes = [2, 128], strides = [1, 1]} : vector<2x256xf32> to vector<2x128xf32>
    %783 = arith.addf %781, %782 : vector<2x128xf32>
    %784 = vector.extract_strided_slice %783 {offsets = [0, 0], sizes = [2, 32], strides = [1, 1]} : vector<2x128xf32> to vector<2x32xf32>
    %785 = arith.negf %784 : vector<2x32xf32>
    %786 = math.exp %785 : vector<2x32xf32>
    %cst_162 = arith.constant 1.000000e+00 : f32
    %787 = vector.broadcast %cst_162 : f32 to vector<2x32xf32>
    %788 = arith.addf %787, %786 : vector<2x32xf32>
    %789 = arith.divf %787, %788 : vector<2x32xf32>
    %790 = vector.extract_strided_slice %783 {offsets = [0, 32], sizes = [2, 32], strides = [1, 1]} : vector<2x128xf32> to vector<2x32xf32>
    %791 = arith.negf %790 : vector<2x32xf32>
    %792 = math.exp %791 : vector<2x32xf32>
    %cst_163 = arith.constant 1.000000e+00 : f32
    %793 = vector.broadcast %cst_163 : f32 to vector<2x32xf32>
    %794 = arith.addf %793, %792 : vector<2x32xf32>
    %795 = arith.divf %793, %794 : vector<2x32xf32>
    %796 = vector.extract_strided_slice %783 {offsets = [0, 64], sizes = [2, 32], strides = [1, 1]} : vector<2x128xf32> to vector<2x32xf32>
    %797 = math.tanh %796 : vector<2x32xf32>
    %798 = vector.extract_strided_slice %783 {offsets = [0, 96], sizes = [2, 32], strides = [1, 1]} : vector<2x128xf32> to vector<2x32xf32>
    %799 = arith.negf %798 : vector<2x32xf32>
    %800 = math.exp %799 : vector<2x32xf32>
    %cst_164 = arith.constant 1.000000e+00 : f32
    %801 = vector.broadcast %cst_164 : f32 to vector<2x32xf32>
    %802 = arith.addf %801, %800 : vector<2x32xf32>
    %803 = arith.divf %801, %802 : vector<2x32xf32>
    %804 = arith.mulf %795, %740 : vector<2x32xf32>
    %805 = arith.mulf %789, %797 : vector<2x32xf32>
    %806 = arith.addf %804, %805 : vector<2x32xf32>
    %807 = math.tanh %806 : vector<2x32xf32>
    %808 = arith.mulf %803, %807 : vector<2x32xf32>
    %c0_165 = arith.constant 0 : index
    %c4_166 = arith.constant 4 : index
    %c32_167 = arith.constant 32 : index
    %809 = vector.load %arg10[%c0_165, %c4_166, %c32_167] : memref<2x8x64xf32, #tpu.memory_space<vmem>>, vector<2x1x32xf32>
    %810 = vector.shape_cast %809 : vector<2x1x32xf32> to vector<2x32xf32>
    %811 = vector.shape_cast %808 : vector<2x32xf32> to vector<2x1x32xf32>
    tpu.vector_store %arg10[%c0_165, %c4_166, %c32_167], %811 {strides = array<i32>} : memref<2x8x64xf32, #tpu.memory_space<vmem>>, vector<2x1x32xf32>,
    %812 = tpu.concatenate %776, %808 in 1 : vector<2x32xf32>, vector<2x32xf32> -> vector<2x64xf32>
    %cst_168 = arith.constant dense<0.000000e+00> : vector<2x256xf32>
    %813 = tpu.matmul %812, %540, %cst_168 {dimension_numbers = #tpu.dot_dimension_numbers<[1], [0], [0], [1], [0, 0, 1, 1], [], []>} : vector<2x64xf32>, vector<64x256xf32>, vector<2x256xf32> -> vector<2x256xf32>
    %814 = vector.extract_strided_slice %546 {offsets = [0, 4, 0], sizes = [2, 1, 128], strides = [1, 1, 1]} : vector<2x8x256xf32> to vector<2x1x128xf32>
    %815 = vector.shape_cast %814 : vector<2x1x128xf32> to vector<2x128xf32>
    %816 = vector.extract_strided_slice %813 {offsets = [0, 0], sizes = [2, 128], strides = [1, 1]} : vector<2x256xf32> to vector<2x128xf32>
    %817 = arith.addf %815, %816 : vector<2x128xf32>
    %818 = vector.extract_strided_slice %817 {offsets = [0, 0], sizes = [2, 32], strides = [1, 1]} : vector<2x128xf32> to vector<2x32xf32>
    %819 = arith.negf %818 : vector<2x32xf32>
    %820 = math.exp %819 : vector<2x32xf32>
    %cst_169 = arith.constant 1.000000e+00 : f32
    %821 = vector.broadcast %cst_169 : f32 to vector<2x32xf32>
    %822 = arith.addf %821, %820 : vector<2x32xf32>
    %823 = arith.divf %821, %822 : vector<2x32xf32>
    %824 = vector.extract_strided_slice %817 {offsets = [0, 32], sizes = [2, 32], strides = [1, 1]} : vector<2x128xf32> to vector<2x32xf32>
    %825 = arith.negf %824 : vector<2x32xf32>
    %826 = math.exp %825 : vector<2x32xf32>
    %cst_170 = arith.constant 1.000000e+00 : f32
    %827 = vector.broadcast %cst_170 : f32 to vector<2x32xf32>
    %828 = arith.addf %827, %826 : vector<2x32xf32>
    %829 = arith.divf %827, %828 : vector<2x32xf32>
    %830 = vector.extract_strided_slice %817 {offsets = [0, 64], sizes = [2, 32], strides = [1, 1]} : vector<2x128xf32> to vector<2x32xf32>
    %831 = math.tanh %830 : vector<2x32xf32>
    %832 = vector.extract_strided_slice %817 {offsets = [0, 96], sizes = [2, 32], strides = [1, 1]} : vector<2x128xf32> to vector<2x32xf32>
    %833 = arith.negf %832 : vector<2x32xf32>
    %834 = math.exp %833 : vector<2x32xf32>
    %cst_171 = arith.constant 1.000000e+00 : f32
    %835 = vector.broadcast %cst_171 : f32 to vector<2x32xf32>
    %836 = arith.addf %835, %834 : vector<2x32xf32>
    %837 = arith.divf %835, %836 : vector<2x32xf32>
    %838 = arith.mulf %829, %774 : vector<2x32xf32>
    %839 = arith.mulf %823, %831 : vector<2x32xf32>
    %840 = arith.addf %838, %839 : vector<2x32xf32>
    %841 = math.tanh %840 : vector<2x32xf32>
    %842 = arith.mulf %837, %841 : vector<2x32xf32>
    %c0_172 = arith.constant 0 : index
    %c4_173 = arith.constant 4 : index
    %c0_174 = arith.constant 0 : index
    %843 = vector.load %arg10[%c0_172, %c4_173, %c0_174] : memref<2x8x64xf32, #tpu.memory_space<vmem>>, vector<2x1x32xf32>
    %844 = vector.shape_cast %843 : vector<2x1x32xf32> to vector<2x32xf32>
    %845 = vector.shape_cast %842 : vector<2x32xf32> to vector<2x1x32xf32>
    tpu.vector_store %arg10[%c0_172, %c4_173, %c0_174], %845 {strides = array<i32>} : memref<2x8x64xf32, #tpu.memory_space<vmem>>, vector<2x1x32xf32>,
    %846 = vector.extract_strided_slice %546 {offsets = [0, 3, 128], sizes = [2, 1, 128], strides = [1, 1, 1]} : vector<2x8x256xf32> to vector<2x1x128xf32>
    %847 = vector.shape_cast %846 : vector<2x1x128xf32> to vector<2x128xf32>
    %848 = vector.extract_strided_slice %813 {offsets = [0, 128], sizes = [2, 128], strides = [1, 1]} : vector<2x256xf32> to vector<2x128xf32>
    %849 = arith.addf %847, %848 : vector<2x128xf32>
    %850 = vector.extract_strided_slice %849 {offsets = [0, 0], sizes = [2, 32], strides = [1, 1]} : vector<2x128xf32> to vector<2x32xf32>
    %851 = arith.negf %850 : vector<2x32xf32>
    %852 = math.exp %851 : vector<2x32xf32>
    %cst_175 = arith.constant 1.000000e+00 : f32
    %853 = vector.broadcast %cst_175 : f32 to vector<2x32xf32>
    %854 = arith.addf %853, %852 : vector<2x32xf32>
    %855 = arith.divf %853, %854 : vector<2x32xf32>
    %856 = vector.extract_strided_slice %849 {offsets = [0, 32], sizes = [2, 32], strides = [1, 1]} : vector<2x128xf32> to vector<2x32xf32>
    %857 = arith.negf %856 : vector<2x32xf32>
    %858 = math.exp %857 : vector<2x32xf32>
    %cst_176 = arith.constant 1.000000e+00 : f32
    %859 = vector.broadcast %cst_176 : f32 to vector<2x32xf32>
    %860 = arith.addf %859, %858 : vector<2x32xf32>
    %861 = arith.divf %859, %860 : vector<2x32xf32>
    %862 = vector.extract_strided_slice %849 {offsets = [0, 64], sizes = [2, 32], strides = [1, 1]} : vector<2x128xf32> to vector<2x32xf32>
    %863 = math.tanh %862 : vector<2x32xf32>
    %864 = vector.extract_strided_slice %849 {offsets = [0, 96], sizes = [2, 32], strides = [1, 1]} : vector<2x128xf32> to vector<2x32xf32>
    %865 = arith.negf %864 : vector<2x32xf32>
    %866 = math.exp %865 : vector<2x32xf32>
    %cst_177 = arith.constant 1.000000e+00 : f32
    %867 = vector.broadcast %cst_177 : f32 to vector<2x32xf32>
    %868 = arith.addf %867, %866 : vector<2x32xf32>
    %869 = arith.divf %867, %868 : vector<2x32xf32>
    %870 = arith.mulf %861, %806 : vector<2x32xf32>
    %871 = arith.mulf %855, %863 : vector<2x32xf32>
    %872 = arith.addf %870, %871 : vector<2x32xf32>
    %873 = math.tanh %872 : vector<2x32xf32>
    %874 = arith.mulf %869, %873 : vector<2x32xf32>
    %c0_178 = arith.constant 0 : index
    %c3_179 = arith.constant 3 : index
    %c32_180 = arith.constant 32 : index
    %875 = vector.load %arg10[%c0_178, %c3_179, %c32_180] : memref<2x8x64xf32, #tpu.memory_space<vmem>>, vector<2x1x32xf32>
    %876 = vector.shape_cast %875 : vector<2x1x32xf32> to vector<2x32xf32>
    %877 = vector.shape_cast %874 : vector<2x32xf32> to vector<2x1x32xf32>
    tpu.vector_store %arg10[%c0_178, %c3_179, %c32_180], %877 {strides = array<i32>} : memref<2x8x64xf32, #tpu.memory_space<vmem>>, vector<2x1x32xf32>,
    %878 = tpu.concatenate %842, %874 in 1 : vector<2x32xf32>, vector<2x32xf32> -> vector<2x64xf32>
    %cst_181 = arith.constant dense<0.000000e+00> : vector<2x256xf32>
    %879 = tpu.matmul %878, %540, %cst_181 {dimension_numbers = #tpu.dot_dimension_numbers<[1], [0], [0], [1], [0, 0, 1, 1], [], []>} : vector<2x64xf32>, vector<64x256xf32>, vector<2x256xf32> -> vector<2x256xf32>
    %880 = vector.extract_strided_slice %546 {offsets = [0, 5, 0], sizes = [2, 1, 128], strides = [1, 1, 1]} : vector<2x8x256xf32> to vector<2x1x128xf32>
    %881 = vector.shape_cast %880 : vector<2x1x128xf32> to vector<2x128xf32>
    %882 = vector.extract_strided_slice %879 {offsets = [0, 0], sizes = [2, 128], strides = [1, 1]} : vector<2x256xf32> to vector<2x128xf32>
    %883 = arith.addf %881, %882 : vector<2x128xf32>
    %884 = vector.extract_strided_slice %883 {offsets = [0, 0], sizes = [2, 32], strides = [1, 1]} : vector<2x128xf32> to vector<2x32xf32>
    %885 = arith.negf %884 : vector<2x32xf32>
    %886 = math.exp %885 : vector<2x32xf32>
    %cst_182 = arith.constant 1.000000e+00 : f32
    %887 = vector.broadcast %cst_182 : f32 to vector<2x32xf32>
    %888 = arith.addf %887, %886 : vector<2x32xf32>
    %889 = arith.divf %887, %888 : vector<2x32xf32>
    %890 = vector.extract_strided_slice %883 {offsets = [0, 32], sizes = [2, 32], strides = [1, 1]} : vector<2x128xf32> to vector<2x32xf32>
    %891 = arith.negf %890 : vector<2x32xf32>
    %892 = math.exp %891 : vector<2x32xf32>
    %cst_183 = arith.constant 1.000000e+00 : f32
    %893 = vector.broadcast %cst_183 : f32 to vector<2x32xf32>
    %894 = arith.addf %893, %892 : vector<2x32xf32>
    %895 = arith.divf %893, %894 : vector<2x32xf32>
    %896 = vector.extract_strided_slice %883 {offsets = [0, 64], sizes = [2, 32], strides = [1, 1]} : vector<2x128xf32> to vector<2x32xf32>
    %897 = math.tanh %896 : vector<2x32xf32>
    %898 = vector.extract_strided_slice %883 {offsets = [0, 96], sizes = [2, 32], strides = [1, 1]} : vector<2x128xf32> to vector<2x32xf32>
    %899 = arith.negf %898 : vector<2x32xf32>
    %900 = math.exp %899 : vector<2x32xf32>
    %cst_184 = arith.constant 1.000000e+00 : f32
    %901 = vector.broadcast %cst_184 : f32 to vector<2x32xf32>
    %902 = arith.addf %901, %900 : vector<2x32xf32>
    %903 = arith.divf %901, %902 : vector<2x32xf32>
    %904 = arith.mulf %895, %840 : vector<2x32xf32>
    %905 = arith.mulf %889, %897 : vector<2x32xf32>
    %906 = arith.addf %904, %905 : vector<2x32xf32>
    %907 = math.tanh %906 : vector<2x32xf32>
    %908 = arith.mulf %903, %907 : vector<2x32xf32>
    %c0_185 = arith.constant 0 : index
    %c5_186 = arith.constant 5 : index
    %c0_187 = arith.constant 0 : index
    %909 = vector.load %arg10[%c0_185, %c5_186, %c0_187] : memref<2x8x64xf32, #tpu.memory_space<vmem>>, vector<2x1x32xf32>
    %910 = vector.shape_cast %909 : vector<2x1x32xf32> to vector<2x32xf32>
    %911 = vector.shape_cast %908 : vector<2x32xf32> to vector<2x1x32xf32>
    tpu.vector_store %arg10[%c0_185, %c5_186, %c0_187], %911 {strides = array<i32>} : memref<2x8x64xf32, #tpu.memory_space<vmem>>, vector<2x1x32xf32>,
    %912 = vector.extract_strided_slice %546 {offsets = [0, 2, 128], sizes = [2, 1, 128], strides = [1, 1, 1]} : vector<2x8x256xf32> to vector<2x1x128xf32>
    %913 = vector.shape_cast %912 : vector<2x1x128xf32> to vector<2x128xf32>
    %914 = vector.extract_strided_slice %879 {offsets = [0, 128], sizes = [2, 128], strides = [1, 1]} : vector<2x256xf32> to vector<2x128xf32>
    %915 = arith.addf %913, %914 : vector<2x128xf32>
    %916 = vector.extract_strided_slice %915 {offsets = [0, 0], sizes = [2, 32], strides = [1, 1]} : vector<2x128xf32> to vector<2x32xf32>
    %917 = arith.negf %916 : vector<2x32xf32>
    %918 = math.exp %917 : vector<2x32xf32>
    %cst_188 = arith.constant 1.000000e+00 : f32
    %919 = vector.broadcast %cst_188 : f32 to vector<2x32xf32>
    %920 = arith.addf %919, %918 : vector<2x32xf32>
    %921 = arith.divf %919, %920 : vector<2x32xf32>
    %922 = vector.extract_strided_slice %915 {offsets = [0, 32], sizes = [2, 32], strides = [1, 1]} : vector<2x128xf32> to vector<2x32xf32>
    %923 = arith.negf %922 : vector<2x32xf32>
    %924 = math.exp %923 : vector<2x32xf32>
    %cst_189 = arith.constant 1.000000e+00 : f32
    %925 = vector.broadcast %cst_189 : f32 to vector<2x32xf32>
    %926 = arith.addf %925, %924 : vector<2x32xf32>
    %927 = arith.divf %925, %926 : vector<2x32xf32>
    %928 = vector.extract_strided_slice %915 {offsets = [0, 64], sizes = [2, 32], strides = [1, 1]} : vector<2x128xf32> to vector<2x32xf32>
    %929 = math.tanh %928 : vector<2x32xf32>
    %930 = vector.extract_strided_slice %915 {offsets = [0, 96], sizes = [2, 32], strides = [1, 1]} : vector<2x128xf32> to vector<2x32xf32>
    %931 = arith.negf %930 : vector<2x32xf32>
    %932 = math.exp %931 : vector<2x32xf32>
    %cst_190 = arith.constant 1.000000e+00 : f32
    %933 = vector.broadcast %cst_190 : f32 to vector<2x32xf32>
    %934 = arith.addf %933, %932 : vector<2x32xf32>
    %935 = arith.divf %933, %934 : vector<2x32xf32>
    %936 = arith.mulf %927, %872 : vector<2x32xf32>
    %937 = arith.mulf %921, %929 : vector<2x32xf32>
    %938 = arith.addf %936, %937 : vector<2x32xf32>
    %939 = math.tanh %938 : vector<2x32xf32>
    %940 = arith.mulf %935, %939 : vector<2x32xf32>
    %c0_191 = arith.constant 0 : index
    %c2_192 = arith.constant 2 : index
    %c32_193 = arith.constant 32 : index
    %941 = vector.load %arg10[%c0_191, %c2_192, %c32_193] : memref<2x8x64xf32, #tpu.memory_space<vmem>>, vector<2x1x32xf32>
    %942 = vector.shape_cast %941 : vector<2x1x32xf32> to vector<2x32xf32>
    %943 = vector.shape_cast %940 : vector<2x32xf32> to vector<2x1x32xf32>
    tpu.vector_store %arg10[%c0_191, %c2_192, %c32_193], %943 {strides = array<i32>} : memref<2x8x64xf32, #tpu.memory_space<vmem>>, vector<2x1x32xf32>,
    %944 = tpu.concatenate %908, %940 in 1 : vector<2x32xf32>, vector<2x32xf32> -> vector<2x64xf32>
    %cst_194 = arith.constant dense<0.000000e+00> : vector<2x256xf32>
    %945 = tpu.matmul %944, %540, %cst_194 {dimension_numbers = #tpu.dot_dimension_numbers<[1], [0], [0], [1], [0, 0, 1, 1], [], []>} : vector<2x64xf32>, vector<64x256xf32>, vector<2x256xf32> -> vector<2x256xf32>
    %946 = vector.extract_strided_slice %546 {offsets = [0, 6, 0], sizes = [2, 1, 128], strides = [1, 1, 1]} : vector<2x8x256xf32> to vector<2x1x128xf32>
    %947 = vector.shape_cast %946 : vector<2x1x128xf32> to vector<2x128xf32>
    %948 = vector.extract_strided_slice %945 {offsets = [0, 0], sizes = [2, 128], strides = [1, 1]} : vector<2x256xf32> to vector<2x128xf32>
    %949 = arith.addf %947, %948 : vector<2x128xf32>
    %950 = vector.extract_strided_slice %949 {offsets = [0, 0], sizes = [2, 32], strides = [1, 1]} : vector<2x128xf32> to vector<2x32xf32>
    %951 = arith.negf %950 : vector<2x32xf32>
    %952 = math.exp %951 : vector<2x32xf32>
    %cst_195 = arith.constant 1.000000e+00 : f32
    %953 = vector.broadcast %cst_195 : f32 to vector<2x32xf32>
    %954 = arith.addf %953, %952 : vector<2x32xf32>
    %955 = arith.divf %953, %954 : vector<2x32xf32>
    %956 = vector.extract_strided_slice %949 {offsets = [0, 32], sizes = [2, 32], strides = [1, 1]} : vector<2x128xf32> to vector<2x32xf32>
    %957 = arith.negf %956 : vector<2x32xf32>
    %958 = math.exp %957 : vector<2x32xf32>
    %cst_196 = arith.constant 1.000000e+00 : f32
    %959 = vector.broadcast %cst_196 : f32 to vector<2x32xf32>
    %960 = arith.addf %959, %958 : vector<2x32xf32>
    %961 = arith.divf %959, %960 : vector<2x32xf32>
    %962 = vector.extract_strided_slice %949 {offsets = [0, 64], sizes = [2, 32], strides = [1, 1]} : vector<2x128xf32> to vector<2x32xf32>
    %963 = math.tanh %962 : vector<2x32xf32>
    %964 = vector.extract_strided_slice %949 {offsets = [0, 96], sizes = [2, 32], strides = [1, 1]} : vector<2x128xf32> to vector<2x32xf32>
    %965 = arith.negf %964 : vector<2x32xf32>
    %966 = math.exp %965 : vector<2x32xf32>
    %cst_197 = arith.constant 1.000000e+00 : f32
    %967 = vector.broadcast %cst_197 : f32 to vector<2x32xf32>
    %968 = arith.addf %967, %966 : vector<2x32xf32>
    %969 = arith.divf %967, %968 : vector<2x32xf32>
    %970 = arith.mulf %961, %906 : vector<2x32xf32>
    %971 = arith.mulf %955, %963 : vector<2x32xf32>
    %972 = arith.addf %970, %971 : vector<2x32xf32>
    %973 = math.tanh %972 : vector<2x32xf32>
    %974 = arith.mulf %969, %973 : vector<2x32xf32>
    %c0_198 = arith.constant 0 : index
    %c6_199 = arith.constant 6 : index
    %c0_200 = arith.constant 0 : index
    %975 = vector.load %arg10[%c0_198, %c6_199, %c0_200] : memref<2x8x64xf32, #tpu.memory_space<vmem>>, vector<2x1x32xf32>
    %976 = vector.shape_cast %975 : vector<2x1x32xf32> to vector<2x32xf32>
    %977 = vector.shape_cast %974 : vector<2x32xf32> to vector<2x1x32xf32>
    tpu.vector_store %arg10[%c0_198, %c6_199, %c0_200], %977 {strides = array<i32>} : memref<2x8x64xf32, #tpu.memory_space<vmem>>, vector<2x1x32xf32>,
    %978 = vector.extract_strided_slice %546 {offsets = [0, 1, 128], sizes = [2, 1, 128], strides = [1, 1, 1]} : vector<2x8x256xf32> to vector<2x1x128xf32>
    %979 = vector.shape_cast %978 : vector<2x1x128xf32> to vector<2x128xf32>
    %980 = vector.extract_strided_slice %945 {offsets = [0, 128], sizes = [2, 128], strides = [1, 1]} : vector<2x256xf32> to vector<2x128xf32>
    %981 = arith.addf %979, %980 : vector<2x128xf32>
    %982 = vector.extract_strided_slice %981 {offsets = [0, 0], sizes = [2, 32], strides = [1, 1]} : vector<2x128xf32> to vector<2x32xf32>
    %983 = arith.negf %982 : vector<2x32xf32>
    %984 = math.exp %983 : vector<2x32xf32>
    %cst_201 = arith.constant 1.000000e+00 : f32
    %985 = vector.broadcast %cst_201 : f32 to vector<2x32xf32>
    %986 = arith.addf %985, %984 : vector<2x32xf32>
    %987 = arith.divf %985, %986 : vector<2x32xf32>
    %988 = vector.extract_strided_slice %981 {offsets = [0, 32], sizes = [2, 32], strides = [1, 1]} : vector<2x128xf32> to vector<2x32xf32>
    %989 = arith.negf %988 : vector<2x32xf32>
    %990 = math.exp %989 : vector<2x32xf32>
    %cst_202 = arith.constant 1.000000e+00 : f32
    %991 = vector.broadcast %cst_202 : f32 to vector<2x32xf32>
    %992 = arith.addf %991, %990 : vector<2x32xf32>
    %993 = arith.divf %991, %992 : vector<2x32xf32>
    %994 = vector.extract_strided_slice %981 {offsets = [0, 64], sizes = [2, 32], strides = [1, 1]} : vector<2x128xf32> to vector<2x32xf32>
    %995 = math.tanh %994 : vector<2x32xf32>
    %996 = vector.extract_strided_slice %981 {offsets = [0, 96], sizes = [2, 32], strides = [1, 1]} : vector<2x128xf32> to vector<2x32xf32>
    %997 = arith.negf %996 : vector<2x32xf32>
    %998 = math.exp %997 : vector<2x32xf32>
    %cst_203 = arith.constant 1.000000e+00 : f32
    %999 = vector.broadcast %cst_203 : f32 to vector<2x32xf32>
    %1000 = arith.addf %999, %998 : vector<2x32xf32>
    %1001 = arith.divf %999, %1000 : vector<2x32xf32>
    %1002 = arith.mulf %993, %938 : vector<2x32xf32>
    %1003 = arith.mulf %987, %995 : vector<2x32xf32>
    %1004 = arith.addf %1002, %1003 : vector<2x32xf32>
    %1005 = math.tanh %1004 : vector<2x32xf32>
    %1006 = arith.mulf %1001, %1005 : vector<2x32xf32>
    %c0_204 = arith.constant 0 : index
    %c1_205 = arith.constant 1 : index
    %c32_206 = arith.constant 32 : index
    %1007 = vector.load %arg10[%c0_204, %c1_205, %c32_206] : memref<2x8x64xf32, #tpu.memory_space<vmem>>, vector<2x1x32xf32>
    %1008 = vector.shape_cast %1007 : vector<2x1x32xf32> to vector<2x32xf32>
    %1009 = vector.shape_cast %1006 : vector<2x32xf32> to vector<2x1x32xf32>
    tpu.vector_store %arg10[%c0_204, %c1_205, %c32_206], %1009 {strides = array<i32>} : memref<2x8x64xf32, #tpu.memory_space<vmem>>, vector<2x1x32xf32>,
    %1010 = tpu.concatenate %974, %1006 in 1 : vector<2x32xf32>, vector<2x32xf32> -> vector<2x64xf32>
    %cst_207 = arith.constant dense<0.000000e+00> : vector<2x256xf32>
    %1011 = tpu.matmul %1010, %540, %cst_207 {dimension_numbers = #tpu.dot_dimension_numbers<[1], [0], [0], [1], [0, 0, 1, 1], [], []>} : vector<2x64xf32>, vector<64x256xf32>, vector<2x256xf32> -> vector<2x256xf32>
    %1012 = vector.extract_strided_slice %546 {offsets = [0, 7, 0], sizes = [2, 1, 128], strides = [1, 1, 1]} : vector<2x8x256xf32> to vector<2x1x128xf32>
    %1013 = vector.shape_cast %1012 : vector<2x1x128xf32> to vector<2x128xf32>
    %1014 = vector.extract_strided_slice %1011 {offsets = [0, 0], sizes = [2, 128], strides = [1, 1]} : vector<2x256xf32> to vector<2x128xf32>
    %1015 = arith.addf %1013, %1014 : vector<2x128xf32>
    %1016 = vector.extract_strided_slice %1015 {offsets = [0, 0], sizes = [2, 32], strides = [1, 1]} : vector<2x128xf32> to vector<2x32xf32>
    %1017 = arith.negf %1016 : vector<2x32xf32>
    %1018 = math.exp %1017 : vector<2x32xf32>
    %cst_208 = arith.constant 1.000000e+00 : f32
    %1019 = vector.broadcast %cst_208 : f32 to vector<2x32xf32>
    %1020 = arith.addf %1019, %1018 : vector<2x32xf32>
    %1021 = arith.divf %1019, %1020 : vector<2x32xf32>
    %1022 = vector.extract_strided_slice %1015 {offsets = [0, 32], sizes = [2, 32], strides = [1, 1]} : vector<2x128xf32> to vector<2x32xf32>
    %1023 = arith.negf %1022 : vector<2x32xf32>
    %1024 = math.exp %1023 : vector<2x32xf32>
    %cst_209 = arith.constant 1.000000e+00 : f32
    %1025 = vector.broadcast %cst_209 : f32 to vector<2x32xf32>
    %1026 = arith.addf %1025, %1024 : vector<2x32xf32>
    %1027 = arith.divf %1025, %1026 : vector<2x32xf32>
    %1028 = vector.extract_strided_slice %1015 {offsets = [0, 64], sizes = [2, 32], strides = [1, 1]} : vector<2x128xf32> to vector<2x32xf32>
    %1029 = math.tanh %1028 : vector<2x32xf32>
    %1030 = vector.extract_strided_slice %1015 {offsets = [0, 96], sizes = [2, 32], strides = [1, 1]} : vector<2x128xf32> to vector<2x32xf32>
    %1031 = arith.negf %1030 : vector<2x32xf32>
    %1032 = math.exp %1031 : vector<2x32xf32>
    %cst_210 = arith.constant 1.000000e+00 : f32
    %1033 = vector.broadcast %cst_210 : f32 to vector<2x32xf32>
    %1034 = arith.addf %1033, %1032 : vector<2x32xf32>
    %1035 = arith.divf %1033, %1034 : vector<2x32xf32>
    %1036 = arith.mulf %1027, %972 : vector<2x32xf32>
    %1037 = arith.mulf %1021, %1029 : vector<2x32xf32>
    %1038 = arith.addf %1036, %1037 : vector<2x32xf32>
    %1039 = math.tanh %1038 : vector<2x32xf32>
    %1040 = arith.mulf %1035, %1039 : vector<2x32xf32>
    %c0_211 = arith.constant 0 : index
    %c7_212 = arith.constant 7 : index
    %c0_213 = arith.constant 0 : index
    %1041 = vector.load %arg10[%c0_211, %c7_212, %c0_213] : memref<2x8x64xf32, #tpu.memory_space<vmem>>, vector<2x1x32xf32>
    %1042 = vector.shape_cast %1041 : vector<2x1x32xf32> to vector<2x32xf32>
    %1043 = vector.shape_cast %1040 : vector<2x32xf32> to vector<2x1x32xf32>
    tpu.vector_store %arg10[%c0_211, %c7_212, %c0_213], %1043 {strides = array<i32>} : memref<2x8x64xf32, #tpu.memory_space<vmem>>, vector<2x1x32xf32>,
    %1044 = vector.extract_strided_slice %546 {offsets = [0, 0, 128], sizes = [2, 1, 128], strides = [1, 1, 1]} : vector<2x8x256xf32> to vector<2x1x128xf32>
    %1045 = vector.shape_cast %1044 : vector<2x1x128xf32> to vector<2x128xf32>
    %1046 = vector.extract_strided_slice %1011 {offsets = [0, 128], sizes = [2, 128], strides = [1, 1]} : vector<2x256xf32> to vector<2x128xf32>
    %1047 = arith.addf %1045, %1046 : vector<2x128xf32>
    %1048 = vector.extract_strided_slice %1047 {offsets = [0, 0], sizes = [2, 32], strides = [1, 1]} : vector<2x128xf32> to vector<2x32xf32>
    %1049 = arith.negf %1048 : vector<2x32xf32>
    %1050 = math.exp %1049 : vector<2x32xf32>
    %cst_214 = arith.constant 1.000000e+00 : f32
    %1051 = vector.broadcast %cst_214 : f32 to vector<2x32xf32>
    %1052 = arith.addf %1051, %1050 : vector<2x32xf32>
    %1053 = arith.divf %1051, %1052 : vector<2x32xf32>
    %1054 = vector.extract_strided_slice %1047 {offsets = [0, 32], sizes = [2, 32], strides = [1, 1]} : vector<2x128xf32> to vector<2x32xf32>
    %1055 = arith.negf %1054 : vector<2x32xf32>
    %1056 = math.exp %1055 : vector<2x32xf32>
    %cst_215 = arith.constant 1.000000e+00 : f32
    %1057 = vector.broadcast %cst_215 : f32 to vector<2x32xf32>
    %1058 = arith.addf %1057, %1056 : vector<2x32xf32>
    %1059 = arith.divf %1057, %1058 : vector<2x32xf32>
    %1060 = vector.extract_strided_slice %1047 {offsets = [0, 64], sizes = [2, 32], strides = [1, 1]} : vector<2x128xf32> to vector<2x32xf32>
    %1061 = math.tanh %1060 : vector<2x32xf32>
    %1062 = vector.extract_strided_slice %1047 {offsets = [0, 96], sizes = [2, 32], strides = [1, 1]} : vector<2x128xf32> to vector<2x32xf32>
    %1063 = arith.negf %1062 : vector<2x32xf32>
    %1064 = math.exp %1063 : vector<2x32xf32>
    %cst_216 = arith.constant 1.000000e+00 : f32
    %1065 = vector.broadcast %cst_216 : f32 to vector<2x32xf32>
    %1066 = arith.addf %1065, %1064 : vector<2x32xf32>
    %1067 = arith.divf %1065, %1066 : vector<2x32xf32>
    %1068 = arith.mulf %1059, %1004 : vector<2x32xf32>
    %1069 = arith.mulf %1053, %1061 : vector<2x32xf32>
    %1070 = arith.addf %1068, %1069 : vector<2x32xf32>
    %1071 = math.tanh %1070 : vector<2x32xf32>
    %1072 = arith.mulf %1067, %1071 : vector<2x32xf32>
    %c0_217 = arith.constant 0 : index
    %c0_218 = arith.constant 0 : index
    %c32_219 = arith.constant 32 : index
    %1073 = vector.load %arg10[%c0_217, %c0_218, %c32_219] : memref<2x8x64xf32, #tpu.memory_space<vmem>>, vector<2x1x32xf32>
    %1074 = vector.shape_cast %1073 : vector<2x1x32xf32> to vector<2x32xf32>
    %1075 = vector.shape_cast %1072 : vector<2x32xf32> to vector<2x1x32xf32>
    tpu.vector_store %arg10[%c0_217, %c0_218, %c32_219], %1075 {strides = array<i32>} : memref<2x8x64xf32, #tpu.memory_space<vmem>>, vector<2x1x32xf32>,
    %c0_220 = arith.constant 0 : index
    %c0_221 = arith.constant 0 : index
    %c0_222 = arith.constant 0 : index
    %1076 = vector.load %arg10[%c0_220, %c0_221, %c0_222] : memref<2x8x64xf32, #tpu.memory_space<vmem>>, vector<2x8x64xf32>
    %1077 = vector.shape_cast %1076 : vector<2x8x64xf32> to vector<16x64xf32>
    %c0_223 = arith.constant 0 : index
    %c0_224 = arith.constant 0 : index
    %1078 = vector.load %arg7[%c0_223, %c0_224] : memref<64x128xf32, #tpu.memory_space<vmem>>, vector<64x128xf32>
    %cst_225 = arith.constant dense<0.000000e+00> : vector<16x128xf32>
    %1079 = tpu.matmul %1077, %1078, %cst_225 {dimension_numbers = #tpu.dot_dimension_numbers<[1], [0], [0], [1], [0, 0, 1, 1], [], []>} : vector<16x64xf32>, vector<64x128xf32>, vector<16x128xf32> -> vector<16x128xf32>
    %c0_226 = arith.constant 0 : index
    %c0_227 = arith.constant 0 : index
    %1080 = vector.load %arg8[%c0_226, %c0_227] : memref<1x128xf32, #tpu.memory_space<vmem>>, vector<1x128xf32>
    %1081 = vector.broadcast %1080 : vector<1x128xf32> to vector<16x128xf32>
    %1082 = arith.addf %1079, %1081 : vector<16x128xf32>
    %1083 = arith.negf %1082 : vector<16x128xf32>
    %1084 = math.exp %1083 : vector<16x128xf32>
    %cst_228 = arith.constant 1.000000e+00 : f32
    %1085 = vector.broadcast %cst_228 : f32 to vector<16x128xf32>
    %1086 = arith.addf %1085, %1084 : vector<16x128xf32>
    %1087 = arith.divf %1085, %1086 : vector<16x128xf32>
    %1088 = vector.shape_cast %1087 : vector<16x128xf32> to vector<2x8x128xf32>
    %c0_229 = arith.constant 0 : index
    %c0_230 = arith.constant 0 : index
    %c0_231 = arith.constant 0 : index
    %1089 = vector.load %arg9[%c0_229, %c0_230, %c0_231] : memref<2x8x128xf32, #tpu.memory_space<vmem>>, vector<2x8x128xf32>
    tpu.vector_store %arg9[%c0_229, %c0_230, %c0_231], %1088 {strides = array<i32>} : memref<2x8x128xf32, #tpu.memory_space<vmem>>, vector<2x8x128xf32>,
    return
  }
}

</mosaic_0001>

<bundles_post_ra>
// kernel: lstm_model_forward.1
= control target key start
LH: loop header
LB: loop body
LE: loop exit
PB: predicated region body
PF: predicated region fallthrough
CT: control target
= control target key end

     0   :  { %14 = vsyncpa [#allocation4], 0  ;;  %s6526_s0 = inlined_call_operand.hbm [shape: f32[2,8,16], index: 0, kind: input, shape index: {}]   ;;  %s6527_s1 = inlined_call_operand.hbm [shape: f32[16,256], index: 1, kind: input, shape index: {}]   ;;  %s6528_s2 = inlined_call_operand.hbm [shape: f32[64,256], index: 2, kind: input, shape index: {}]   ;;  %s6529_s3 = inlined_call_operand.vmem [shape: f32[1,256], index: 3, kind: input, shape index: {}]   ;;  %s6530_s4 = inlined_call_operand.hbm [shape: f32[64,256], index: 4, kind: input, shape index: {}]   ;;  %s6531_s5 = inlined_call_operand.hbm [shape: f32[64,256], index: 5, kind: input, shape index: {}]   ;;  %s6532_s6 = inlined_call_operand.vmem [shape: f32[1,256], index: 6, kind: input, shape index: {}]   ;;  %s6533_s7 = inlined_call_operand.hbm [shape: f32[64,128], index: 7, kind: input, shape index: {}]   ;;  %s6534_s8 = inlined_call_operand.vmem [shape: f32[1,128], index: 8, kind: input, shape index: {}]   ;;  %s6535_s9 = inlined_call_operand.vmem [shape: f32[2,8,128], index: 9, kind: output, shape index: {}]  }
   0x1   :  { %15 = vsyncpa [#allocation6], 0 }
   0x2   :  { %16 = vsyncpa [#allocation9], 0 }
   0x3   :  { %17 = vsyncpa [#allocation12], 0  ;;  %s5186_s30 = smov [#allocation5]   ;;  %s5046_s13 = scalar_lea.hbm %s6527_s1, 512 }
   0x4   :  { %s35_s10 = sshll.u32 %s5186_s30, 4  ;;  %p5047_p0 = scmp.ne.s32.totalorder %s6527_s1, %s5046_s13  ;;  %s36_s10 = int_to_ptr.vmem [resolvable:$true] %s35_s10 }
   0x5   :  { %p5050_p1 = scmp.lt.u32.totalorder %s5046_s13, %s6527_s1 }
   0x7   :  { %p5052_p2 = pnand %p5050_p1, %p5047_p0 }
   0x9   :  { %5055 = shalt.err (!%p5052_p2)
}
   0xa   :  { %s5056_s18 = scalar_lea.vmem %s36_s10, 512  ;;  %p5061_p4 = scmp.lt.s32.totalorder %s36_s10, %s36_s10 }
   0xb   :  { %p5057_p3 = scmp.ne.s32.totalorder %s36_s10, %s5056_s18  ;;  %p5062_p5 = scmp.lt.s32.totalorder %s5056_s18, %s5056_s18 }
   0xd   :  { %p5063_p6 = por %p5062_p5, %p5061_p4 }
   0xf   :  { %p5064_p7 = pnand %p5063_p6, %p5057_p3 }
  0x11   :  { %5067 = shalt.err (!%p5064_p7)
}
  0x12   :  { %s5187_s19 = smov 256   ;;  %s5188_s20 = smov 16  }
  0x13   :  { %41 = dma.hbm_to_vmem [thread:$0]  %s6527_s1, 512, %s36_s10, [#allocation6], %s5187_s19, %s5187_s19, %s5188_s20  }
  0x14   :  { %s5189_s23 = smov [#allocation8]   ;;  %s5190_s25 = smov [#allocation3]  }
  0x15   :  { %s61_s24 = sshll.u32 %s5189_s23, 4  ;;  %s23_s26 = sshll.u32 %s5190_s25, 4  ;;  %s62_s24 = int_to_ptr.vmem [resolvable:$true] %s61_s24  ;;  %s24_s26 = int_to_ptr.vmem [resolvable:$true] %s23_s26 }
  0x16   :  { %s5068_s29 = scalar_lea.hbm %s6530_s4, 2048 }
  0x17   :  { %p5069_p8 = scmp.ne.s32.totalorder %s6530_s4, %s5068_s29  ;;  %p5072_p9 = scmp.lt.u32.totalorder %s5068_s29, %s6530_s4 }
  0x19   :  { %p5074_p10 = pnand %p5072_p9, %p5069_p8 }
  0x1b   :  { %5077 = shalt.err (!%p5074_p10)
}
  0x1c   :  { %s5078_s1 = scalar_lea.vmem %s62_s24, 2048  ;;  %p5083_p12 = scmp.lt.s32.totalorder %s62_s24, %s62_s24 }
  0x1d   :  { %p5079_p11 = scmp.ne.s32.totalorder %s62_s24, %s5078_s1  ;;  %p5084_p13 = scmp.lt.s32.totalorder %s5078_s1, %s5078_s1 }
  0x1f   :  { %p5085_p0 = por %p5084_p13, %p5083_p12 }
  0x21   :  { %p5086_p1 = pnand %p5085_p0, %p5079_p11 }
  0x23   :  { %5089 = shalt.err (!%p5086_p1)
}
  0x24   :  { %67 = dma.hbm_to_vmem [thread:$0]  %s6530_s4, 2048, %s62_s24, [#allocation9], %s5187_s19, %s5187_s19, %s5188_s20  }
  0x25   :  { %s5090_s17 = scalar_lea.hbm %s6526_s0, 256 }
  0x26   :  { %p5091_p2 = scmp.ne.s32.totalorder %s6526_s0, %s5090_s17  ;;  %p5094_p3 = scmp.lt.u32.totalorder %s5090_s17, %s6526_s0 }
  0x28   :  { %p5096_p4 = pnand %p5094_p3, %p5091_p2 }
  0x2a   :  { %5099 = shalt.err (!%p5096_p4)
}
  0x2b   :  { %s5100_s25 = scalar_lea.vmem %s24_s26, 256  ;;  %p5105_p6 = scmp.lt.s32.totalorder %s24_s26, %s24_s26 }
  0x2c   :  { %p5101_p5 = scmp.ne.s32.totalorder %s24_s26, %s5100_s25  ;;  %p5106_p7 = scmp.lt.s32.totalorder %s5100_s25, %s5100_s25 }
  0x2e   :  { %p5107_p8 = por %p5106_p7, %p5105_p6 }
  0x30   :  { %p5108_p9 = pnand %p5107_p8, %p5101_p5 }
  0x32   :  { %5111 = shalt.err (!%p5108_p9)
}
  0x33   :  { %s5191_s4 = smov 128   ;;  %s5192_s24 = smov 8  }
  0x34   :  { %29 = dma.hbm_to_vmem [thread:$0]  %s6526_s0, 256, %s24_s26, [#allocation4], %s5191_s4, %s5191_s4, %s5192_s24  }
  0x35   :  { %s5193_s29 = smov [#allocation7]   ;;  %s5194_s11 = smov [#allocation10]  }
  0x36   :  { %s47_s30 = sshll.u32 %s5193_s29, 4  ;;  %s73_s12 = sshll.u32 %s5194_s11, 4  ;;  %s48_s30 = int_to_ptr.vmem [resolvable:$true] %s47_s30  ;;  %s74_s12 = int_to_ptr.vmem [resolvable:$true] %s73_s12 }
  0x37   :  { %s5112_s10 = scalar_lea.hbm %s6528_s2, 2048 }
  0x38   :  { %p5113_p10 = scmp.ne.s32.totalorder %s6528_s2, %s5112_s10  ;;  %p5116_p11 = scmp.lt.u32.totalorder %s5112_s10, %s6528_s2 }
  0x3a   :  { %p5118_p12 = pnand %p5116_p11, %p5113_p10 }
  0x3c   :  { %5121 = shalt.err (!%p5118_p12)
}
  0x3d   :  { %s5122_s0 = scalar_lea.vmem %s48_s30, 2048  ;;  %p5127_p0 = scmp.lt.s32.totalorder %s48_s30, %s48_s30 }
  0x3e   :  { %p5123_p13 = scmp.ne.s32.totalorder %s48_s30, %s5122_s0  ;;  %p5128_p1 = scmp.lt.s32.totalorder %s5122_s0, %s5122_s0 }
  0x40   :  { %p5129_p2 = por %p5128_p1, %p5127_p0 }
  0x42   :  { %p5130_p3 = pnand %p5129_p2, %p5123_p13 }
  0x44   :  { %5133 = shalt.err (!%p5130_p3)
}
  0x45   :  { %53 = dma.hbm_to_vmem [thread:$0]  %s6528_s2, 2048, %s48_s30, [#allocation6], %s5187_s19, %s5187_s19, %s5188_s20  }
  0x46   :  { %s5134_s23 = scalar_lea.hbm %s6531_s5, 2048 }
  0x47   :  { %p5135_p4 = scmp.ne.s32.totalorder %s6531_s5, %s5134_s23  ;;  %p5138_p5 = scmp.lt.u32.totalorder %s5134_s23, %s6531_s5 }
  0x49   :  { %p5140_p6 = pnand %p5138_p5, %p5135_p4 }
  0x4b   :  { %5143 = shalt.err (!%p5140_p6)
}
  0x4c   :  { %s5144_s11 = scalar_lea.vmem %s74_s12, 2048  ;;  %p5149_p8 = scmp.lt.s32.totalorder %s74_s12, %s74_s12 }
  0x4d   :  { %p5145_p7 = scmp.ne.s32.totalorder %s74_s12, %s5144_s11  ;;  %p5150_p9 = scmp.lt.s32.totalorder %s5144_s11, %s5144_s11 }
  0x4f   :  { %p5151_p10 = por %p5150_p9, %p5149_p8 }
  0x51   :  { %p5152_p11 = pnand %p5151_p10, %p5145_p7 }
  0x53   :  { %5155 = shalt.err (!%p5152_p11)
}
  0x54   :  { %79 = dma.hbm_to_vmem [thread:$0]  %s6531_s5, 2048, %s74_s12, [#allocation9], %s5187_s19, %s5187_s19, %s5188_s20  }
  0x55   :  { %s5195_s13 = smov [#allocation11]   ;;  %s5156_s15 = scalar_lea.hbm %s6533_s7, 1024 }
  0x56   :  { %s87_s1 = sshll.u32 %s5195_s13, 4  ;;  %p5157_p12 = scmp.ne.s32.totalorder %s6533_s7, %s5156_s15  ;;  %s88_s1 = int_to_ptr.vmem [resolvable:$true] %s87_s1 }
  0x57   :  { %p5160_p13 = scmp.lt.u32.totalorder %s5156_s15, %s6533_s7 }
  0x59   :  { %p5162_p0 = pnand %p5160_p13, %p5157_p12 }
  0x5b   :  { %5165 = shalt.err (!%p5162_p0)
}
  0x5c   :  { %s5166_s18 = scalar_lea.vmem %s88_s1, 1024  ;;  %p5171_p2 = scmp.lt.s32.totalorder %s88_s1, %s88_s1 }
  0x5d   :  { %p5167_p1 = scmp.ne.s32.totalorder %s88_s1, %s5166_s18  ;;  %p5172_p3 = scmp.lt.s32.totalorder %s5166_s18, %s5166_s18 }
  0x5f   :  { %p5173_p4 = por %p5172_p3, %p5171_p2 }
  0x61   :  { %p5174_p5 = pnand %p5173_p4, %p5167_p1 }
  0x63   :  { %5177 = shalt.err (!%p5174_p5)
}
  0x64   :  { %93 = dma.hbm_to_vmem [thread:$0]  %s6533_s7, 1024, %s88_s1, [#allocation12], %s5191_s4, %s5191_s4, %s5192_s24  }
  0x65   :  { %5178 = dma.done.wait [#allocation4], 256  }
  0x66   :  { %5179 = vsyncadd [#allocation4], 4294967040 }
  0x67   :  { %5180 = dma.done.wait [#allocation6], 2560  }
  0x68   :  { %5181 = vsyncadd [#allocation6], 4294964736 }
  0x69   :  { %5182 = dma.done.wait [#allocation9], 4096  }
  0x6a   :  { %5183 = vsyncadd [#allocation9], 4294963200 }
  0x6b   :  { %5184 = dma.done.wait [#allocation12], 1024  }
  0x6c   :  { %5185 = vsyncadd [#allocation12], 4294966272  ;;  %v5196_v0 = vmov 0.0   ;;  %v121_v1 = vld [vmem:[#allocation7 + $0x8] sm:$0xff]  ;;  %v123_v2 = vld [vmem:[#allocation7 + $0x18] sm:$0xff]  ;;  %vm148_vm0 = vcmask 130048   ;;  %v138_v33 = vlaneseq }
  0x6d   :  { %219 = vmatprep.mubr.f32.mxu0 %v5196_v0  ;;  %300 = vmatprep.mubr.f32.mxu1 %v5196_v0  ;;  %v120_v3 = vld [vmem:[#allocation7] sm:$0xff]  ;;  %v5341_v4 = vpack.c.bf16 %v123_v2, %v121_v1  ;;  %v122_v5 = vld [vmem:[#allocation7 + $0x10] sm:$0xff]  ;;  %v125_v6 = vld [vmem:[#allocation7 + $0x28] sm:$0xff]  ;;  %s5198_s4 = smov 32   ;;  %vm439_vm1 = vcmask 1041409   ;;  %vm6542_vm2 = vcmask 261120  }
  0x6e   :  { %v127_v7 = vld [vmem:[#allocation7 + $0x38] sm:$0xff]  ;;  %v5343_v8 = vpack.c.bf16 %v122_v5, %v120_v3  ;;  %v124_v10 = vld [vmem:[#allocation7 + $0x20] sm:$0xff]  ;;  %v126_v11 = vld [vmem:[#allocation7 + $0x30] sm:$0xff]  ;;  %v5389_v34 = vshrl.u32 %v138_v33, 7  ;;  %vm232_vm3 = vcmask 523264   ;;  %vm6541_vm4 = vcmask 1042434  }
  0x6f   :  { %v5345_v9 = vpack.c.bf16 %v127_v7, %v125_v6  ;;  %v117_v12 = vld [vmem:[#allocation5 + $0x8] sm:$0xff]  ;;  %4226 = vmatprep.subr.bf16.mxu1 %v5341_v4  ;;  %v119_v13 = vld [vmem:[#allocation5 + $0x18] sm:$0xff]  ;;  %v116_v14 = vld [vmem:[#allocation5] sm:$0xff]  ;;  %v5349_v16 = vpack.c.bf16 %v126_v11, %v124_v10  ;;  %vm6540_vm5 = vcmask 1043459   ;;  %vm6539_vm6 = vcmask 1044484  }
  0x70   :  { %v118_v15 = vld [vmem:[#allocation5 + $0x10] sm:$0xff]  ;;  %4228 = vmatpush1.bf16.msra.mxu1 %v5343_v8  ;;  %v4221_v17 = vpack.c.bf16 %v119_v13, %v117_v12  ;;  %v129_v19 = vld [vmem:[#allocation7 + $0x48] sm:$0xff]  ;;  %v131_v20 = vld [vmem:[#allocation7 + $0x58] sm:$0xff]  ;;  %v140_v37 = vsub.s32 0, %v5389_v34  ;;  %v144_v40 = vsub.s32 1, %v5389_v34  ;;  %vm6538_vm7 = vcmask 1045509  }
  0x71   :  { %v4223_v18 = vpack.c.bf16 %v118_v15, %v116_v14  ;;  %4230 = vmatprep.subr.bf16.mxu1 %v5345_v9  ;;  %v5352_v21 = vpack.c.bf16 %v131_v20, %v129_v19  ;;  %v128_v22 = vld [vmem:[#allocation7 + $0x40] sm:$0xff]  ;;  %v130_v23 = vld [vmem:[#allocation7 + $0x50] sm:$0xff]  ;;  %v133_v24 = vld [vmem:[#allocation7 + $0x68] sm:$0xff]  ;;  %vm6537_vm8 = vcmask 1046534   ;;  %vm6536_vm9 = vcmask 1047559  }
  0x72   :  { %4222 = vmatprep.subr.bf16.mxu0 %v4221_v17  ;;  %v135_v25 = vld [vmem:[#allocation7 + $0x78] sm:$0xff]  ;;  %v114_v26 = vld [vmem:[#allocation3] sm:$0xff]  ;;  %v5355_v27 = vpack.c.bf16 %v130_v23, %v128_v22  ;;  %v132_v29 = vld [vmem:[#allocation7 + $0x60] sm:$0xff]  ;;  %vm369_vm10 = vcmask 253952   ;;  %vm435_vm11 = vcmask 523527   ;;  %vm594_vm12 = vcmask 254977  }
  0x73   :  { %4224 = vmatpush1.bf16.msra.mxu0 %v4223_v18  ;;  %v5359_v28 = vpack.c.bf16 %v135_v25, %v133_v24  ;;  %v134_v30 = vld [vmem:[#allocation7 + $0x70] sm:$0xff]  ;;  %v115_v31 = vld [vmem:[#allocation3 + $0x8] sm:$0xff]  ;;  %v136_v38 = vld [vmem:[%s6529_s3] sm:$0x3]  ;;  %s5197_s3 = smov 64   ;;  %vm666_vm13 = vcmask 522502  }
  0x74   :  { %4232 = vmatpush1.bf16.msra.mxu1 %v5349_v16  ;;  %4242 = vmatprep.subr.bf16.mxu0 %v5341_v4  ;;  %v5365_v32 = vpack.c.bf16 %v134_v30, %v132_v29  ;;  %v141_v42 = vrot.slane %v136_v38, %v140_v37  ;;  %v145_v44 = vrot.slane %v136_v38, %v144_v40  ;;  %vm826_vm14 = vcmask 256002  }
  0x75   :  { %4234 = vmatprep.subr.bf16.mxu1 %v5352_v21  ;;  %vm898_vm15 = vcmask 521477  }
  0x76   :  { %4105 = vmatmul.mubr.msk.f32.vlgmr.msra.gmra.mrb[0].mxu0 %vm148_vm0, %v114_v26 }
  0x77   :  { %225 = vmatprep.mubr.f32.mxu0 %v5196_v0  ;;  %4244 = vmatpush1.bf16.msra.mxu0 %v5343_v8 }
  0x78   :  { %4236 = vmatpush1.bf16.msra.mxu1 %v5355_v27  ;;  %4246 = vmatprep.subr.bf16.mxu0 %v5345_v9 }
  0x79   :  { %4238 = vmatprep.subr.bf16.mxu1 %v5359_v28 }
  0x7a   :  { %4106 = vmatmul.mubr.msk.f32.gmra.mrb[2].mxu0 %vm148_vm0, %v115_v31  ;;  %vm6543_vm0 = vcmask 257027  }
  0x7b   :  { %4248 = vmatpush1.bf16.msra.mxu0 %v5349_v16  ;;  %519 = vmatprep.mubr.f32.mxu0 %v5196_v0 }
  0x7c   :  { %4240 = vmatpush1.bf16.msra.mxu1 %v5365_v32  ;;  %4250 = vmatprep.subr.bf16.mxu0 %v5352_v21 }
  0x7d   :  { %4258 = vmatprep.subr.bf16.mxu1 %v5341_v4 }
  0x7f   :  { %301 = vmatmul.mubr.f32.vlgmr.msra.gmra.mrb[0].mxu1 %v5196_v0  ;;  %4252 = vmatpush1.bf16.msra.mxu0 %v5355_v27 }
  0x80   :  { %4254 = vmatprep.subr.bf16.mxu0 %v5359_v28  ;;  %4260 = vmatpush1.bf16.msra.mxu1 %v5343_v8 }
  0x81   :  { %4262 = vmatprep.subr.bf16.mxu1 %v5345_v9  ;;  %750 = vmatprep.mubr.f32.mxu1 %v5196_v0 }
  0x83   :  { %4256 = vmatpush1.bf16.msra.mxu0 %v5365_v32 }
  0x84   :  { %4264 = vmatpush1.bf16.msra.mxu1 %v5349_v16  ;;  %4274 = vmatprep.subr.bf16.mxu0 %v5341_v4 }
  0x85   :  { %4266 = vmatprep.subr.bf16.mxu1 %v5352_v21 }
  0x88   :  { %4268 = vmatpush1.bf16.msra.mxu1 %v5355_v27 }
  0x89   :  { %4270 = vmatprep.subr.bf16.mxu1 %v5359_v28 }
  0x8c   :  { %4272 = vmatpush1.bf16.msra.mxu1 %v5365_v32 }
  0x8d   :  { %4290 = vmatprep.subr.bf16.mxu1 %v5341_v4 }
 0x149   :  { %v221_v35 = vpop.f32.mrb[0].mxu0 }
 0x14a   :  { %v223_v36 = vpop.f32.mrb[1].mxu0  ;;  %v5409_v55 = vadd.f32 %v221_v35, %v141_v42 }
 0x14b   :  { %v5405_v52 = vadd.f32 %v223_v36, %v145_v44 }
 0x14d   :  { %v227_v39 = vpop.f32.mrb[2].mxu0 }
 0x14e   :  { %v229_v41 = vpop.f32.mrb[3].mxu0  ;;  %v5398_v43 = vadd.f32 %v227_v39, %v141_v42 }
 0x14f   :  { %v5402_v49 = vadd.f32 %v229_v41, %v145_v44 }
 0x152   :  { %v302_v45 = vpop.f32.mrb[0].mxu1 }
 0x153   :  { %v308_v46 = vrot.slane %v302_v45, 1  ;;  %v304_v47 = vpop.f32.mrb[1].mxu1  ;;  %v311_v56 = vadd.f32 %v302_v45, %v5409_v55 }
 0x154   :  { %v373_v48 = vrot.slane %v304_v47, 1  ;;  %v374_v51 = vrot.slane %v304_v47, 2 }
 0x155   :  { %v312_v50 = vadd.f32 %v308_v46, %v5398_v43  ;;  %v4107_v1 = vmul.f32 -1.442695, %v311_v56 }
 0x156   :  { %v377_v53 = vadd.f32 %v373_v48, %v5405_v52  ;;  %v378_v54 = vadd.f32 %v374_v51, %v5402_v49 }
 0x157   :  { %4526 = vtanh.f32 %v312_v50  ;;  %v4108_v61 = vmul.f32 -1.442695, %v312_v50 }
 0x158   :  { %4528 = vtanh.f32 %v377_v53  ;;  %v4109_v62 = vmul.f32 -1.442695, %v377_v53  ;;  %v4110_v63 = vmul.f32 -1.442695, %v378_v54 }
 0x159   :  { %4530 = vtanh.f32 %v378_v54 }
 0x15a   :  { %4532 = vtanh.f32 %v311_v56 }
 0x15b   :  { %4534 = vpow2.f32 %v4108_v61 }
 0x15c   :  { %4536 = vpow2.f32 %v4109_v62 }
 0x15d   :  { %4538 = vpow2.f32 %v4110_v63 }
 0x15e   :  { %4540 = vpow2.f32 %v4107_v1 }
 0x161   :  { %v4527_v57 = vpop.eup %4526 }
 0x162   :  { %333 = vrot.lane.b32.xlu0 %v4527_v57, %s5197_s3  ;;  %v4529_v58 = vpop.eup %4528 }
 0x163   :  { %v4531_v59 = vpop.eup %4530 }
 0x164   :  { %399 = vrot.lane.b32.xlu1 %v4531_v59, %s5197_s3  ;;  %v4533_v60 = vpop.eup %4532 }
 0x165   :  { %v4535_v2 = vpop.eup %4534 }
 0x166   :  { %397 = vrot.lane.b32.xlu0 %v4529_v58, %s5197_s3  ;;  %v320_v3 = vadd.f32 1.0, %v4535_v2  ;;  %v4537_v5 = vpop.eup %4536 }
 0x167   :  { %v4539_v6 = vpop.eup %4538  ;;  %v385_v7 = vadd.f32 1.0, %v4537_v5 }
 0x168   :  { %331 = vrot.lane.b32.xlu1 %v4533_v60, %s5197_s3  ;;  %4542 = vrcp.f32 %v320_v3  ;;  %v386_v10 = vadd.f32 1.0, %v4539_v6  ;;  %v4541_v11 = vpop.eup %4540 }
 0x169   :  { %4544 = vrcp.f32 %v385_v7  ;;  %v319_v12 = vadd.f32 1.0, %v4541_v11 }
 0x16a   :  { %4546 = vrcp.f32 %v386_v10 }
 0x16b   :  { %4548 = vrcp.f32 %v319_v12 }
 0x172   :  { %v4543_v13 = vpop.eup %4542 }
 0x173   :  { %v4545_v17 = vpop.eup %4544  ;;  %v328_v29 = vmul.f32 0.0, %v4543_v13 }
 0x174   :  { %v4547_v19 = vpop.eup %4546  ;;  %v393_v33 = vmul.f32 0.0, %v4545_v17 }
 0x175   :  { %v4549_v24 = vpop.eup %4548  ;;  %v394_v35 = vmul.f32 0.0, %v4547_v19 }
 0x176   :  { %v327_v42 = vmul.f32 0.0, %v4549_v24 }
 0x1d4   :  { %v334_v14 = vpop.permute.xlu0 %333 }
 0x1d5   :  { %v338_v15 = vmul.f32 %v4543_v13, %v334_v14 }
 0x1d6   :  { %v400_v20 = vpop.permute.xlu1 %399 }
 0x1d7   :  { %343 = vrot.lane.b32.xlu0 %v338_v15, %s5198_s4  ;;  %v404_v23 = vmul.f32 %v4547_v19, %v400_v20 }
 0x1d8   :  { %v398_v18 = vpop.permute.xlu0 %397 }
 0x1d9   :  { %v403_v22 = vmul.f32 %v4545_v17, %v398_v18 }
 0x1da   :  { %v332_v25 = vpop.permute.xlu1 %331 }
 0x1db   :  { %407 = vrot.lane.b32.xlu1 %v403_v22, %s5198_s4  ;;  %409 = vrot.lane.b32.xlu0 %v404_v23, %s5198_s4  ;;  %v337_v26 = vmul.f32 %v4549_v24, %v332_v25 }
 0x1df   :  { %341 = vrot.lane.b32.xlu1 %v337_v26, %s5198_s4 }
 0x249   :  { %v344_v30 = vpop.permute.xlu0 %343 }
 0x24a   :  { %v5420_v31 = vadd.f32 %v344_v30, %v328_v29 }
 0x24c   :  { %4550 = vtanh.f32 %v5420_v31 }
 0x24d   :  { %v408_v36 = vpop.permute.xlu1 %407  ;;  %v410_v38 = vpop.permute.xlu0 %409 }
 0x24e   :  { %v5423_v39 = vadd.f32 %v408_v36, %v393_v33  ;;  %v5425_v41 = vadd.f32 %v410_v38, %v394_v35 }
 0x250   :  { %4552 = vtanh.f32 %v5423_v39 }
 0x251   :  { %4554 = vtanh.f32 %v5425_v41  ;;  %v342_v44 = vpop.permute.xlu1 %341 }
 0x252   :  { %v5429_v45 = vadd.f32 %v342_v44, %v327_v42 }
 0x254   :  { %4556 = vtanh.f32 %v5429_v45 }
 0x256   :  { %v4551_v46 = vpop.eup %4550 }
 0x257   :  { %355 = vrot.lane.b32.xlu0 %v4551_v46, %s5197_s3 }
 0x25a   :  { %v4553_v47 = vpop.eup %4552 }
 0x25b   :  { %v4555_v48 = vpop.eup %4554  ;;  %419 = vrot.lane.b32.xlu1 %v4553_v47, %s5197_s3 }
 0x25c   :  { %421 = vrot.lane.b32.xlu0 %v4555_v48, %s5197_s3 }
 0x25e   :  { %v4557_v50 = vpop.eup %4556 }
 0x25f   :  { %353 = vrot.lane.b32.xlu1 %v4557_v50, %s5197_s3 }
 0x2c9   :  { %v356_v51 = vpop.permute.xlu0 %355 }
 0x2ca   :  { %v5438_v57 = vmul.f32 %v4543_v13, %v356_v51 }
 0x2cc   :  { %v438_v62 = vrot.slane %v5438_v57, 7 }
 0x2cd   :  { %v420_v53 = vpop.permute.xlu1 %419 }
 0x2ce   :  { %v422_v54 = vpop.permute.xlu0 %421  ;;  %v5436_v56 = vmul.f32 %v4545_v17, %v420_v53 }
 0x2cf   :  { %v5440_v58 = vmul.f32 %v4547_v19, %v422_v54 }
 0x2d0   :  { %v444_v59 = vrot.slane %v5436_v56, 7 }
 0x2d1   :  { %v445_v60 = vrot.slane %v5440_v58, 6  ;;  %v354_v61 = vpop.permute.xlu1 %353 }
 0x2d2   :  { %v5445_v63 = vmul.f32 %v4549_v24, %v354_v61 }
 0x2d3   :  { %v446_v1 = vsel %vm439_vm1, %v445_v60, %v444_v59 }
 0x2d4   :  { %447 = vrot.lane.b32.xlu1 %v446_v1, %s5197_s3  ;;  %v440_v2 = vsel %vm439_vm1, %v438_v62, %v5445_v63 }
 0x2d5   :  { %441 = vrot.lane.b32.xlu0 %v440_v2, %s5198_s4 }
 0x346   :  { %v448_v3 = vpop.permute.xlu1 %447 }
 0x347   :  { %v442_v5 = vpop.permute.xlu0 %441 }
 0x348   :  { %v451_v6 = vsel %vm6542_vm2, %v442_v5, %v448_v3  ;;  %v549_v3 = vrot.slane %v5420_v31, 7 }
 0x349   :  { %4111 = vmatmul.mubr.msk.f32.vlgmr.msra.gmra.mrb[4].mxu0 %vm232_vm3, %v451_v6 }
 0x34a   :  { %4276 = vmatpush1.bf16.msra.mxu0 %v5343_v8  ;;  %982 = vmatprep.mubr.f32.mxu0 %v5196_v0 }
 0x34b   :  { %4278 = vmatprep.subr.bf16.mxu0 %v5345_v9 }
 0x34e   :  { %4280 = vmatpush1.bf16.msra.mxu0 %v5349_v16 }
 0x34f   :  { %4282 = vmatprep.subr.bf16.mxu0 %v5352_v21 }
 0x352   :  { %4284 = vmatpush1.bf16.msra.mxu0 %v5355_v27 }
 0x353   :  { %4286 = vmatprep.subr.bf16.mxu0 %v5359_v28 }
 0x356   :  { %4288 = vmatpush1.bf16.msra.mxu0 %v5365_v32 }
 0x357   :  { %4306 = vmatprep.subr.bf16.mxu0 %v5341_v4 }
 0x41c   :  { %v521_v7 = vpop.f32.mrb[4].mxu0 }
 0x41d   :  { %v531_v10 = vadd.f32 %v521_v7, %v5398_v43  ;;  %v523_v11 = vpop.f32.mrb[5].mxu0  ;;  %v527_v14 = vrot.slane %v521_v7, 7 }
 0x41e   :  { %v598_v12 = vrot.slane %v523_v11, 2  ;;  %v599_v13 = vrot.slane %v523_v11, 3  ;;  %v621_v11 = vrot.slane %v5425_v41, 1 }
 0x41f   :  { %4558 = vtanh.f32 %v531_v10  ;;  %v530_v18 = vadd.f32 %v527_v14, %v5409_v55  ;;  %v4113_v24 = vmul.f32 -1.442695, %v531_v10  ;;  %v620_v10 = vrot.slane %v5423_v39, 1 }
 0x420   :  { %v602_v15 = vadd.f32 %v598_v12, %v5405_v52  ;;  %v603_v17 = vadd.f32 %v599_v13, %v5402_v49 }
 0x421   :  { %v4112_v29 = vmul.f32 -1.442695, %v530_v18 }
 0x422   :  { %4560 = vtanh.f32 %v602_v15  ;;  %v4114_v25 = vmul.f32 -1.442695, %v602_v15  ;;  %v4115_v26 = vmul.f32 -1.442695, %v603_v17  ;;  %v548_v15 = vrot.slane %v5429_v45, 7 }
 0x423   :  { %4562 = vtanh.f32 %v603_v17 }
 0x424   :  { %4564 = vtanh.f32 %v530_v18 }
 0x425   :  { %4566 = vpow2.f32 %v4113_v24 }
 0x426   :  { %4568 = vpow2.f32 %v4114_v25 }
 0x427   :  { %4570 = vpow2.f32 %v4115_v26 }
 0x428   :  { %4572 = vpow2.f32 %v4112_v29 }
 0x429   :  { %v4559_v19 = vpop.eup %4558 }
 0x42a   :  { %558 = vrot.lane.b32.xlu0 %v4559_v19, %s5197_s3 }
 0x42c   :  { %v4561_v20 = vpop.eup %4560 }
 0x42d   :  { %v4563_v22 = vpop.eup %4562  ;;  %628 = vrot.lane.b32.xlu1 %v4561_v20, %s5197_s3 }
 0x42e   :  { %630 = vrot.lane.b32.xlu0 %v4563_v22, %s5197_s3  ;;  %v4565_v23 = vpop.eup %4564 }
 0x42f   :  { %v4567_v30 = vpop.eup %4566 }
 0x430   :  { %v539_v33 = vadd.f32 1.0, %v4567_v30  ;;  %v4569_v35 = vpop.eup %4568 }
 0x431   :  { %556 = vrot.lane.b32.xlu1 %v4565_v23, %s5197_s3  ;;  %v4571_v36 = vpop.eup %4570  ;;  %v610_v38 = vadd.f32 1.0, %v4569_v35 }
 0x432   :  { %4574 = vrcp.f32 %v539_v33  ;;  %v4573_v42 = vpop.eup %4572  ;;  %v611_v44 = vadd.f32 1.0, %v4571_v36 }
 0x433   :  { %v538_v46 = vadd.f32 1.0, %v4573_v42  ;;  %4576 = vrcp.f32 %v610_v38 }
 0x434   :  { %4578 = vrcp.f32 %v611_v44 }
 0x435   :  { %4580 = vrcp.f32 %v538_v46 }
 0x43c   :  { %v4575_v47 = vpop.eup %4574 }
 0x43d   :  { %v4577_v51 = vpop.eup %4576  ;;  %v553_v5 = vmul.f32 %v4575_v47, %v549_v3 }
 0x43e   :  { %v4579_v54 = vpop.eup %4578  ;;  %v624_v12 = vmul.f32 %v4577_v51, %v620_v10 }
 0x43f   :  { %v4581_v62 = vpop.eup %4580  ;;  %v625_v14 = vmul.f32 %v4579_v54, %v621_v11 }
 0x440   :  { %v552_v31 = vmul.f32 %v4581_v62, %v548_v15 }
 0x49c   :  { %v559_v48 = vpop.permute.xlu0 %558 }
 0x49d   :  { %v563_v50 = vmul.f32 %v4575_v47, %v559_v48 }
 0x49f   :  { %568 = vrot.lane.b32.xlu0 %v563_v50, %s5198_s4  ;;  %v629_v53 = vpop.permute.xlu1 %628 }
 0x4a0   :  { %v634_v59 = vmul.f32 %v4577_v51, %v629_v53  ;;  %v631_v60 = vpop.permute.xlu0 %630 }
 0x4a1   :  { %v635_v61 = vmul.f32 %v4579_v54, %v631_v60 }
 0x4a2   :  { %638 = vrot.lane.b32.xlu1 %v634_v59, %s5198_s4 }
 0x4a3   :  { %640 = vrot.lane.b32.xlu0 %v635_v61, %s5198_s4  ;;  %v557_v1 = vpop.permute.xlu1 %556 }
 0x4a4   :  { %v562_v2 = vmul.f32 %v4581_v62, %v557_v1 }
 0x4a6   :  { %566 = vrot.lane.b32.xlu1 %v562_v2, %s5198_s4 }
 0x511   :  { %v569_v6 = vpop.permute.xlu0 %568 }
 0x512   :  { %v5476_v7 = vadd.f32 %v569_v6, %v553_v5 }
 0x514   :  { %4582 = vtanh.f32 %v5476_v7  ;;  %v639_v13 = vpop.permute.xlu1 %638 }
 0x515   :  { %v5482_v17 = vadd.f32 %v639_v13, %v624_v12  ;;  %v641_v18 = vpop.permute.xlu0 %640 }
 0x516   :  { %v5484_v19 = vadd.f32 %v641_v18, %v625_v14 }
 0x517   :  { %4584 = vtanh.f32 %v5482_v17 }
 0x518   :  { %4586 = vtanh.f32 %v5484_v19  ;;  %v567_v20 = vpop.permute.xlu1 %566 }
 0x519   :  { %v5488_v22 = vadd.f32 %v567_v20, %v552_v31 }
 0x51b   :  { %4588 = vtanh.f32 %v5488_v22 }
 0x51e   :  { %v4583_v39 = vpop.eup %4582 }
 0x51f   :  { %580 = vrot.lane.b32.xlu0 %v4583_v39, %s5197_s3 }
 0x521   :  { %v4585_v41 = vpop.eup %4584 }
 0x522   :  { %v4587_v45 = vpop.eup %4586  ;;  %650 = vrot.lane.b32.xlu1 %v4585_v41, %s5197_s3 }
 0x523   :  { %652 = vrot.lane.b32.xlu0 %v4587_v45, %s5197_s3 }
 0x525   :  { %v4589_v23 = vpop.eup %4588 }
 0x526   :  { %578 = vrot.lane.b32.xlu1 %v4589_v23, %s5197_s3 }
 0x591   :  { %v581_v24 = vpop.permute.xlu0 %580 }
 0x592   :  { %v5495_v26 = vmul.f32 %v4575_v47, %v581_v24 }
 0x594   :  { %v651_v25 = vpop.permute.xlu1 %650  ;;  %v669_v42 = vrot.slane %v5495_v26, 7 }
 0x595   :  { %v5497_v29 = vmul.f32 %v4577_v51, %v651_v25  ;;  %v653_v30 = vpop.permute.xlu0 %652 }
 0x596   :  { %v5499_v33 = vmul.f32 %v4579_v54, %v653_v30 }
 0x597   :  { %v675_v35 = vrot.slane %v5497_v29, 5 }
 0x598   :  { %v676_v36 = vrot.slane %v5499_v33, 4  ;;  %v579_v38 = vpop.permute.xlu1 %578 }
 0x599   :  { %v5504_v44 = vmul.f32 %v4581_v62, %v579_v38 }
 0x59a   :  { %v677_v46 = vsel %vm6541_vm4, %v676_v36, %v675_v35 }
 0x59b   :  { %678 = vrot.lane.b32.xlu1 %v677_v46, %s5197_s3  ;;  %v671_v47 = vsel %vm6541_vm4, %v669_v42, %v5504_v44  ;;  %vm1753_vm4 = vcmask 260102  }
 0x59c   :  { %672 = vrot.lane.b32.xlu0 %v671_v47, %s5198_s4 }
 0x60d   :  { %v679_v48 = vpop.permute.xlu1 %678 }
 0x60e   :  { %v673_v50 = vpop.permute.xlu0 %672 }
 0x60f   :  { %v681_v51 = vsel %vm6542_vm2, %v673_v50, %v679_v48 }
 0x610   :  { %v683_v53 = vrot.slane %v681_v51, 1 }
 0x612   :  { %4116 = vmatmul.mubr.msk.f32.vlgmr.msra.gmra.mrb[2].mxu1 %vm232_vm3, %v683_v53 }
 0x613   :  { %4292 = vmatpush1.bf16.msra.mxu1 %v5343_v8  ;;  %1213 = vmatprep.mubr.f32.mxu1 %v5196_v0 }
 0x614   :  { %4294 = vmatprep.subr.bf16.mxu1 %v5345_v9 }
 0x617   :  { %4296 = vmatpush1.bf16.msra.mxu1 %v5349_v16 }
 0x618   :  { %4298 = vmatprep.subr.bf16.mxu1 %v5352_v21 }
 0x61b   :  { %4300 = vmatpush1.bf16.msra.mxu1 %v5355_v27 }
 0x61c   :  { %4302 = vmatprep.subr.bf16.mxu1 %v5359_v28 }
 0x61f   :  { %4304 = vmatpush1.bf16.msra.mxu1 %v5365_v32 }
 0x620   :  { %4322 = vmatprep.subr.bf16.mxu1 %v5341_v4 }
 0x6e5   :  { %v752_v54 = vpop.f32.mrb[2].mxu1 }
 0x6e6   :  { %v759_v59 = vrot.slane %v752_v54, 7  ;;  %v754_v60 = vpop.f32.mrb[3].mxu1  ;;  %v758_v2 = vrot.slane %v752_v54, 6 }
 0x6e7   :  { %v830_v62 = vrot.slane %v754_v60, 3  ;;  %v831_v1 = vrot.slane %v754_v60, 4  ;;  %v781_v60 = vrot.slane %v5476_v7, 7 }
 0x6e8   :  { %v763_v61 = vadd.f32 %v759_v59, %v5398_v43  ;;  %v762_v6 = vadd.f32 %v758_v2, %v5409_v55  ;;  %v852_v2 = vrot.slane %v5482_v17, 1 }
 0x6e9   :  { %v834_v3 = vadd.f32 %v830_v62, %v5405_v52  ;;  %v835_v5 = vadd.f32 %v831_v1, %v5402_v49 }
 0x6ea   :  { %4590 = vtanh.f32 %v763_v61  ;;  %v4118_v14 = vmul.f32 -1.442695, %v763_v61  ;;  %v4117_v31 = vmul.f32 -1.442695, %v762_v6 }
 0x6eb   :  { %4592 = vtanh.f32 %v834_v3  ;;  %v4119_v15 = vmul.f32 -1.442695, %v834_v3  ;;  %v4120_v18 = vmul.f32 -1.442695, %v835_v5  ;;  %v853_v3 = vrot.slane %v5484_v19, 1 }
 0x6ec   :  { %4594 = vtanh.f32 %v835_v5 }
 0x6ed   :  { %4596 = vtanh.f32 %v762_v6 }
 0x6ee   :  { %4598 = vpow2.f32 %v4118_v14 }
 0x6ef   :  { %4600 = vpow2.f32 %v4119_v15 }
 0x6f0   :  { %4602 = vpow2.f32 %v4120_v18 }
 0x6f1   :  { %4604 = vpow2.f32 %v4117_v31 }
 0x6f4   :  { %v4591_v10 = vpop.eup %4590 }
 0x6f5   :  { %790 = vrot.lane.b32.xlu0 %v4591_v10, %s5197_s3  ;;  %v4593_v11 = vpop.eup %4592 }
 0x6f6   :  { %v4595_v12 = vpop.eup %4594  ;;  %860 = vrot.lane.b32.xlu1 %v4593_v11, %s5197_s3  ;;  %v780_v11 = vrot.slane %v5488_v22, 7 }
 0x6f7   :  { %v4597_v13 = vpop.eup %4596 }
 0x6f8   :  { %v4599_v20 = vpop.eup %4598 }
 0x6f9   :  { %862 = vrot.lane.b32.xlu0 %v4595_v12, %s5197_s3  ;;  %v771_v39 = vadd.f32 1.0, %v4599_v20  ;;  %v4601_v41 = vpop.eup %4600 }
 0x6fa   :  { %788 = vrot.lane.b32.xlu1 %v4597_v13, %s5197_s3  ;;  %v4603_v45 = vpop.eup %4602  ;;  %v842_v23 = vadd.f32 1.0, %v4601_v41 }
 0x6fb   :  { %4606 = vrcp.f32 %v771_v39  ;;  %v4605_v24 = vpop.eup %4604  ;;  %v843_v25 = vadd.f32 1.0, %v4603_v45 }
 0x6fc   :  { %v770_v30 = vadd.f32 1.0, %v4605_v24  ;;  %4608 = vrcp.f32 %v842_v23 }
 0x6fd   :  { %4610 = vrcp.f32 %v843_v25 }
 0x6fe   :  { %4612 = vrcp.f32 %v770_v30 }
 0x705   :  { %v4607_v35 = vpop.eup %4606 }
 0x706   :  { %v4609_v42 = vpop.eup %4608  ;;  %v785_v61 = vmul.f32 %v4607_v35, %v781_v60 }
 0x707   :  { %v4611_v47 = vpop.eup %4610  ;;  %v856_v5 = vmul.f32 %v4609_v42, %v852_v2 }
 0x708   :  { %v4613_v53 = vpop.eup %4612  ;;  %v857_v10 = vmul.f32 %v4611_v47, %v853_v3 }
 0x709   :  { %v784_v7 = vmul.f32 %v4613_v53, %v780_v11 }
 0x767   :  { %v791_v36 = vpop.permute.xlu0 %790 }
 0x768   :  { %v795_v38 = vmul.f32 %v4607_v35, %v791_v36  ;;  %v861_v46 = vpop.permute.xlu1 %860 }
 0x769   :  { %v866_v48 = vmul.f32 %v4609_v42, %v861_v46 }
 0x76a   :  { %800 = vrot.lane.b32.xlu0 %v795_v38, %s5198_s4 }
 0x76b   :  { %v863_v50 = vpop.permute.xlu0 %862  ;;  %870 = vrot.lane.b32.xlu1 %v866_v48, %s5198_s4 }
 0x76c   :  { %v867_v51 = vmul.f32 %v4611_v47, %v863_v50  ;;  %v789_v54 = vpop.permute.xlu1 %788 }
 0x76d   :  { %v794_v59 = vmul.f32 %v4613_v53, %v789_v54 }
 0x76e   :  { %872 = vrot.lane.b32.xlu0 %v867_v51, %s5198_s4 }
 0x76f   :  { %798 = vrot.lane.b32.xlu1 %v794_v59, %s5198_s4 }
 0x7dc   :  { %v801_v62 = vpop.permute.xlu0 %800 }
 0x7dd   :  { %v5535_v1 = vadd.f32 %v801_v62, %v785_v61  ;;  %v871_v6 = vpop.permute.xlu1 %870 }
 0x7de   :  { %v5541_v12 = vadd.f32 %v871_v6, %v856_v5 }
 0x7df   :  { %4614 = vtanh.f32 %v5535_v1 }
 0x7e0   :  { %v873_v13 = vpop.permute.xlu0 %872  ;;  %4616 = vtanh.f32 %v5541_v12 }
 0x7e1   :  { %v5543_v14 = vadd.f32 %v873_v13, %v857_v10  ;;  %v799_v17 = vpop.permute.xlu1 %798 }
 0x7e2   :  { %v5547_v15 = vadd.f32 %v799_v17, %v784_v7 }
 0x7e3   :  { %4618 = vtanh.f32 %v5543_v14 }
 0x7e4   :  { %4620 = vtanh.f32 %v5547_v15 }
 0x7e9   :  { %v4615_v19 = vpop.eup %4614 }
 0x7ea   :  { %812 = vrot.lane.b32.xlu0 %v4615_v19, %s5197_s3  ;;  %v4617_v18 = vpop.eup %4616 }
 0x7eb   :  { %882 = vrot.lane.b32.xlu1 %v4617_v18, %s5197_s3 }
 0x7ed   :  { %v4619_v22 = vpop.eup %4618 }
 0x7ee   :  { %884 = vrot.lane.b32.xlu0 %v4619_v22, %s5197_s3  ;;  %v4621_v31 = vpop.eup %4620 }
 0x7ef   :  { %810 = vrot.lane.b32.xlu1 %v4621_v31, %s5197_s3 }
 0x85c   :  { %v813_v20 = vpop.permute.xlu0 %812 }
 0x85d   :  { %v883_v39 = vpop.permute.xlu1 %882  ;;  %v5554_v41 = vmul.f32 %v4607_v35, %v813_v20 }
 0x85e   :  { %v5556_v45 = vmul.f32 %v4609_v42, %v883_v39 }
 0x85f   :  { %v901_v38 = vrot.slane %v5554_v41, 7 }
 0x860   :  { %v885_v23 = vpop.permute.xlu0 %884  ;;  %v907_v25 = vrot.slane %v5556_v45, 3 }
 0x861   :  { %v5558_v24 = vmul.f32 %v4611_v47, %v885_v23  ;;  %v811_v36 = vpop.permute.xlu1 %810 }
 0x862   :  { %v5563_v46 = vmul.f32 %v4613_v53, %v811_v36 }
 0x863   :  { %v908_v30 = vrot.slane %v5558_v24, 2 }
 0x864   :  { %v903_v35 = vsel %vm6540_vm5, %v901_v38, %v5563_v46 }
 0x865   :  { %v909_v48 = vsel %vm6540_vm5, %v908_v30, %v907_v25  ;;  %904 = vrot.lane.b32.xlu0 %v903_v35, %s5198_s4  ;;  %vm1593_vm5 = vcmask 518402  }
 0x866   :  { %910 = vrot.lane.b32.xlu1 %v909_v48, %s5197_s3 }
 0x8d7   :  { %v905_v47 = vpop.permute.xlu0 %904 }
 0x8d8   :  { %v911_v42 = vpop.permute.xlu1 %910 }
 0x8d9   :  { %v913_v50 = vsel %vm6542_vm2, %v905_v47, %v911_v42 }
 0x8da   :  { %v915_v51 = vrot.slane %v913_v50, 2 }
 0x8dc   :  { %4121 = vmatmul.mubr.msk.f32.vlgmr.msra.gmra.mrb[6].mxu0 %vm232_vm3, %v915_v51 }
 0x8dd   :  { %4308 = vmatpush1.bf16.msra.mxu0 %v5343_v8  ;;  %1445 = vmatprep.mubr.f32.mxu0 %v5196_v0 }
 0x8de   :  { %4310 = vmatprep.subr.bf16.mxu0 %v5345_v9 }
 0x8e1   :  { %4312 = vmatpush1.bf16.msra.mxu0 %v5349_v16 }
 0x8e2   :  { %4314 = vmatprep.subr.bf16.mxu0 %v5352_v21 }
 0x8e5   :  { %4316 = vmatpush1.bf16.msra.mxu0 %v5355_v27 }
 0x8e6   :  { %4318 = vmatprep.subr.bf16.mxu0 %v5359_v28 }
 0x8e9   :  { %4320 = vmatpush1.bf16.msra.mxu0 %v5365_v32 }
 0x8ea   :  { %4338 = vmatprep.subr.bf16.mxu0 %v5341_v4 }
 0x9af   :  { %v984_v53 = vpop.f32.mrb[6].mxu0 }
 0x9b0   :  { %v991_v54 = vrot.slane %v984_v53, 6  ;;  %v986_v59 = vpop.f32.mrb[7].mxu0  ;;  %v990_v60 = vrot.slane %v984_v53, 5 }
 0x9b1   :  { %v1062_v62 = vrot.slane %v986_v59, 4  ;;  %v1063_v3 = vrot.slane %v986_v59, 5 }
 0x9b2   :  { %v995_v61 = vadd.f32 %v991_v54, %v5398_v43  ;;  %v994_v2 = vadd.f32 %v990_v60, %v5409_v55 }
 0x9b3   :  { %v1066_v5 = vadd.f32 %v1062_v62, %v5405_v52  ;;  %v1067_v6 = vadd.f32 %v1063_v3, %v5402_v49  ;;  %v1013_v62 = vrot.slane %v5535_v1, 7 }
 0x9b4   :  { %4622 = vtanh.f32 %v995_v61  ;;  %v4123_v7 = vmul.f32 -1.442695, %v995_v61  ;;  %v4122_v17 = vmul.f32 -1.442695, %v994_v2 }
 0x9b5   :  { %4624 = vtanh.f32 %v994_v2  ;;  %v4124_v19 = vmul.f32 -1.442695, %v1066_v5  ;;  %v4125_v18 = vmul.f32 -1.442695, %v1067_v6 }
 0x9b6   :  { %4626 = vtanh.f32 %v1066_v5  ;;  %v1012_v5 = vrot.slane %v5547_v15, 7 }
 0x9b7   :  { %4628 = vtanh.f32 %v1067_v6 }
 0x9b8   :  { %4630 = vpow2.f32 %v4123_v7 }
 0x9b9   :  { %4632 = vpow2.f32 %v4122_v17 }
 0x9ba   :  { %4634 = vpow2.f32 %v4124_v19  ;;  %v1085_v19 = vrot.slane %v5543_v14, 1 }
 0x9bb   :  { %4636 = vpow2.f32 %v4125_v18 }
 0x9be   :  { %v4623_v10 = vpop.eup %4622 }
 0x9bf   :  { %1022 = vrot.lane.b32.xlu0 %v4623_v10, %s5197_s3  ;;  %v4625_v4 = vpop.eup %4624  ;;  %v1084_v10 = vrot.slane %v5541_v12, 1 }
 0x9c0   :  { %v4627_v11 = vpop.eup %4626 }
 0x9c1   :  { %1092 = vrot.lane.b32.xlu1 %v4627_v11, %s5197_s3  ;;  %v4629_v13 = vpop.eup %4628 }
 0x9c2   :  { %v4631_v22 = vpop.eup %4630 }
 0x9c3   :  { %1020 = vrot.lane.b32.xlu0 %v4625_v4, %s5197_s3  ;;  %v1003_v31 = vadd.f32 1.0, %v4631_v22  ;;  %v4633_v20 = vpop.eup %4632 }
 0x9c4   :  { %v4635_v39 = vpop.eup %4634  ;;  %v1002_v23 = vadd.f32 1.0, %v4633_v20 }
 0x9c5   :  { %1094 = vrot.lane.b32.xlu1 %v4629_v13, %s5197_s3  ;;  %4638 = vrcp.f32 %v1003_v31  ;;  %v1074_v25 = vadd.f32 1.0, %v4635_v39  ;;  %v4637_v30 = vpop.eup %4636 }
 0x9c6   :  { %4640 = vrcp.f32 %v1002_v23  ;;  %v1075_v36 = vadd.f32 1.0, %v4637_v30 }
 0x9c7   :  { %4642 = vrcp.f32 %v1074_v25 }
 0x9c8   :  { %4644 = vrcp.f32 %v1075_v36 }
 0x9cf   :  { %v4639_v38 = vpop.eup %4638 }
 0x9d0   :  { %v4641_v42 = vpop.eup %4640  ;;  %v1017_v2 = vmul.f32 %v4639_v38, %v1013_v62 }
 0x9d1   :  { %v4643_v50 = vpop.eup %4642  ;;  %v1016_v4 = vmul.f32 %v4641_v42, %v1012_v5 }
 0x9d2   :  { %v4645_v59 = vpop.eup %4644  ;;  %v1088_v11 = vmul.f32 %v4643_v50, %v1084_v10 }
 0x9d3   :  { %v1089_v1 = vmul.f32 %v4645_v59, %v1085_v19 }
 0xa31   :  { %v1023_v48 = vpop.permute.xlu0 %1022 }
 0xa32   :  { %v1027_v35 = vmul.f32 %v4639_v38, %v1023_v48 }
 0xa33   :  { %v1093_v51 = vpop.permute.xlu1 %1092 }
 0xa34   :  { %1032 = vrot.lane.b32.xlu0 %v1027_v35, %s5198_s4  ;;  %v1098_v54 = vmul.f32 %v4643_v50, %v1093_v51 }
 0xa35   :  { %v1021_v47 = vpop.permute.xlu0 %1020 }
 0xa36   :  { %v1026_v53 = vmul.f32 %v4641_v42, %v1021_v47  ;;  %1102 = vrot.lane.b32.xlu1 %v1098_v54, %s5198_s4 }
 0xa37   :  { %v1095_v60 = vpop.permute.xlu1 %1094 }
 0xa38   :  { %1030 = vrot.lane.b32.xlu0 %v1026_v53, %s5198_s4  ;;  %v1099_v61 = vmul.f32 %v4645_v59, %v1095_v60 }
 0xa3a   :  { %1104 = vrot.lane.b32.xlu1 %v1099_v61, %s5198_s4 }
 0xaa6   :  { %v1033_v3 = vpop.permute.xlu0 %1032 }
 0xaa7   :  { %v5595_v6 = vadd.f32 %v1033_v3, %v1017_v2 }
 0xaa8   :  { %v1103_v7 = vpop.permute.xlu1 %1102 }
 0xaa9   :  { %4646 = vtanh.f32 %v5595_v6  ;;  %v5602_v18 = vadd.f32 %v1103_v7, %v1088_v11 }
 0xaaa   :  { %v1031_v13 = vpop.permute.xlu0 %1030 }
 0xaab   :  { %v5599_v17 = vadd.f32 %v1031_v13, %v1016_v4 }
 0xaac   :  { %v1105_v15 = vpop.permute.xlu1 %1104 }
 0xaad   :  { %4648 = vtanh.f32 %v5599_v17  ;;  %v5606_v22 = vadd.f32 %v1105_v15, %v1089_v1 }
 0xaae   :  { %4650 = vtanh.f32 %v5602_v18 }
 0xaaf   :  { %4652 = vtanh.f32 %v5606_v22 }
 0xab3   :  { %v4647_v12 = vpop.eup %4646 }
 0xab4   :  { %1044 = vrot.lane.b32.xlu0 %v4647_v12, %s5197_s3 }
 0xab7   :  { %v4649_v31 = vpop.eup %4648 }
 0xab8   :  { %v4651_v20 = vpop.eup %4650  ;;  %1042 = vrot.lane.b32.xlu0 %v4649_v31, %s5197_s3 }
 0xab9   :  { %1114 = vrot.lane.b32.xlu1 %v4651_v20, %s5197_s3  ;;  %v4653_v14 = vpop.eup %4652 }
 0xabd   :  { %1116 = vrot.lane.b32.xlu1 %v4653_v14, %s5197_s3 }
 0xb26   :  { %v1045_v39 = vpop.permute.xlu0 %1044 }
 0xb27   :  { %v5613_v23 = vmul.f32 %v4639_v38, %v1045_v39 }
 0xb29   :  { %v1133_v30 = vrot.slane %v5613_v23, 7 }
 0xb2a   :  { %v1043_v25 = vpop.permute.xlu0 %1042 }
 0xb2b   :  { %v1115_v36 = vpop.permute.xlu1 %1114  ;;  %v5616_v48 = vmul.f32 %v4641_v42, %v1043_v25 }
 0xb2c   :  { %v5618_v35 = vmul.f32 %v4643_v50, %v1115_v36 }
 0xb2d   :  { %v1135_v47 = vsel %vm6539_vm6, %v1133_v30, %v5616_v48 }
 0xb2e   :  { %1136 = vrot.lane.b32.xlu0 %v1135_v47, %s5198_s4  ;;  %v1139_v53 = vrot.slane %v5618_v35, 1 }
 0xb2f   :  { %v1117_v51 = vpop.permute.xlu1 %1116 }
 0xb30   :  { %v5624_v54 = vmul.f32 %v4645_v59, %v1117_v51 }
 0xb32   :  { %v1140_v38 = vsel %vm6539_vm6, %v5624_v54, %v1139_v53  ;;  %vm1521_vm6 = vcmask 259077  }
 0xb33   :  { %1141 = vrot.lane.b32.xlu1 %v1140_v38, %s5197_s3 }
 0xba0   :  { %v1137_v60 = vpop.permute.xlu0 %1136 }
 0xba5   :  { %v1142_v42 = vpop.permute.xlu1 %1141 }
 0xba6   :  { %v1144_v50 = vsel %vm6542_vm2, %v1137_v60, %v1142_v42 }
 0xba7   :  { %v1146_v61 = vrot.slane %v1144_v50, 3 }
 0xba9   :  { %4126 = vmatmul.mubr.msk.f32.vlgmr.msra.gmra.mrb[4].mxu1 %vm232_vm3, %v1146_v61 }
 0xbaa   :  { %4324 = vmatpush1.bf16.msra.mxu1 %v5343_v8  ;;  %1677 = vmatprep.mubr.f32.mxu1 %v5196_v0 }
 0xbab   :  { %4326 = vmatprep.subr.bf16.mxu1 %v5345_v9 }
 0xbae   :  { %4328 = vmatpush1.bf16.msra.mxu1 %v5349_v16 }
 0xbaf   :  { %4330 = vmatprep.subr.bf16.mxu1 %v5352_v21 }
 0xbb2   :  { %4332 = vmatpush1.bf16.msra.mxu1 %v5355_v27 }
 0xbb3   :  { %4334 = vmatprep.subr.bf16.mxu1 %v5359_v28 }
 0xbb6   :  { %4336 = vmatpush1.bf16.msra.mxu1 %v5365_v32 }
 0xc7c   :  { %v1215_v59 = vpop.f32.mrb[4].mxu1 }
 0xc7d   :  { %v1222_v62 = vrot.slane %v1215_v59, 5  ;;  %v1217_v2 = vpop.f32.mrb[5].mxu1  ;;  %v1221_v4 = vrot.slane %v1215_v59, 4 }
 0xc7e   :  { %v1293_v5 = vrot.slane %v1217_v2, 5  ;;  %v1294_v10 = vrot.slane %v1217_v2, 6 }
 0xc7f   :  { %v1226_v3 = vadd.f32 %v1222_v62, %v5398_v43  ;;  %v1225_v7 = vadd.f32 %v1221_v4, %v5409_v55 }
 0xc80   :  { %v1297_v11 = vadd.f32 %v1293_v5, %v5405_v52  ;;  %v1298_v13 = vadd.f32 %v1294_v10, %v5402_v49 }
 0xc81   :  { %4654 = vtanh.f32 %v1226_v3  ;;  %v4128_v31 = vmul.f32 -1.442695, %v1226_v3  ;;  %v4127_v39 = vmul.f32 -1.442695, %v1225_v7 }
 0xc82   :  { %4656 = vtanh.f32 %v1297_v11  ;;  %v4129_v20 = vmul.f32 -1.442695, %v1297_v11  ;;  %v4130_v14 = vmul.f32 -1.442695, %v1298_v13 }
 0xc83   :  { %4658 = vtanh.f32 %v1298_v13 }
 0xc84   :  { %4660 = vtanh.f32 %v1225_v7  ;;  %v1244_v7 = vrot.slane %v5595_v6, 7 }
 0xc85   :  { %4662 = vpow2.f32 %v4128_v31  ;;  %v1316_v31 = vrot.slane %v5606_v22, 1 }
 0xc86   :  { %4664 = vpow2.f32 %v4129_v20 }
 0xc87   :  { %4666 = vpow2.f32 %v4130_v14 }
 0xc88   :  { %4668 = vpow2.f32 %v4127_v39 }
 0xc8b   :  { %v4655_v19 = vpop.eup %4654 }
 0xc8c   :  { %1253 = vrot.lane.b32.xlu0 %v4655_v19, %s5197_s3  ;;  %v4657_v1 = vpop.eup %4656 }
 0xc8d   :  { %v4659_v15 = vpop.eup %4658  ;;  %1323 = vrot.lane.b32.xlu1 %v4657_v1, %s5197_s3 }
 0xc8e   :  { %v4661_v12 = vpop.eup %4660 }
 0xc8f   :  { %v4663_v25 = vpop.eup %4662 }
 0xc90   :  { %1325 = vrot.lane.b32.xlu0 %v4659_v15, %s5197_s3  ;;  %v1234_v30 = vadd.f32 1.0, %v4663_v25  ;;  %v4665_v36 = vpop.eup %4664  ;;  %v1243_v25 = vrot.slane %v5599_v17, 7 }
 0xc91   :  { %1251 = vrot.lane.b32.xlu1 %v4661_v12, %s5197_s3  ;;  %v4667_v47 = vpop.eup %4666  ;;  %v1305_v51 = vadd.f32 1.0, %v4665_v36  ;;  %v1315_v12 = vrot.slane %v5602_v18, 1 }
 0xc92   :  { %4670 = vrcp.f32 %v1234_v30  ;;  %v4669_v53 = vpop.eup %4668  ;;  %v1306_v38 = vadd.f32 1.0, %v4667_v47 }
 0xc93   :  { %v1233_v60 = vadd.f32 1.0, %v4669_v53  ;;  %4672 = vrcp.f32 %v1305_v51 }
 0xc94   :  { %4674 = vrcp.f32 %v1306_v38 }
 0xc95   :  { %4676 = vrcp.f32 %v1233_v60 }
 0xc9c   :  { %v4671_v42 = vpop.eup %4670 }
 0xc9d   :  { %v4673_v59 = vpop.eup %4672  ;;  %v1248_v19 = vmul.f32 %v4671_v42, %v1244_v7 }
 0xc9e   :  { %v4675_v2 = vpop.eup %4674  ;;  %v1319_v20 = vmul.f32 %v4673_v59, %v1315_v12 }
 0xc9f   :  { %v4677_v4 = vpop.eup %4676  ;;  %v1320_v39 = vmul.f32 %v4675_v2, %v1316_v31 }
 0xca0   :  { %v1247_v6 = vmul.f32 %v4677_v4, %v1243_v25 }
 0xcfe   :  { %v1254_v50 = vpop.permute.xlu0 %1253 }
 0xcff   :  { %v1258_v61 = vmul.f32 %v4671_v42, %v1254_v50  ;;  %v1324_v62 = vpop.permute.xlu1 %1323 }
 0xd00   :  { %v1329_v3 = vmul.f32 %v4673_v59, %v1324_v62 }
 0xd01   :  { %1263 = vrot.lane.b32.xlu0 %v1258_v61, %s5198_s4 }
 0xd02   :  { %v1326_v5 = vpop.permute.xlu0 %1325  ;;  %1333 = vrot.lane.b32.xlu1 %v1329_v3, %s5198_s4 }
 0xd03   :  { %v1330_v10 = vmul.f32 %v4675_v2, %v1326_v5  ;;  %v1252_v11 = vpop.permute.xlu1 %1251 }
 0xd04   :  { %v1257_v13 = vmul.f32 %v4677_v4, %v1252_v11 }
 0xd05   :  { %1335 = vrot.lane.b32.xlu0 %v1330_v10, %s5198_s4 }
 0xd06   :  { %1261 = vrot.lane.b32.xlu1 %v1257_v13, %s5198_s4 }
 0xd73   :  { %v1264_v1 = vpop.permute.xlu0 %1263 }
 0xd74   :  { %v5652_v15 = vadd.f32 %v1264_v1, %v1248_v19  ;;  %v1334_v14 = vpop.permute.xlu1 %1333 }
 0xd75   :  { %v5658_v30 = vadd.f32 %v1334_v14, %v1319_v20 }
 0xd76   :  { %4678 = vtanh.f32 %v5652_v15 }
 0xd77   :  { %v1336_v36 = vpop.permute.xlu0 %1335  ;;  %4680 = vtanh.f32 %v5658_v30 }
 0xd78   :  { %v5660_v47 = vadd.f32 %v1336_v36, %v1320_v39  ;;  %v1262_v18 = vpop.permute.xlu1 %1261 }
 0xd79   :  { %v5664_v51 = vadd.f32 %v1262_v18, %v1247_v6 }
 0xd7a   :  { %4682 = vtanh.f32 %v5660_v47 }
 0xd7b   :  { %4684 = vtanh.f32 %v5664_v51 }
 0xd80   :  { %v4679_v22 = vpop.eup %4678 }
 0xd81   :  { %1275 = vrot.lane.b32.xlu0 %v4679_v22, %s5197_s3  ;;  %v4681_v53 = vpop.eup %4680 }
 0xd82   :  { %1345 = vrot.lane.b32.xlu1 %v4681_v53, %s5197_s3 }
 0xd84   :  { %v4683_v17 = vpop.eup %4682 }
 0xd85   :  { %1347 = vrot.lane.b32.xlu0 %v4683_v17, %s5197_s3  ;;  %v4685_v38 = vpop.eup %4684 }
 0xd86   :  { %1273 = vrot.lane.b32.xlu1 %v4685_v38, %s5197_s3 }
 0xdf3   :  { %v1276_v60 = vpop.permute.xlu0 %1275 }
 0xdf4   :  { %v1346_v50 = vpop.permute.xlu1 %1345  ;;  %v5671_v61 = vmul.f32 %v4671_v42, %v1276_v60 }
 0xdf5   :  { %v5673_v62 = vmul.f32 %v4673_v59, %v1346_v50 }
 0xdf6   :  { %v1364_v7 = vrot.slane %v5671_v61, 7 }
 0xdf7   :  { %v1348_v3 = vpop.permute.xlu0 %1347  ;;  %v1370_v10 = vrot.slane %v5673_v62, 7 }
 0xdf8   :  { %v5675_v5 = vmul.f32 %v4675_v2, %v1348_v3  ;;  %v1274_v13 = vpop.permute.xlu1 %1273 }
 0xdf9   :  { %v5680_v19 = vmul.f32 %v4677_v4, %v1274_v13 }
 0xdfa   :  { %v1371_v11 = vrot.slane %v5675_v5, 6 }
 0xdfb   :  { %v1366_v42 = vsel %vm6538_vm7, %v1364_v7, %v5680_v19 }
 0xdfc   :  { %v1372_v1 = vsel %vm6538_vm7, %v1371_v11, %v1370_v10  ;;  %1367 = vrot.lane.b32.xlu0 %v1366_v42, %s5198_s4  ;;  %vm1361_vm7 = vcmask 519427  }
 0xdfd   :  { %1373 = vrot.lane.b32.xlu1 %v1372_v1, %s5197_s3 }
 0xe6e   :  { %v1368_v2 = vpop.permute.xlu0 %1367 }
 0xe6f   :  { %v1374_v59 = vpop.permute.xlu1 %1373 }
 0xe70   :  { %v1376_v12 = vsel %vm6542_vm2, %v1368_v2, %v1374_v59 }
 0xe71   :  { %v1378_v31 = vrot.slane %v1376_v12, 4 }
 0xe73   :  { %4131 = vmatmul.mubr.msk.f32.vlgmr.msra.gmra.mrb[8].mxu0 %vm232_vm3, %v1378_v31 }
 0xe74   :  { %4340 = vmatpush1.bf16.msra.mxu0 %v5343_v8  ;;  %1908 = vmatprep.mubr.f32.mxu0 %v5196_v0 }
 0xe75   :  { %4342 = vmatprep.subr.bf16.mxu0 %v5345_v9 }
 0xe78   :  { %4344 = vmatpush1.bf16.msra.mxu0 %v5349_v16 }
 0xe79   :  { %4346 = vmatprep.subr.bf16.mxu0 %v5352_v21 }
 0xe7c   :  { %4348 = vmatpush1.bf16.msra.mxu0 %v5355_v27 }
 0xe7d   :  { %4350 = vmatprep.subr.bf16.mxu0 %v5359_v28 }
 0xe80   :  { %4352 = vmatpush1.bf16.msra.mxu0 %v5365_v32 }
 0xf46   :  { %v1447_v4 = vpop.f32.mrb[8].mxu0 }
 0xf47   :  { %v1454_v20 = vrot.slane %v1447_v4, 4  ;;  %v1449_v14 = vpop.f32.mrb[9].mxu0  ;;  %v1453_v36 = vrot.slane %v1447_v4, 3 }
 0xf48   :  { %v1525_v8 = vrot.slane %v1449_v14, 6  ;;  %v1526_v25 = vrot.slane %v1449_v14, 7 }
 0xf49   :  { %v1458_v39 = vadd.f32 %v1454_v20, %v5398_v43  ;;  %v1457_v21 = vadd.f32 %v1453_v36, %v5409_v55  ;;  %v1476_v36 = vrot.slane %v5652_v15, 7 }
 0xf4a   :  { %v1529_v9 = vadd.f32 %v1525_v8, %v5405_v52  ;;  %v1530_v16 = vadd.f32 %v1526_v25, %v5402_v49 }
 0xf4b   :  { %4686 = vtanh.f32 %v1458_v39  ;;  %v4133_v18 = vmul.f32 -1.442695, %v1458_v39  ;;  %v4132_v17 = vmul.f32 -1.442695, %v1457_v21 }
 0xf4c   :  { %4688 = vtanh.f32 %v1529_v9  ;;  %v4134_v22 = vmul.f32 -1.442695, %v1529_v9  ;;  %v4135_v53 = vmul.f32 -1.442695, %v1530_v16 }
 0xf4d   :  { %4690 = vtanh.f32 %v1530_v16 }
 0xf4e   :  { %4692 = vtanh.f32 %v1457_v21 }
 0xf4f   :  { %4694 = vpow2.f32 %v4133_v18 }
 0xf50   :  { %4696 = vpow2.f32 %v4134_v22  ;;  %v1475_v22 = vrot.slane %v5664_v51, 7 }
 0xf51   :  { %4698 = vpow2.f32 %v4135_v53 }
 0xf52   :  { %4700 = vpow2.f32 %v4132_v17 }
 0xf55   :  { %v4687_v27 = vpop.eup %4686 }
 0xf56   :  { %1485 = vrot.lane.b32.xlu0 %v4687_v27, %s5197_s3  ;;  %v4689_v28 = vpop.eup %4688  ;;  %v1547_v27 = vrot.slane %v5658_v30, 1 }
 0xf57   :  { %v4691_v32 = vpop.eup %4690  ;;  %1555 = vrot.lane.b32.xlu1 %v4689_v28, %s5197_s3  ;;  %v1548_v28 = vrot.slane %v5660_v47, 1 }
 0xf58   :  { %v4693_v6 = vpop.eup %4692 }
 0xf59   :  { %v4695_v38 = vpop.eup %4694 }
 0xf5a   :  { %1557 = vrot.lane.b32.xlu0 %v4691_v32, %s5197_s3  ;;  %v1466_v60 = vadd.f32 1.0, %v4695_v38  ;;  %v4697_v50 = vpop.eup %4696 }
 0xf5b   :  { %1483 = vrot.lane.b32.xlu1 %v4693_v6, %s5197_s3  ;;  %v4699_v3 = vpop.eup %4698  ;;  %v1537_v10 = vadd.f32 1.0, %v4697_v50 }
 0xf5c   :  { %4702 = vrcp.f32 %v1466_v60  ;;  %v4701_v11 = vpop.eup %4700  ;;  %v1538_v13 = vadd.f32 1.0, %v4699_v3 }
 0xf5d   :  { %v1465_v7 = vadd.f32 1.0, %v4701_v11  ;;  %4704 = vrcp.f32 %v1537_v10 }
 0xf5e   :  { %4706 = vrcp.f32 %v1538_v13 }
 0xf5f   :  { %4708 = vrcp.f32 %v1465_v7 }
 0xf66   :  { %v4703_v1 = vpop.eup %4702 }
 0xf67   :  { %v4705_v2 = vpop.eup %4704  ;;  %v1480_v9 = vmul.f32 %v4703_v1, %v1476_v36 }
 0xf68   :  { %v4707_v31 = vpop.eup %4706  ;;  %v1551_v32 = vmul.f32 %v4705_v2, %v1547_v27 }
 0xf69   :  { %v4709_v39 = vpop.eup %4708  ;;  %v1552_v18 = vmul.f32 %v4707_v31, %v1548_v28 }
 0xf6a   :  { %v1479_v15 = vmul.f32 %v4709_v39, %v1475_v22 }
 0xfc8   :  { %v1486_v42 = vpop.permute.xlu0 %1485 }
 0xfc9   :  { %v1490_v59 = vmul.f32 %v4703_v1, %v1486_v42  ;;  %v1556_v12 = vpop.permute.xlu1 %1555 }
 0xfca   :  { %v1561_v4 = vmul.f32 %v4705_v2, %v1556_v12 }
 0xfcb   :  { %1495 = vrot.lane.b32.xlu0 %v1490_v59, %s5198_s4 }
 0xfcc   :  { %v1558_v20 = vpop.permute.xlu0 %1557  ;;  %1565 = vrot.lane.b32.xlu1 %v1561_v4, %s5198_s4 }
 0xfcd   :  { %v1562_v14 = vmul.f32 %v4707_v31, %v1558_v20  ;;  %v1484_v8 = vpop.permute.xlu1 %1483 }
 0xfce   :  { %v1489_v25 = vmul.f32 %v4709_v39, %v1484_v8 }
 0xfcf   :  { %1567 = vrot.lane.b32.xlu0 %v1562_v14, %s5198_s4 }
 0xfd0   :  { %1493 = vrot.lane.b32.xlu1 %v1489_v25, %s5198_s4 }
0x103d   :  { %v1496_v16 = vpop.permute.xlu0 %1495 }
0x103e   :  { %v5710_v21 = vadd.f32 %v1496_v16, %v1480_v9  ;;  %v1566_v6 = vpop.permute.xlu1 %1565 }
0x103f   :  { %v5716_v53 = vadd.f32 %v1566_v6, %v1551_v32 }
0x1040   :  { %4710 = vtanh.f32 %v5710_v21 }
0x1041   :  { %v1568_v17 = vpop.permute.xlu0 %1567  ;;  %4712 = vtanh.f32 %v5716_v53 }
0x1042   :  { %v5718_v38 = vadd.f32 %v1568_v17, %v1552_v18  ;;  %v1494_v30 = vpop.permute.xlu1 %1493 }
0x1043   :  { %v5722_v60 = vadd.f32 %v1494_v30, %v1479_v15 }
0x1044   :  { %4714 = vtanh.f32 %v5718_v38 }
0x1045   :  { %4716 = vtanh.f32 %v5722_v60 }
0x104a   :  { %v4711_v47 = vpop.eup %4710 }
0x104b   :  { %1507 = vrot.lane.b32.xlu0 %v4711_v47, %s5197_s3  ;;  %v4713_v50 = vpop.eup %4712 }
0x104c   :  { %1577 = vrot.lane.b32.xlu1 %v4713_v50, %s5197_s3 }
0x104e   :  { %v4715_v51 = vpop.eup %4714 }
0x104f   :  { %1579 = vrot.lane.b32.xlu0 %v4715_v51, %s5197_s3  ;;  %v4717_v3 = vpop.eup %4716 }
0x1050   :  { %1505 = vrot.lane.b32.xlu1 %v4717_v3, %s5197_s3 }
0x10bd   :  { %v1508_v10 = vpop.permute.xlu0 %1507 }
0x10be   :  { %v1578_v11 = vpop.permute.xlu1 %1577  ;;  %v5729_v13 = vmul.f32 %v4703_v1, %v1508_v10 }
0x10bf   :  { %v5731_v7 = vmul.f32 %v4705_v2, %v1578_v11 }
0x10c0   :  { %v1596_v14 = vrot.slane %v5729_v13, 7 }
0x10c1   :  { %v1580_v42 = vpop.permute.xlu0 %1579  ;;  %v1602_v12 = vrot.slane %v5731_v7, 5 }
0x10c2   :  { %v5733_v59 = vmul.f32 %v4707_v31, %v1580_v42  ;;  %v1506_v20 = vpop.permute.xlu1 %1505 }
0x10c3   :  { %v5738_v8 = vmul.f32 %v4709_v39, %v1506_v20 }
0x10c4   :  { %v1603_v4 = vrot.slane %v5733_v59, 4 }
0x10c5   :  { %v1598_v1 = vsel %vm6537_vm8, %v1596_v14, %v5738_v8 }
0x10c6   :  { %v1604_v25 = vsel %vm6537_vm8, %v1603_v4, %v1602_v12  ;;  %1599 = vrot.lane.b32.xlu0 %v1598_v1, %s5198_s4  ;;  %vm1289_vm8 = vcmask 258052  }
0x10c7   :  { %1605 = vrot.lane.b32.xlu1 %v1604_v25, %s5197_s3 }
0x1138   :  { %v1600_v31 = vpop.permute.xlu0 %1599 }
0x1139   :  { %v1606_v2 = vpop.permute.xlu1 %1605 }
0x113a   :  { %v1608_v36 = vsel %vm6542_vm2, %v1600_v31, %v1606_v2 }
0x113b   :  { %v1610_v9 = vrot.slane %v1608_v36, 5 }
0x113d   :  { %4136 = vmatmul.mubr.msk.f32.vlgmr.msra.gmra.mrb[6].mxu1 %vm232_vm3, %v1610_v9 }
0x113e   :  { %2174 = vmatprep.mubr.f32.mxu1 %v5196_v0 }
0x1210   :  { %v1679_v39 = vpop.f32.mrb[6].mxu1 }
0x1211   :  { %v1686_v16 = vrot.slane %v1679_v39, 3  ;;  %v1681_v27 = vpop.f32.mrb[7].mxu1  ;;  %v1685_v18 = vrot.slane %v1679_v39, 2 }
0x1212   :  { %v1757_v32 = vrot.slane %v1681_v27, 7  ;;  %v1761_v6 = vadd.f32 %v1681_v27, %v5402_v49 }
0x1213   :  { %v1690_v28 = vadd.f32 %v1686_v16, %v5398_v43  ;;  %v1689_v17 = vadd.f32 %v1685_v18, %v5409_v55 }
0x1214   :  { %v1760_v22 = vadd.f32 %v1757_v32, %v5405_v52  ;;  %v4140_v3 = vmul.f32 -1.442695, %v1761_v6 }
0x1215   :  { %4718 = vtanh.f32 %v1690_v28  ;;  %v4138_v51 = vmul.f32 -1.442695, %v1690_v28  ;;  %v4137_v11 = vmul.f32 -1.442695, %v1689_v17 }
0x1216   :  { %4720 = vtanh.f32 %v1761_v6  ;;  %v4139_v10 = vmul.f32 -1.442695, %v1760_v22 }
0x1217   :  { %4722 = vtanh.f32 %v1760_v22 }
0x1218   :  { %4724 = vtanh.f32 %v1689_v17 }
0x1219   :  { %4726 = vpow2.f32 %v4138_v51 }
0x121a   :  { %4728 = vpow2.f32 %v4140_v3  ;;  %v1778_v3 = vrot.slane %v5716_v53, 1 }
0x121b   :  { %4730 = vpow2.f32 %v4139_v10 }
0x121c   :  { %4732 = vpow2.f32 %v4137_v11 }
0x121f   :  { %v4719_v15 = vpop.eup %4718 }
0x1220   :  { %1717 = vrot.lane.b32.xlu0 %v4719_v15, %s5197_s3  ;;  %v4721_v30 = vpop.eup %4720  ;;  %v1708_v15 = vrot.slane %v5710_v21, 7 }
0x1221   :  { %v4723_v47 = vpop.eup %4722 }
0x1222   :  { %1786 = vrot.lane.b32.xlu1 %v4723_v47, %s5197_s3  ;;  %v4725_v50 = vpop.eup %4724 }
0x1223   :  { %v4727_v42 = vpop.eup %4726 }
0x1224   :  { %1788 = vrot.lane.b32.xlu0 %v4721_v30, %s5197_s3  ;;  %v1698_v12 = vadd.f32 1.0, %v4727_v42  ;;  %v4729_v4 = vpop.eup %4728 }
0x1225   :  { %v4731_v20 = vpop.eup %4730  ;;  %v1769_v14 = vadd.f32 1.0, %v4729_v4 }
0x1226   :  { %1715 = vrot.lane.b32.xlu1 %v4725_v50, %s5197_s3  ;;  %4734 = vrcp.f32 %v1698_v12  ;;  %v1768_v25 = vadd.f32 1.0, %v4731_v20  ;;  %v4733_v1 = vpop.eup %4732  ;;  %v1779_v50 = vrot.slane %v5718_v38, 1  ;;  %v1707_v20 = vrot.slane %v5722_v60, 7 }
0x1227   :  { %4736 = vrcp.f32 %v1769_v14  ;;  %v1697_v2 = vadd.f32 1.0, %v4733_v1 }
0x1228   :  { %4738 = vrcp.f32 %v1768_v25 }
0x1229   :  { %4740 = vrcp.f32 %v1697_v2 }
0x1230   :  { %v4735_v31 = vpop.eup %4734 }
0x1231   :  { %v4737_v39 = vpop.eup %4736  ;;  %v1712_v30 = vmul.f32 %v4735_v31, %v1708_v15 }
0x1232   :  { %v4739_v27 = vpop.eup %4738  ;;  %v1783_v10 = vmul.f32 %v4737_v39, %v1779_v50 }
0x1233   :  { %v4741_v18 = vpop.eup %4740  ;;  %v1782_v11 = vmul.f32 %v4739_v27, %v1778_v3 }
0x1234   :  { %v1711_v21 = vmul.f32 %v4741_v18, %v1707_v20 }
0x1292   :  { %v1718_v36 = vpop.permute.xlu0 %1717 }
0x1293   :  { %v1722_v9 = vmul.f32 %v4735_v31, %v1718_v36 }
0x1294   :  { %v1787_v28 = vpop.permute.xlu1 %1786 }
0x1295   :  { %1727 = vrot.lane.b32.xlu0 %v1722_v9, %s5198_s4  ;;  %v1792_v6 = vmul.f32 %v4739_v27, %v1787_v28 }
0x1296   :  { %v1789_v16 = vpop.permute.xlu0 %1788 }
0x1297   :  { %v1793_v32 = vmul.f32 %v4737_v39, %v1789_v16  ;;  %1796 = vrot.lane.b32.xlu1 %v1792_v6, %s5198_s4 }
0x1298   :  { %v1716_v22 = vpop.permute.xlu1 %1715 }
0x1299   :  { %1798 = vrot.lane.b32.xlu0 %v1793_v32, %s5198_s4  ;;  %v1721_v17 = vmul.f32 %v4741_v18, %v1716_v22 }
0x129b   :  { %1725 = vrot.lane.b32.xlu1 %v1721_v17, %s5198_s4 }
0x1307   :  { %v1728_v47 = vpop.permute.xlu0 %1727 }
0x1308   :  { %v5762_v51 = vadd.f32 %v1728_v47, %v1712_v30 }
0x1309   :  { %v1797_v12 = vpop.permute.xlu1 %1796 }
0x130a   :  { %4742 = vtanh.f32 %v5762_v51  ;;  %v5769_v14 = vadd.f32 %v1797_v12, %v1782_v11 }
0x130b   :  { %v1799_v42 = vpop.permute.xlu0 %1798 }
0x130c   :  { %v5766_v4 = vadd.f32 %v1799_v42, %v1783_v10 }
0x130d   :  { %v1726_v38 = vpop.permute.xlu1 %1725 }
0x130e   :  { %4744 = vtanh.f32 %v5766_v4  ;;  %v5773_v25 = vadd.f32 %v1726_v38, %v1711_v21 }
0x130f   :  { %4746 = vtanh.f32 %v5769_v14 }
0x1310   :  { %4748 = vtanh.f32 %v5773_v25 }
0x1314   :  { %v4743_v53 = vpop.eup %4742 }
0x1315   :  { %1739 = vrot.lane.b32.xlu0 %v4743_v53, %s5197_s3 }
0x1318   :  { %v4745_v1 = vpop.eup %4744 }
0x1319   :  { %v4747_v2 = vpop.eup %4746  ;;  %1810 = vrot.lane.b32.xlu0 %v4745_v1, %s5197_s3 }
0x131a   :  { %1808 = vrot.lane.b32.xlu1 %v4747_v2, %s5197_s3  ;;  %v4749_v60 = vpop.eup %4748 }
0x131e   :  { %1737 = vrot.lane.b32.xlu1 %v4749_v60, %s5197_s3 }
0x1387   :  { %v1740_v36 = vpop.permute.xlu0 %1739 }
0x1388   :  { %v5782_v32 = vmul.f32 %v4735_v31, %v1740_v36 }
0x138a   :  { %v1827_v30 = vrot.slane %v5782_v32, 7 }
0x138b   :  { %v1811_v9 = vpop.permute.xlu0 %1810 }
0x138c   :  { %v1809_v16 = vpop.permute.xlu1 %1808  ;;  %v5780_v28 = vmul.f32 %v4737_v39, %v1811_v9 }
0x138d   :  { %v5784_v6 = vmul.f32 %v4739_v27, %v1809_v16 }
0x138e   :  { %v1834_v22 = vrot.slane %v5780_v28, 2 }
0x138f   :  { %v1833_v17 = vrot.slane %v5784_v6, 3 }
0x1390   :  { %v1738_v15 = vpop.permute.xlu1 %1737 }
0x1391   :  { %v5789_v47 = vmul.f32 %v4741_v18, %v1738_v15  ;;  %v1835_v50 = vsel %vm6536_vm9, %v1834_v22, %v1833_v17 }
0x1392   :  { %1836 = vrot.lane.b32.xlu1 %v1835_v50, %s5197_s3 }
0x1393   :  { %v1829_v31 = vsel %vm6536_vm9, %v1827_v30, %v5789_v47  ;;  %vm6544_vm9 = vcmask 520452  }
0x1394   :  { %1830 = vrot.lane.b32.xlu0 %v1829_v31, %s5198_s4 }
0x1404   :  { %v1837_v39 = vpop.permute.xlu1 %1836 }
0x1406   :  { %v1831_v27 = vpop.permute.xlu0 %1830 }
0x1407   :  { %v1839_v3 = vsel %vm6542_vm2, %v1831_v27, %v1837_v39  ;;  %vm1824_vm2 = vcmask 517377  }
0x1408   :  { %v1841_v10 = vrot.slane %v1839_v3, 6 }
0x140a   :  { %4141 = vmatmul.mubr.msk.f32.vlgmr.msra.gmra.mrb[10].mxu0 %vm232_vm3, %v1841_v10 }
0x140b   :  { %2251 = vmatprep.mubr.f32.mxu0 %v5196_v0 }
0x14dd   :  { %v1910_v18 = vpop.f32.mrb[10].mxu0 }
0x14de   :  { %v1916_v11 = vrot.slane %v1910_v18, 1  ;;  %v1917_v42 = vrot.slane %v1910_v18, 2  ;;  %v1912_v12 = vpop.f32.mrb[11].mxu0 }
0x14df   :  { %v1991_v20 = vadd.f32 %v1912_v12, %v5405_v52  ;;  %v1988_v38 = vrot.slane %v1912_v12, 1 }
0x14e0   :  { %v1920_v21 = vadd.f32 %v1916_v11, %v5409_v55  ;;  %v1921_v53 = vadd.f32 %v1917_v42, %v5398_v43 }
0x14e1   :  { %4750 = vtanh.f32 %v1991_v20  ;;  %v1992_v1 = vadd.f32 %v1988_v38, %v5402_v49  ;;  %v4144_v55 = vmul.f32 -1.442695, %v1991_v20 }
0x14e2   :  { %4752 = vtanh.f32 %v1920_v21  ;;  %v4142_v9 = vmul.f32 -1.442695, %v1920_v21  ;;  %v4143_v43 = vmul.f32 -1.442695, %v1921_v53 }
0x14e3   :  { %4754 = vtanh.f32 %v1921_v53  ;;  %v4145_v49 = vmul.f32 -1.442695, %v1992_v1 }
0x14e4   :  { %4756 = vtanh.f32 %v1992_v1 }
0x14e5   :  { %4758 = vpow2.f32 %v4144_v55 }
0x14e6   :  { %4760 = vpow2.f32 %v4142_v9 }
0x14e7   :  { %4762 = vpow2.f32 %v4143_v43 }
0x14e8   :  { %4764 = vpow2.f32 %v4145_v49  ;;  %v1939_v49 = vrot.slane %v5762_v51, 7 }
0x14eb   :  { %v4751_v2 = vpop.eup %4750 }
0x14ec   :  { %v4753_v60 = vpop.eup %4752  ;;  %2017 = vrot.lane.b32.xlu1 %v4751_v2, %s5197_s3  ;;  %v2009_v2 = vrot.slane %v5769_v14, 1 }
0x14ed   :  { %1946 = vrot.lane.b32.xlu0 %v4753_v60, %s5197_s3  ;;  %v4755_v36 = vpop.eup %4754  ;;  %v1938_v60 = vrot.slane %v5773_v25, 7 }
0x14ee   :  { %v4757_v52 = vpop.eup %4756 }
0x14ef   :  { %v4759_v16 = vpop.eup %4758 }
0x14f0   :  { %2019 = vrot.lane.b32.xlu1 %v4757_v52, %s5197_s3  ;;  %v4761_v22 = vpop.eup %4760  ;;  %v1999_v17 = vadd.f32 1.0, %v4759_v16 }
0x14f1   :  { %1948 = vrot.lane.b32.xlu0 %v4755_v36, %s5197_s3  ;;  %v1928_v15 = vadd.f32 1.0, %v4761_v22  ;;  %v4763_v30 = vpop.eup %4762 }
0x14f2   :  { %v4765_v50 = vpop.eup %4764  ;;  %4766 = vrcp.f32 %v1999_v17  ;;  %v1929_v31 = vadd.f32 1.0, %v4763_v30 }
0x14f3   :  { %4768 = vrcp.f32 %v1928_v15  ;;  %v2000_v39 = vadd.f32 1.0, %v4765_v50 }
0x14f4   :  { %4770 = vrcp.f32 %v1929_v31 }
0x14f5   :  { %4772 = vrcp.f32 %v2000_v39 }
0x14fc   :  { %v5807_v27 = vpop.eup %4766 }
0x14fd   :  { %v5809_v10 = vpop.eup %4768  ;;  %v2013_v36 = vmul.f32 %v5807_v27, %v2009_v2  ;;  %v2070_v2 = vld [vmem:[#allocation8 + $0x50] sm:$0xff] }
0x14fe   :  { %v5815_v12 = vpop.eup %4770  ;;  %v1942_v55 = vmul.f32 %v5809_v10, %v1938_v60 }
0x14ff   :  { %v5818_v38 = vpop.eup %4772 }
0x155e   :  { %v2018_v3 = vpop.permute.xlu1 %2017 }
0x155f   :  { %v2023_v18 = vmul.f32 %v5807_v27, %v2018_v3  ;;  %v1947_v11 = vpop.permute.xlu0 %1946  ;;  %v2080_v3 = vld [vmem:[#allocation10 + $0x20] sm:$0xff] }
0x1560   :  { %v1952_v42 = vmul.f32 %v5809_v10, %v1947_v11 }
0x1561   :  { %2027 = vrot.lane.b32.xlu1 %v2023_v18, %s5198_s4  ;;  %v2082_v18 = vld [vmem:[#allocation10 + $0x30] sm:$0xff] }
0x1562   :  { %1956 = vrot.lane.b32.xlu0 %v1952_v42, %s5198_s4  ;;  %v2020_v53 = vpop.permute.xlu1 %2019  ;;  %v5894_v11 = vpack.c.bf16 %v2082_v18, %v2080_v3  ;;  %v2071_v42 = vld [vmem:[#allocation8 + $0x58] sm:$0xff] }
0x1563   :  { %v1949_v20 = vpop.permute.xlu0 %1948  ;;  %v2024_v1 = vmul.f32 %v5818_v38, %v2020_v53  ;;  %v2087_v53 = vld [vmem:[#allocation10 + $0x58] sm:$0xff] }
0x1564   :  { %v1953_v21 = vmul.f32 %v5815_v12, %v1949_v20  ;;  %v2085_v20 = vld [vmem:[#allocation10 + $0x48] sm:$0xff] }
0x1565   :  { %2029 = vrot.lane.b32.xlu1 %v2024_v1, %s5198_s4  ;;  %v2068_v1 = vld [vmem:[#allocation8 + $0x40] sm:$0xff] }
0x1566   :  { %1958 = vrot.lane.b32.xlu0 %v1953_v21, %s5198_s4  ;;  %v4363_v60 = vpack.c.bf16 %v2070_v2, %v2068_v1 }
0x1569   :  { %429 = vrot.lane.b32.xlu1 %v5436_v56, %s5197_s3  ;;  %v1943_v56 = vmul.f32 %v5815_v12, %v1939_v49  ;;  %v2072_v49 = vld [vmem:[#allocation8 + $0x60] sm:$0xff] }
0x156a   :  { %363 = vrot.lane.b32.xlu0 %v5445_v63, %s5198_s4  ;;  %v2010_v63 = vrot.slane %v5766_v4, 1 }
0x156c   :  { %v2014_v14 = vmul.f32 %v5818_v38, %v2010_v63 }
0x15d3   :  { %v2028_v52 = vpop.permute.xlu1 %2027 }
0x15d4   :  { %v2033_v9 = vadd.f32 %v2028_v52, %v2013_v36  ;;  %v1957_v43 = vpop.permute.xlu0 %1956  ;;  %v2084_v36 = vld [vmem:[#allocation10 + $0x40] sm:$0xff] }
0x15d5   :  { %v1962_v16 = vadd.f32 %v1957_v43, %v1942_v55  ;;  %v2089_v55 = vld [vmem:[#allocation10 + $0x68] sm:$0xff]  ;;  %v2091_v43 = vld [vmem:[#allocation10 + $0x78] sm:$0xff] }
0x15d6   :  { %4774 = vtanh.f32 %v2033_v9  ;;  %v5911_v63 = vpack.c.bf16 %v2091_v43, %v2089_v55 }
0x15d7   :  { %4776 = vtanh.f32 %v1962_v16  ;;  %v2030_v17 = vpop.permute.xlu1 %2029  ;;  %v2074_v16 = vld [vmem:[#allocation8 + $0x70] sm:$0xff] }
0x15d8   :  { %v1959_v22 = vpop.permute.xlu0 %1958  ;;  %v2034_v15 = vadd.f32 %v2030_v17, %v2014_v14  ;;  %v2090_v14 = vld [vmem:[#allocation10 + $0x70] sm:$0xff] }
0x15d9   :  { %v1963_v25 = vadd.f32 %v1959_v22, %v1943_v56  ;;  %v4367_v56 = vpack.c.bf16 %v2074_v16, %v2072_v49  ;;  %v2088_v22 = vld [vmem:[#allocation10 + $0x60] sm:$0xff] }
0x15da   :  { %v5913_v17 = vpack.c.bf16 %v2090_v14, %v2088_v22 }
0x15db   :  { %4778 = vtanh.f32 %v1963_v25  ;;  %v430_v51 = vpop.permute.xlu1 %429 }
0x15dc   :  { %v364_v30 = vpop.permute.xlu0 %363  ;;  %4780 = vtanh.f32 %v2034_v15  ;;  %436 = vst.msk [vmem:[#allocation2] sm:$0x80] %vm435_vm11, %v430_v51 }
0x15dd   :  { %370 = vst.msk [vmem:[#allocation2] sm:$0x1] %vm369_vm10, %v364_v30 }
0x15e0   :  { %v4775_v4 = vpop.eup %4774 }
0x15e1   :  { %v4777_v50 = vpop.eup %4776  ;;  %2039 = vrot.lane.b32.xlu1 %v4775_v4, %s5197_s3 }
0x15e2   :  { %1968 = vrot.lane.b32.xlu0 %v4777_v50, %s5197_s3 }
0x15e5   :  { %v4779_v31 = vpop.eup %4778 }
0x15e6   :  { %1970 = vrot.lane.b32.xlu0 %v4779_v31, %s5197_s3  ;;  %v4781_v39 = vpop.eup %4780 }
0x15e7   :  { %2041 = vrot.lane.b32.xlu1 %v4781_v39, %s5197_s3 }
0x15ea   :  { %588 = vrot.lane.b32.xlu0 %v5504_v44, %s5198_s4  ;;  %v2077_v44 = vld [vmem:[#allocation10 + $0x8] sm:$0xff] }
0x15eb   :  { %660 = vrot.lane.b32.xlu1 %v5497_v29, %s5197_s3  ;;  %v2061_v29 = vld [vmem:[#allocation8 + $0x8] sm:$0xff] }
0x15ee   :  { %820 = vrot.lane.b32.xlu0 %v5563_v46, %s5198_s4  ;;  %v2062_v46 = vld [vmem:[#allocation8 + $0x10] sm:$0xff] }
0x15ef   :  { %892 = vrot.lane.b32.xlu1 %v5556_v45, %s5197_s3  ;;  %v2060_v45 = vld [vmem:[#allocation8] sm:$0xff] }
0x15f2   :  { %1052 = vrot.lane.b32.xlu0 %v5616_v48, %s5198_s4  ;;  %v4355_v48 = vpack.c.bf16 %v2062_v46, %v2060_v45 }
0x15f3   :  { %1124 = vrot.lane.b32.xlu1 %v5618_v35, %s5197_s3  ;;  %v2078_v35 = vld [vmem:[#allocation10 + $0x10] sm:$0xff] }
0x15f6   :  { %1283 = vrot.lane.b32.xlu0 %v5680_v19, %s5198_s4  ;;  %v2081_v19 = vld [vmem:[#allocation10 + $0x28] sm:$0xff] }
0x15f7   :  { %1355 = vrot.lane.b32.xlu1 %v5673_v62, %s5197_s3  ;;  %v2065_v62 = vld [vmem:[#allocation8 + $0x28] sm:$0xff] }
0x15fa   :  { %1515 = vrot.lane.b32.xlu0 %v5738_v8, %s5198_s4 }
0x15fb   :  { %1587 = vrot.lane.b32.xlu1 %v5731_v7, %s5197_s3  ;;  %v2083_v7 = vld [vmem:[#allocation10 + $0x38] sm:$0xff] }
0x15fc   :  { %v5888_v8 = vpack.c.bf16 %v2083_v7, %v2081_v19 }
0x15fe   :  { %1747 = vrot.lane.b32.xlu0 %v5789_v47, %s5198_s4  ;;  %v2066_v47 = vld [vmem:[#allocation8 + $0x30] sm:$0xff] }
0x15ff   :  { %1818 = vrot.lane.b32.xlu1 %v5784_v6, %s5197_s3  ;;  %v2064_v6 = vld [vmem:[#allocation8 + $0x20] sm:$0xff] }
0x1602   :  { %365 = vrot.lane.b32.xlu0 %v5438_v57, %s5198_s4  ;;  %v2063_v57 = vld [vmem:[#allocation8 + $0x18] sm:$0xff] }
0x1603   :  { %431 = vrot.lane.b32.xlu1 %v5440_v58, %s5197_s3  ;;  %v4353_v58 = vpack.c.bf16 %v2063_v57, %v2061_v29 }
0x1605   :  { %4354 = vmatprep.subr.bf16.mxu1 %v4353_v58 }
0x1606   :  { %590 = vrot.lane.b32.xlu0 %v5495_v26, %s5198_s4  ;;  %v2079_v26 = vld [vmem:[#allocation10 + $0x18] sm:$0xff]  ;;  %4356 = vmatpush1.bf16.msra.mxu1 %v4355_v48 }
0x1607   :  { %662 = vrot.lane.b32.xlu1 %v5499_v33, %s5197_s3  ;;  %v5881_v33 = vpack.c.bf16 %v2079_v26, %v2077_v44 }
0x1609   :  { %4370 = vmatprep.subr.bf16.mxu0 %v5881_v33 }
0x160a   :  { %822 = vrot.lane.b32.xlu0 %v5554_v41, %s5198_s4  ;;  %v2076_v41 = vld [vmem:[#allocation10] sm:$0xff] }
0x160b   :  { %894 = vrot.lane.b32.xlu1 %v5558_v24, %s5197_s3  ;;  %v5885_v24 = vpack.c.bf16 %v2078_v35, %v2076_v41 }
0x160d   :  { %4372 = vmatpush1.bf16.msra.mxu0 %v5885_v24 }
0x160e   :  { %1054 = vrot.lane.b32.xlu0 %v5613_v23, %s5198_s4  ;;  %v2067_v23 = vld [vmem:[#allocation8 + $0x38] sm:$0xff]  ;;  %4374 = vmatprep.subr.bf16.mxu0 %v5888_v8 }
0x160f   :  { %1126 = vrot.lane.b32.xlu1 %v5624_v54, %s5197_s3  ;;  %v4357_v54 = vpack.c.bf16 %v2067_v23, %v2065_v62 }
0x1611   :  { %4358 = vmatprep.subr.bf16.mxu1 %v4357_v54  ;;  %4376 = vmatpush1.bf16.msra.mxu0 %v5894_v11 }
0x1612   :  { %1285 = vrot.lane.b32.xlu0 %v5671_v61, %s5198_s4  ;;  %v4359_v61 = vpack.c.bf16 %v2066_v47, %v2064_v6 }
0x1613   :  { %1357 = vrot.lane.b32.xlu1 %v5675_v5, %s5197_s3  ;;  %v2069_v5 = vld [vmem:[#allocation8 + $0x48] sm:$0xff] }
0x1614   :  { %4360 = vmatpush1.bf16.msra.mxu1 %v4359_v61  ;;  %v4361_v21 = vpack.c.bf16 %v2071_v42, %v2069_v5 }
0x1616   :  { %1517 = vrot.lane.b32.xlu0 %v5729_v13, %s5198_s4  ;;  %v5905_v13 = vpack.c.bf16 %v2087_v53, %v2085_v20  ;;  %4362 = vmatprep.subr.bf16.mxu1 %v4361_v21 }
0x1617   :  { %1589 = vrot.lane.b32.xlu1 %v5733_v59, %s5197_s3  ;;  %v2086_v59 = vld [vmem:[#allocation10 + $0x50] sm:$0xff] }
0x1618   :  { %v5907_v52 = vpack.c.bf16 %v2086_v59, %v2084_v36  ;;  %4378 = vmatprep.subr.bf16.mxu0 %v5905_v13  ;;  %4364 = vmatpush1.bf16.msra.mxu1 %v4363_v60 }
0x161a   :  { %1749 = vrot.lane.b32.xlu0 %v5782_v32, %s5198_s4  ;;  %v2073_v32 = vld [vmem:[#allocation8 + $0x68] sm:$0xff]  ;;  %4380 = vmatpush1.bf16.msra.mxu0 %v5907_v52 }
0x161b   :  { %1820 = vrot.lane.b32.xlu1 %v5780_v28, %s5197_s3  ;;  %v2075_v28 = vld [vmem:[#allocation8 + $0x78] sm:$0xff]  ;;  %4382 = vmatprep.subr.bf16.mxu0 %v5911_v63 }
0x161c   :  { %v4365_v9 = vpack.c.bf16 %v2075_v28, %v2073_v32  ;;  %v2092_v32 = vld [vmem:[%s6532_s6] sm:$0x3] }
0x161d   :  { %v2097_v28 = vrot.slane %v2092_v32, %v140_v37  ;;  %v2101_v55 = vrot.slane %v2092_v32, %v144_v40 }
0x161e   :  { %4366 = vmatprep.subr.bf16.mxu1 %v4365_v9  ;;  %4384 = vmatpush1.bf16.msra.mxu0 %v5913_v17 }
0x161f   :  { %4368 = vmatpush1.bf16.msra.mxu1 %v4367_v56  ;;  %4402 = vmatprep.subr.bf16.mxu0 %v5881_v33 }
0x1620   :  { %4386 = vmatprep.subr.bf16.mxu1 %v5881_v33 }
0x1621   :  { %2252 = vmatmul.mubr.f32.vlgmr.msra.gmra.mrb[12].mxu0 %v5196_v0 }
0x1622   :  { %4404 = vmatpush1.bf16.msra.mxu0 %v5885_v24  ;;  %2694 = vmatprep.mubr.f32.mxu0 %v5196_v0 }
0x1623   :  { %4406 = vmatprep.subr.bf16.mxu0 %v5888_v8 }
0x1626   :  { %4408 = vmatpush1.bf16.msra.mxu0 %v5894_v11 }
0x1627   :  { %4410 = vmatprep.subr.bf16.mxu0 %v5905_v13 }
0x162a   :  { %4412 = vmatpush1.bf16.msra.mxu0 %v5907_v52 }
0x162b   :  { %4414 = vmatprep.subr.bf16.mxu0 %v5911_v63 }
0x162e   :  { %4416 = vmatpush1.bf16.msra.mxu0 %v5913_v17 }
0x162f   :  { %4434 = vmatprep.subr.bf16.mxu0 %v5881_v33 }
0x1653   :  { %v2040_v25 = vpop.permute.xlu1 %2039 }
0x1654   :  { %v2045_v15 = vmul.f32 %v5807_v27, %v2040_v25  ;;  %v1969_v30 = vpop.permute.xlu0 %1968 }
0x1655   :  { %v1974_v51 = vmul.f32 %v5809_v10, %v1969_v30 }
0x1656   :  { %2049 = vrot.lane.b32.xlu1 %v2045_v15, %s5197_s3 }
0x1657   :  { %1978 = vrot.lane.b32.xlu0 %v1974_v51, %s5198_s4 }
0x1658   :  { %v1971_v4 = vpop.permute.xlu0 %1970 }
0x1659   :  { %v1975_v27 = vmul.f32 %v5815_v12, %v1971_v4  ;;  %v2042_v10 = vpop.permute.xlu1 %2041 }
0x165a   :  { %v2046_v50 = vmul.f32 %v5818_v38, %v2042_v10 }
0x165b   :  { %1980 = vrot.lane.b32.xlu0 %v1975_v27, %s5198_s4 }
0x165c   :  { %v589_v31 = vpop.permute.xlu0 %588  ;;  %2051 = vrot.lane.b32.xlu1 %v2046_v50, %s5197_s3 }
0x165d   :  { %595 = vst.msk [vmem:[#allocation2] sm:$0x2] %vm594_vm12, %v589_v31  ;;  %v661_v12 = vpop.permute.xlu1 %660 }
0x165e   :  { %667 = vst.msk [vmem:[#allocation2] sm:$0x40] %vm666_vm13, %v661_v12 }
0x1660   :  { %v821_v39 = vpop.permute.xlu0 %820 }
0x1661   :  { %827 = vst.msk [vmem:[#allocation2] sm:$0x4] %vm826_vm14, %v821_v39  ;;  %v893_v38 = vpop.permute.xlu1 %892 }
0x1662   :  { %899 = vst.msk [vmem:[#allocation2] sm:$0x20] %vm898_vm15, %v893_v38 }
0x1664   :  { %v1053_v29 = vpop.permute.xlu0 %1052 }
0x1665   :  { %1059 = vst.msk [vmem:[#allocation2] sm:$0x8] %vm6543_vm0, %v1053_v29  ;;  %v1125_v57 = vpop.permute.xlu1 %1124 }
0x1666   :  { %1131 = vst.msk [vmem:[#allocation2] sm:$0x10] %vm6544_vm9, %v1125_v57 }
0x1668   :  { %v1284_v44 = vpop.permute.xlu0 %1283 }
0x1669   :  { %1290 = vst.msk [vmem:[#allocation2] sm:$0x10] %vm1289_vm8, %v1284_v44  ;;  %v1356_v58 = vpop.permute.xlu1 %1355 }
0x166a   :  { %1362 = vst.msk [vmem:[#allocation2] sm:$0x8] %vm1361_vm7, %v1356_v58 }
0x166c   :  { %v1516_v26 = vpop.permute.xlu0 %1515 }
0x166d   :  { %1522 = vst.msk [vmem:[#allocation2] sm:$0x20] %vm1521_vm6, %v1516_v26  ;;  %v1588_v45 = vpop.permute.xlu1 %1587 }
0x166e   :  { %1594 = vst.msk [vmem:[#allocation2] sm:$0x4] %vm1593_vm5, %v1588_v45 }
0x1670   :  { %v1748_v46 = vpop.permute.xlu0 %1747 }
0x1671   :  { %1754 = vst.msk [vmem:[#allocation2] sm:$0x40] %vm1753_vm4, %v1748_v46  ;;  %v1819_v48 = vpop.permute.xlu1 %1818 }
0x1672   :  { %1825 = vst.msk [vmem:[#allocation2] sm:$0x2] %vm1824_vm2, %v1819_v48 }
0x1674   :  { %v366_v41 = vpop.permute.xlu0 %365 }
0x1675   :  { %371 = vst.msk [vmem:[#allocation2 + $0x8] sm:$0x1] %vm369_vm10, %v366_v41  ;;  %v432_v35 = vpop.permute.xlu1 %431 }
0x1676   :  { %437 = vst.msk [vmem:[#allocation2 + $0x8] sm:$0x80] %vm435_vm11, %v432_v35 }
0x1678   :  { %v591_v62 = vpop.permute.xlu0 %590 }
0x1679   :  { %596 = vst.msk [vmem:[#allocation2 + $0x8] sm:$0x2] %vm594_vm12, %v591_v62  ;;  %v663_v23 = vpop.permute.xlu1 %662 }
0x167a   :  { %668 = vst.msk [vmem:[#allocation2 + $0x8] sm:$0x40] %vm666_vm13, %v663_v23 }
0x167c   :  { %v823_v19 = vpop.permute.xlu0 %822 }
0x167d   :  { %828 = vst.msk [vmem:[#allocation2 + $0x8] sm:$0x4] %vm826_vm14, %v823_v19  ;;  %v895_v7 = vpop.permute.xlu1 %894 }
0x167e   :  { %900 = vst.msk [vmem:[#allocation2 + $0x8] sm:$0x20] %vm898_vm15, %v895_v7 }
0x1680   :  { %v1055_v54 = vpop.permute.xlu0 %1054 }
0x1681   :  { %1060 = vst.msk [vmem:[#allocation2 + $0x8] sm:$0x8] %vm6543_vm0, %v1055_v54  ;;  %v1127_v6 = vpop.permute.xlu1 %1126  ;;  %vm6546_vm0 = vcmask 516352  }
0x1682   :  { %1132 = vst.msk [vmem:[#allocation2 + $0x8] sm:$0x10] %vm6544_vm9, %v1127_v6  ;;  %vm6545_vm9 = vcmask 261127  }
0x1684   :  { %v1286_v47 = vpop.permute.xlu0 %1285 }
0x1685   :  { %1291 = vst.msk [vmem:[#allocation2 + $0x8] sm:$0x10] %vm1289_vm8, %v1286_v47  ;;  %v1358_v3 = vpop.permute.xlu1 %1357 }
0x1686   :  { %1363 = vst.msk [vmem:[#allocation2 + $0x8] sm:$0x8] %vm1361_vm7, %v1358_v3 }
0x1688   :  { %v1518_v61 = vpop.permute.xlu0 %1517 }
0x1689   :  { %1523 = vst.msk [vmem:[#allocation2 + $0x8] sm:$0x20] %vm1521_vm6, %v1518_v61  ;;  %v1590_v18 = vpop.permute.xlu1 %1589 }
0x168a   :  { %1595 = vst.msk [vmem:[#allocation2 + $0x8] sm:$0x4] %vm1593_vm5, %v1590_v18 }
0x168c   :  { %v1750_v5 = vpop.permute.xlu0 %1749 }
0x168d   :  { %1755 = vst.msk [vmem:[#allocation2 + $0x8] sm:$0x40] %vm1753_vm4, %v1750_v5  ;;  %v1821_v42 = vpop.permute.xlu1 %1820 }
0x168e   :  { %1826 = vst.msk [vmem:[#allocation2 + $0x8] sm:$0x2] %vm1824_vm2, %v1821_v42 }
0x16c8   :  { %v2050_v20 = vpop.permute.xlu1 %2049 }
0x16c9   :  { %2056 = vst.msk [vmem:[#allocation2] sm:$0x1] %vm6546_vm0, %v2050_v20  ;;  %v1979_v21 = vpop.permute.xlu0 %1978 }
0x16ca   :  { %1985 = vst.msk [vmem:[#allocation2] sm:$0x80] %vm6545_vm9, %v1979_v21 }
0x16cd   :  { %v1981_v53 = vpop.permute.xlu0 %1980 }
0x16ce   :  { %1986 = vst.msk [vmem:[#allocation2 + $0x8] sm:$0x80] %vm6545_vm9, %v1981_v53  ;;  %v2052_v1 = vpop.permute.xlu1 %2051  ;;  %vm6547_vm9 = vcmask 261120  }
0x16cf   :  { %2057 = vst.msk [vmem:[#allocation2 + $0x8] sm:$0x1] %vm6546_vm0, %v2052_v1  ;;  %vm6550_vm0 = vcmask 261120  }
0x16d1   :  { %v2058_v2 = vld [vmem:[#allocation2] sm:$0xff] }
0x16d2   :  { %4146 = vmatmul.mubr.msk.f32.vlgmr.msra.gmra.mrb[8].mxu1 %vm232_vm3, %v2058_v2 }
0x16d3   :  { %2180 = vmatprep.mubr.f32.mxu1 %v5196_v0  ;;  %4388 = vmatpush1.bf16.msra.mxu1 %v5885_v24 }
0x16d4   :  { %4390 = vmatprep.subr.bf16.mxu1 %v5888_v8 }
0x16d6   :  { %v2059_v60 = vld [vmem:[#allocation2 + $0x8] sm:$0xff] }
0x16d7   :  { %4392 = vmatpush1.bf16.msra.mxu1 %v5894_v11 }
0x16d8   :  { %4147 = vmatmul.mubr.msk.f32.gmra.mrb[10].mxu1 %vm232_vm3, %v2059_v60  ;;  %4394 = vmatprep.subr.bf16.mxu1 %v5905_v13 }
0x16d9   :  { %2466 = vmatprep.mubr.f32.mxu1 %v5196_v0 }
0x16db   :  { %4396 = vmatpush1.bf16.msra.mxu1 %v5907_v52 }
0x16dc   :  { %4398 = vmatprep.subr.bf16.mxu1 %v5911_v63 }
0x16df   :  { %4400 = vmatpush1.bf16.msra.mxu1 %v5913_v17 }
0x16e0   :  { %4418 = vmatprep.subr.bf16.mxu1 %v5881_v33 }
0x16f4   :  { %v2253_v36 = vpop.f32.mrb[12].mxu0 }
0x16f5   :  { %v2255_v59 = vpop.f32.mrb[13].mxu0  ;;  %v2259_v14 = vrot.slane %v2253_v36, 1 }
0x16f6   :  { %v2323_v43 = vrot.slane %v2255_v59, 1  ;;  %v2324_v30 = vrot.slane %v2255_v59, 2 }
0x17a5   :  { %v2176_v9 = vpop.f32.mrb[8].mxu1 }
0x17a6   :  { %v2178_v49 = vpop.f32.mrb[9].mxu1  ;;  %v5986_v16 = vadd.f32 %v2176_v9, %v2097_v28 }
0x17a7   :  { %v5988_v56 = vadd.f32 %v2178_v49, %v2101_v55 }
0x17a8   :  { %v2262_v25 = vadd.f32 %v2253_v36, %v5986_v16 }
0x17a9   :  { %v2327_v22 = vadd.f32 %v2323_v43, %v5988_v56 }
0x17aa   :  { %v4148_v39 = vmul.f32 -1.442695, %v2262_v25 }
0x17ab   :  { %4782 = vtanh.f32 %v2327_v22  ;;  %v2182_v15 = vpop.f32.mrb[10].mxu1  ;;  %v4150_v12 = vmul.f32 -1.442695, %v2327_v22 }
0x17ac   :  { %v5992_v51 = vadd.f32 %v2182_v15, %v2097_v28  ;;  %v2184_v37 = vpop.f32.mrb[11].mxu1  ;;  %4784 = vtanh.f32 %v2262_v25 }
0x17ad   :  { %v5994_v34 = vadd.f32 %v2184_v37, %v2101_v55 }
0x17ae   :  { %v2263_v40 = vadd.f32 %v2259_v14, %v5992_v51 }
0x17af   :  { %v2328_v4 = vadd.f32 %v2324_v30, %v5994_v34 }
0x17b0   :  { %4786 = vtanh.f32 %v2263_v40  ;;  %v4149_v38 = vmul.f32 -1.442695, %v2263_v40 }
0x17b1   :  { %4788 = vtanh.f32 %v2328_v4  ;;  %v4151_v29 = vmul.f32 -1.442695, %v2328_v4 }
0x17b2   :  { %4790 = vpow2.f32 %v4150_v12 }
0x17b3   :  { %4792 = vpow2.f32 %v4148_v39 }
0x17b4   :  { %4794 = vpow2.f32 %v4149_v38 }
0x17b5   :  { %v4783_v27 = vpop.eup %4782  ;;  %4796 = vpow2.f32 %v4151_v29 }
0x17b6   :  { %2347 = vrot.lane.b32.xlu1 %v4783_v27, %s5197_s3  ;;  %v4785_v10 = vpop.eup %4784 }
0x17ba   :  { %v4787_v50 = vpop.eup %4786  ;;  %2282 = vrot.lane.b32.xlu1 %v4785_v10, %s5197_s3 }
0x17bb   :  { %2284 = vrot.lane.b32.xlu0 %v4787_v50, %s5197_s3  ;;  %v4789_v31 = vpop.eup %4788 }
0x17bc   :  { %v4791_v57 = vpop.eup %4790 }
0x17bd   :  { %v2335_v44 = vadd.f32 1.0, %v4791_v57  ;;  %v4793_v58 = vpop.eup %4792 }
0x17be   :  { %v4795_v26 = vpop.eup %4794  ;;  %v2270_v45 = vadd.f32 1.0, %v4793_v58 }
0x17bf   :  { %2349 = vrot.lane.b32.xlu0 %v4789_v31, %s5197_s3  ;;  %4798 = vrcp.f32 %v2335_v44  ;;  %v2271_v46 = vadd.f32 1.0, %v4795_v26  ;;  %v4797_v48 = vpop.eup %4796 }
0x17c0   :  { %4800 = vrcp.f32 %v2270_v45  ;;  %v2336_v41 = vadd.f32 1.0, %v4797_v48 }
0x17c1   :  { %4802 = vrcp.f32 %v2271_v46 }
0x17c2   :  { %4804 = vrcp.f32 %v2336_v41 }
0x17c9   :  { %v4799_v35 = vpop.eup %4798 }
0x17ca   :  { %v4801_v19 = vpop.eup %4800  ;;  %v2343_v42 = vmul.f32 0.0, %v4799_v35 }
0x17cb   :  { %v4803_v54 = vpop.eup %4802  ;;  %v2278_v53 = vmul.f32 0.0, %v4801_v19 }
0x17cc   :  { %v4805_v61 = vpop.eup %4804  ;;  %v2279_v1 = vmul.f32 0.0, %v4803_v54 }
0x17cd   :  { %v2344_v32 = vmul.f32 0.0, %v4805_v61 }
0x1828   :  { %v2348_v62 = vpop.permute.xlu1 %2347 }
0x1829   :  { %v2353_v23 = vmul.f32 %v4799_v35, %v2348_v62 }
0x182b   :  { %2357 = vrot.lane.b32.xlu1 %v2353_v23, %s5198_s4 }
0x182c   :  { %v2283_v7 = vpop.permute.xlu1 %2282 }
0x182d   :  { %v2285_v6 = vpop.permute.xlu0 %2284  ;;  %v2288_v47 = vmul.f32 %v4801_v19, %v2283_v7 }
0x182e   :  { %v2289_v3 = vmul.f32 %v4803_v54, %v2285_v6 }
0x182f   :  { %2292 = vrot.lane.b32.xlu1 %v2288_v47, %s5198_s4 }
0x1830   :  { %2294 = vrot.lane.b32.xlu0 %v2289_v3, %s5198_s4 }
0x1831   :  { %v2350_v18 = vpop.permute.xlu0 %2349 }
0x1832   :  { %v2354_v5 = vmul.f32 %v4805_v61, %v2350_v18 }
0x1834   :  { %2359 = vrot.lane.b32.xlu0 %v2354_v5, %s5198_s4 }
0x189d   :  { %v2358_v20 = vpop.permute.xlu1 %2357 }
0x189e   :  { %v6006_v21 = vadd.f32 %v2358_v20, %v2343_v42 }
0x18a0   :  { %4806 = vtanh.f32 %v6006_v21 }
0x18a1   :  { %v2293_v2 = vpop.permute.xlu1 %2292 }
0x18a2   :  { %v2295_v60 = vpop.permute.xlu0 %2294  ;;  %v6009_v36 = vadd.f32 %v2293_v2, %v2278_v53 }
0x18a3   :  { %v6011_v59 = vadd.f32 %v2295_v60, %v2279_v1 }
0x18a4   :  { %4808 = vtanh.f32 %v6009_v36 }
0x18a5   :  { %4810 = vtanh.f32 %v6011_v59 }
0x18a6   :  { %v2360_v28 = vpop.permute.xlu0 %2359 }
0x18a7   :  { %v6015_v55 = vadd.f32 %v2360_v28, %v2344_v32 }
0x18a9   :  { %4812 = vtanh.f32 %v6015_v55 }
0x18aa   :  { %v4807_v9 = vpop.eup %4806 }
0x18ab   :  { %2369 = vrot.lane.b32.xlu1 %v4807_v9, %s5197_s3 }
0x18ae   :  { %v4809_v43 = vpop.eup %4808 }
0x18af   :  { %v4811_v49 = vpop.eup %4810  ;;  %2304 = vrot.lane.b32.xlu1 %v4809_v43, %s5197_s3 }
0x18b0   :  { %2306 = vrot.lane.b32.xlu0 %v4811_v49, %s5197_s3 }
0x18b3   :  { %v4813_v22 = vpop.eup %4812 }
0x18b4   :  { %2371 = vrot.lane.b32.xlu0 %v4813_v22, %s5197_s3 }
0x191d   :  { %v2370_v14 = vpop.permute.xlu1 %2369 }
0x191e   :  { %v6026_v40 = vmul.f32 %v4799_v35, %v2370_v14 }
0x1920   :  { %v2392_v31 = vrot.slane %v6026_v40, 7 }
0x1921   :  { %v2305_v25 = vpop.permute.xlu1 %2304 }
0x1922   :  { %v2307_v15 = vpop.permute.xlu0 %2306  ;;  %v6024_v37 = vmul.f32 %v4801_v19, %v2305_v25 }
0x1923   :  { %v6022_v30 = vmul.f32 %v4803_v54, %v2307_v15 }
0x1925   :  { %v2387_v4 = vrot.slane %v6022_v30, 7 }
0x1926   :  { %v2372_v27 = vpop.permute.xlu0 %2371 }
0x1927   :  { %v6029_v10 = vmul.f32 %v4805_v61, %v2372_v27  ;;  %v2388_v50 = vsel %vm439_vm1, %v2387_v4, %v6024_v37 }
0x1928   :  { %2389 = vrot.lane.b32.xlu0 %v2388_v50, %s5198_s4 }
0x1929   :  { %v2393_v12 = vrot.slane %v6029_v10, 6 }
0x192b   :  { %v2394_v39 = vsel %vm439_vm1, %v2393_v12, %v2392_v31  ;;  %v2496_v31 = vrot.slane %v6011_v59, 7  ;;  %vm6548_vm1 = vcmask 1042434  }
0x192c   :  { %2395 = vrot.lane.b32.xlu1 %v2394_v39, %s5197_s3 }
0x199a   :  { %v2390_v38 = vpop.permute.xlu0 %2389 }
0x199e   :  { %v2396_v29 = vpop.permute.xlu1 %2395 }
0x199f   :  { %v2398_v57 = vsel %vm6547_vm9, %v2390_v38, %v2396_v29  ;;  %v2566_v29 = vrot.slane %v6006_v21, 1  ;;  %vm6549_vm9 = vmmov %vm6548_vm1 }
0x19a0   :  { %4152 = vmatmul.mubr.msk.f32.vlgmr.msra.gmra.mrb[12].mxu1 %vm232_vm3, %v2398_v57  ;;  %v2567_v57 = vrot.slane %v6015_v55, 1 }
0x19a1   :  { %4420 = vmatpush1.bf16.msra.mxu1 %v5885_v24  ;;  %2923 = vmatprep.mubr.f32.mxu1 %v5196_v0 }
0x19a2   :  { %4422 = vmatprep.subr.bf16.mxu1 %v5888_v8 }
0x19a5   :  { %4424 = vmatpush1.bf16.msra.mxu1 %v5894_v11 }
0x19a6   :  { %4426 = vmatprep.subr.bf16.mxu1 %v5905_v13 }
0x19a9   :  { %4428 = vmatpush1.bf16.msra.mxu1 %v5907_v52 }
0x19aa   :  { %4430 = vmatprep.subr.bf16.mxu1 %v5911_v63 }
0x19ad   :  { %4432 = vmatpush1.bf16.msra.mxu1 %v5913_v17 }
0x19ae   :  { %4450 = vmatprep.subr.bf16.mxu1 %v5881_v33 }
0x1a73   :  { %v2468_v44 = vpop.f32.mrb[12].mxu1 }
0x1a74   :  { %v2478_v58 = vadd.f32 %v2468_v44, %v5992_v51  ;;  %v2470_v26 = vpop.f32.mrb[13].mxu1  ;;  %v2474_v48 = vrot.slane %v2468_v44, 7 }
0x1a75   :  { %v2544_v45 = vrot.slane %v2470_v26, 2  ;;  %v2545_v46 = vrot.slane %v2470_v26, 3 }
0x1a76   :  { %4814 = vtanh.f32 %v2478_v58  ;;  %v2477_v62 = vadd.f32 %v2474_v48, %v5986_v16  ;;  %v4154_v6 = vmul.f32 -1.442695, %v2478_v58 }
0x1a77   :  { %v2548_v41 = vadd.f32 %v2544_v45, %v5988_v56  ;;  %v2549_v35 = vadd.f32 %v2545_v46, %v5994_v34  ;;  %v2495_v45 = vrot.slane %v6009_v36, 7 }
0x1a78   :  { %v4153_v61 = vmul.f32 -1.442695, %v2477_v62 }
0x1a79   :  { %4816 = vtanh.f32 %v2548_v41  ;;  %v4155_v47 = vmul.f32 -1.442695, %v2548_v41  ;;  %v4156_v3 = vmul.f32 -1.442695, %v2549_v35 }
0x1a7a   :  { %4818 = vtanh.f32 %v2549_v35 }
0x1a7b   :  { %4820 = vtanh.f32 %v2477_v62 }
0x1a7c   :  { %4822 = vpow2.f32 %v4154_v6 }
0x1a7d   :  { %4824 = vpow2.f32 %v4155_v47 }
0x1a7e   :  { %4826 = vpow2.f32 %v4156_v3 }
0x1a7f   :  { %4828 = vpow2.f32 %v4153_v61 }
0x1a80   :  { %v4815_v23 = vpop.eup %4814 }
0x1a81   :  { %2505 = vrot.lane.b32.xlu0 %v4815_v23, %s5197_s3 }
0x1a83   :  { %v4817_v19 = vpop.eup %4816 }
0x1a84   :  { %v4819_v7 = vpop.eup %4818  ;;  %2574 = vrot.lane.b32.xlu1 %v4817_v19, %s5197_s3 }
0x1a85   :  { %2576 = vrot.lane.b32.xlu0 %v4819_v7, %s5197_s3  ;;  %v4821_v54 = vpop.eup %4820 }
0x1a86   :  { %v4823_v18 = vpop.eup %4822 }
0x1a87   :  { %v2486_v5 = vadd.f32 1.0, %v4823_v18  ;;  %v4825_v42 = vpop.eup %4824 }
0x1a88   :  { %2503 = vrot.lane.b32.xlu1 %v4821_v54, %s5197_s3  ;;  %v4827_v20 = vpop.eup %4826  ;;  %v2556_v53 = vadd.f32 1.0, %v4825_v42 }
0x1a89   :  { %4830 = vrcp.f32 %v2486_v5  ;;  %v4829_v1 = vpop.eup %4828  ;;  %v2557_v2 = vadd.f32 1.0, %v4827_v20 }
0x1a8a   :  { %v2485_v60 = vadd.f32 1.0, %v4829_v1  ;;  %4832 = vrcp.f32 %v2556_v53 }
0x1a8b   :  { %4834 = vrcp.f32 %v2557_v2 }
0x1a8c   :  { %4836 = vrcp.f32 %v2485_v60 }
0x1a93   :  { %v4831_v32 = vpop.eup %4830 }
0x1a94   :  { %v4833_v43 = vpop.eup %4832  ;;  %v2500_v12 = vmul.f32 %v4831_v32, %v2496_v31 }
0x1a95   :  { %v4835_v22 = vpop.eup %4834  ;;  %v2570_v44 = vmul.f32 %v4833_v43, %v2566_v29 }
0x1a96   :  { %v4837_v4 = vpop.eup %4836  ;;  %v2571_v26 = vmul.f32 %v4835_v22, %v2567_v57 }
0x1a97   :  { %v2499_v59 = vmul.f32 %v4837_v4, %v2495_v45 }
0x1af3   :  { %v2506_v28 = vpop.permute.xlu0 %2505 }
0x1af4   :  { %v2510_v9 = vmul.f32 %v4831_v32, %v2506_v28 }
0x1af6   :  { %2515 = vrot.lane.b32.xlu0 %v2510_v9, %s5198_s4  ;;  %v2575_v49 = vpop.permute.xlu1 %2574 }
0x1af7   :  { %v2580_v14 = vmul.f32 %v4833_v43, %v2575_v49  ;;  %v2577_v25 = vpop.permute.xlu0 %2576 }
0x1af8   :  { %v2581_v15 = vmul.f32 %v4835_v22, %v2577_v25 }
0x1af9   :  { %2584 = vrot.lane.b32.xlu1 %v2580_v14, %s5198_s4 }
0x1afa   :  { %2586 = vrot.lane.b32.xlu0 %v2581_v15, %s5198_s4  ;;  %v2504_v27 = vpop.permute.xlu1 %2503 }
0x1afb   :  { %v2509_v50 = vmul.f32 %v4837_v4, %v2504_v27 }
0x1afd   :  { %2513 = vrot.lane.b32.xlu1 %v2509_v50, %s5198_s4 }
0x1b68   :  { %v2516_v39 = vpop.permute.xlu0 %2515 }
0x1b69   :  { %v6062_v38 = vadd.f32 %v2516_v39, %v2500_v12 }
0x1b6b   :  { %4838 = vtanh.f32 %v6062_v38  ;;  %v2585_v58 = vpop.permute.xlu1 %2584 }
0x1b6c   :  { %v6068_v46 = vadd.f32 %v2585_v58, %v2570_v44  ;;  %v2587_v48 = vpop.permute.xlu0 %2586 }
0x1b6d   :  { %v6070_v41 = vadd.f32 %v2587_v48, %v2571_v26 }
0x1b6e   :  { %4840 = vtanh.f32 %v6068_v46 }
0x1b6f   :  { %4842 = vtanh.f32 %v6070_v41  ;;  %v2514_v35 = vpop.permute.xlu1 %2513 }
0x1b70   :  { %v6074_v62 = vadd.f32 %v2514_v35, %v2499_v59 }
0x1b72   :  { %4844 = vtanh.f32 %v6074_v62 }
0x1b75   :  { %v4839_v21 = vpop.eup %4838 }
0x1b76   :  { %2527 = vrot.lane.b32.xlu0 %v4839_v21, %s5197_s3 }
0x1b78   :  { %v4841_v55 = vpop.eup %4840 }
0x1b79   :  { %v4843_v36 = vpop.eup %4842  ;;  %2596 = vrot.lane.b32.xlu1 %v4841_v55, %s5197_s3 }
0x1b7a   :  { %2598 = vrot.lane.b32.xlu0 %v4843_v36, %s5197_s3 }
0x1b7c   :  { %v4845_v23 = vpop.eup %4844 }
0x1b7d   :  { %2525 = vrot.lane.b32.xlu1 %v4845_v23, %s5197_s3 }
0x1be8   :  { %v2528_v19 = vpop.permute.xlu0 %2527 }
0x1be9   :  { %v6081_v54 = vmul.f32 %v4831_v32, %v2528_v19 }
0x1beb   :  { %v2597_v7 = vpop.permute.xlu1 %2596  ;;  %v2614_v42 = vrot.slane %v6081_v54, 7 }
0x1bec   :  { %v6083_v6 = vmul.f32 %v4833_v43, %v2597_v7  ;;  %v2599_v47 = vpop.permute.xlu0 %2598 }
0x1bed   :  { %v6085_v3 = vmul.f32 %v4835_v22, %v2599_v47 }
0x1bee   :  { %v2619_v61 = vrot.slane %v6083_v6, 5 }
0x1bef   :  { %v2620_v18 = vrot.slane %v6085_v3, 4  ;;  %v2526_v5 = vpop.permute.xlu1 %2525 }
0x1bf0   :  { %v6090_v20 = vmul.f32 %v4837_v4, %v2526_v5 }
0x1bf1   :  { %v2621_v53 = vsel %vm6548_vm1, %v2620_v18, %v2619_v61 }
0x1bf2   :  { %2622 = vrot.lane.b32.xlu1 %v2621_v53, %s5197_s3  ;;  %v2615_v1 = vsel %vm6549_vm9, %v2614_v42, %v6090_v20  ;;  %vm6553_vm9 = vcmask 261120  }
0x1bf3   :  { %2616 = vrot.lane.b32.xlu0 %v2615_v1, %s5198_s4 }
0x1c64   :  { %v2623_v2 = vpop.permute.xlu1 %2622 }
0x1c65   :  { %v2617_v60 = vpop.permute.xlu0 %2616 }
0x1c66   :  { %v2625_v32 = vsel %vm6550_vm0, %v2617_v60, %v2623_v2  ;;  %vm6551_vm0 = vcmask 1043459  }
0x1c67   :  { %v2627_v28 = vrot.slane %v2625_v32, 1  ;;  %vm6552_vm1 = vmmov %vm6551_vm0 }
0x1c69   :  { %4157 = vmatmul.mubr.msk.f32.vlgmr.msra.gmra.mrb[14].mxu0 %vm232_vm3, %v2627_v28  ;;  %v2725_v28 = vrot.slane %v6062_v38, 7 }
0x1c6a   :  { %4436 = vmatpush1.bf16.msra.mxu0 %v5885_v24  ;;  %3151 = vmatprep.mubr.f32.mxu0 %v5196_v0 }
0x1c6b   :  { %4438 = vmatprep.subr.bf16.mxu0 %v5888_v8 }
0x1c6e   :  { %4440 = vmatpush1.bf16.msra.mxu0 %v5894_v11 }
0x1c6f   :  { %4442 = vmatprep.subr.bf16.mxu0 %v5905_v13 }
0x1c72   :  { %4444 = vmatpush1.bf16.msra.mxu0 %v5907_v52 }
0x1c73   :  { %4446 = vmatprep.subr.bf16.mxu0 %v5911_v63 }
0x1c76   :  { %4448 = vmatpush1.bf16.msra.mxu0 %v5913_v17 }
0x1c77   :  { %4466 = vmatprep.subr.bf16.mxu0 %v5881_v33 }
0x1d3c   :  { %v2696_v9 = vpop.f32.mrb[14].mxu0 }
0x1d3d   :  { %v2703_v43 = vrot.slane %v2696_v9, 7  ;;  %v2698_v49 = vpop.f32.mrb[15].mxu0  ;;  %v2702_v15 = vrot.slane %v2696_v9, 6 }
0x1d3e   :  { %v2773_v14 = vrot.slane %v2698_v49, 3  ;;  %v2774_v25 = vrot.slane %v2698_v49, 4 }
0x1d3f   :  { %v2707_v22 = vadd.f32 %v2703_v43, %v5992_v51  ;;  %v2706_v50 = vadd.f32 %v2702_v15, %v5986_v16 }
0x1d40   :  { %v2777_v4 = vadd.f32 %v2773_v14, %v5988_v56  ;;  %v2778_v27 = vadd.f32 %v2774_v25, %v5994_v34  ;;  %v2796_v14 = vrot.slane %v6070_v41, 1 }
0x1d41   :  { %4846 = vtanh.f32 %v2707_v22  ;;  %v4159_v57 = vmul.f32 -1.442695, %v2707_v22  ;;  %v4158_v26 = vmul.f32 -1.442695, %v2706_v50  ;;  %v2795_v22 = vrot.slane %v6068_v46, 1 }
0x1d42   :  { %4848 = vtanh.f32 %v2777_v4  ;;  %v4160_v44 = vmul.f32 -1.442695, %v2777_v4  ;;  %v4161_v58 = vmul.f32 -1.442695, %v2778_v27 }
0x1d43   :  { %4850 = vtanh.f32 %v2778_v27  ;;  %v2724_v27 = vrot.slane %v6074_v62, 7 }
0x1d44   :  { %4852 = vtanh.f32 %v2706_v50 }
0x1d45   :  { %4854 = vpow2.f32 %v4159_v57 }
0x1d46   :  { %4856 = vpow2.f32 %v4160_v44 }
0x1d47   :  { %4858 = vpow2.f32 %v4161_v58 }
0x1d48   :  { %4860 = vpow2.f32 %v4158_v26 }
0x1d4b   :  { %v4847_v31 = vpop.eup %4846 }
0x1d4c   :  { %2734 = vrot.lane.b32.xlu0 %v4847_v31, %s5197_s3  ;;  %v4849_v12 = vpop.eup %4848 }
0x1d4d   :  { %v4851_v39 = vpop.eup %4850  ;;  %2803 = vrot.lane.b32.xlu1 %v4849_v12, %s5197_s3 }
0x1d4e   :  { %v4853_v29 = vpop.eup %4852 }
0x1d4f   :  { %v4855_v45 = vpop.eup %4854 }
0x1d50   :  { %2805 = vrot.lane.b32.xlu0 %v4851_v39, %s5197_s3  ;;  %v2715_v48 = vadd.f32 1.0, %v4855_v45  ;;  %v4857_v59 = vpop.eup %4856 }
0x1d51   :  { %2732 = vrot.lane.b32.xlu1 %v4853_v29, %s5197_s3  ;;  %v4859_v35 = vpop.eup %4858  ;;  %v2785_v21 = vadd.f32 1.0, %v4857_v59 }
0x1d52   :  { %4862 = vrcp.f32 %v2715_v48  ;;  %v4861_v55 = vpop.eup %4860  ;;  %v2786_v36 = vadd.f32 1.0, %v4859_v35 }
0x1d53   :  { %v2714_v23 = vadd.f32 1.0, %v4861_v55  ;;  %4864 = vrcp.f32 %v2785_v21 }
0x1d54   :  { %4866 = vrcp.f32 %v2786_v36 }
0x1d55   :  { %4868 = vrcp.f32 %v2714_v23 }
0x1d5c   :  { %v4863_v19 = vpop.eup %4862 }
0x1d5d   :  { %v4865_v61 = vpop.eup %4864  ;;  %v2729_v9 = vmul.f32 %v4863_v19, %v2725_v28 }
0x1d5e   :  { %v4867_v5 = vpop.eup %4866  ;;  %v2799_v25 = vmul.f32 %v4865_v61, %v2795_v22 }
0x1d5f   :  { %v4869_v2 = vpop.eup %4868  ;;  %v2800_v4 = vmul.f32 %v4867_v5, %v2796_v14 }
0x1d60   :  { %v2728_v38 = vmul.f32 %v4869_v2, %v2724_v27 }
0x1dbe   :  { %v2735_v7 = vpop.permute.xlu0 %2734 }
0x1dbf   :  { %v2739_v47 = vmul.f32 %v4863_v19, %v2735_v7  ;;  %v2804_v18 = vpop.permute.xlu1 %2803 }
0x1dc0   :  { %v2809_v42 = vmul.f32 %v4865_v61, %v2804_v18 }
0x1dc1   :  { %2744 = vrot.lane.b32.xlu0 %v2739_v47, %s5198_s4 }
0x1dc2   :  { %v2806_v53 = vpop.permute.xlu0 %2805  ;;  %2813 = vrot.lane.b32.xlu1 %v2809_v42, %s5198_s4 }
0x1dc3   :  { %v2810_v1 = vmul.f32 %v4867_v5, %v2806_v53  ;;  %v2733_v60 = vpop.permute.xlu1 %2732 }
0x1dc4   :  { %v2738_v32 = vmul.f32 %v4869_v2, %v2733_v60 }
0x1dc5   :  { %2815 = vrot.lane.b32.xlu0 %v2810_v1, %s5198_s4 }
0x1dc6   :  { %2742 = vrot.lane.b32.xlu1 %v2738_v32, %s5198_s4 }
0x1e33   :  { %v2745_v43 = vpop.permute.xlu0 %2744 }
0x1e34   :  { %v6121_v49 = vadd.f32 %v2745_v43, %v2729_v9  ;;  %v2814_v15 = vpop.permute.xlu1 %2813 }
0x1e35   :  { %v6127_v50 = vadd.f32 %v2814_v15, %v2799_v25 }
0x1e36   :  { %4870 = vtanh.f32 %v6121_v49 }
0x1e37   :  { %v2816_v31 = vpop.permute.xlu0 %2815  ;;  %4872 = vtanh.f32 %v6127_v50 }
0x1e38   :  { %v6129_v12 = vadd.f32 %v2816_v31, %v2800_v4  ;;  %v2743_v46 = vpop.permute.xlu1 %2742 }
0x1e39   :  { %v6133_v39 = vadd.f32 %v2743_v46, %v2728_v38 }
0x1e3a   :  { %4874 = vtanh.f32 %v6129_v12 }
0x1e3b   :  { %4876 = vtanh.f32 %v6133_v39 }
0x1e40   :  { %v4871_v41 = vpop.eup %4870 }
0x1e41   :  { %2756 = vrot.lane.b32.xlu0 %v4871_v41, %s5197_s3  ;;  %v4873_v29 = vpop.eup %4872 }
0x1e42   :  { %2825 = vrot.lane.b32.xlu1 %v4873_v29, %s5197_s3 }
0x1e44   :  { %v4875_v62 = vpop.eup %4874 }
0x1e45   :  { %2827 = vrot.lane.b32.xlu0 %v4875_v62, %s5197_s3  ;;  %v4877_v57 = vpop.eup %4876 }
0x1e46   :  { %2754 = vrot.lane.b32.xlu1 %v4877_v57, %s5197_s3 }
0x1eb3   :  { %v2757_v44 = vpop.permute.xlu0 %2756 }
0x1eb4   :  { %v2826_v58 = vpop.permute.xlu1 %2825  ;;  %v6140_v26 = vmul.f32 %v4863_v19, %v2757_v44 }
0x1eb5   :  { %v6142_v45 = vmul.f32 %v4865_v61, %v2826_v58 }
0x1eb6   :  { %v2843_v36 = vrot.slane %v6140_v26, 7 }
0x1eb7   :  { %v2828_v48 = vpop.permute.xlu0 %2827  ;;  %v2848_v35 = vrot.slane %v6142_v45, 3 }
0x1eb8   :  { %v6144_v59 = vmul.f32 %v4867_v5, %v2828_v48  ;;  %v2755_v55 = vpop.permute.xlu1 %2754 }
0x1eb9   :  { %v6149_v23 = vmul.f32 %v4869_v2, %v2755_v55 }
0x1eba   :  { %v2849_v21 = vrot.slane %v6144_v59, 2 }
0x1ebb   :  { %v2844_v19 = vsel %vm6552_vm1, %v2843_v36, %v6149_v23 }
0x1ebc   :  { %v2850_v7 = vsel %vm6551_vm0, %v2849_v21, %v2848_v35  ;;  %2845 = vrot.lane.b32.xlu0 %v2844_v19, %s5198_s4  ;;  %vm6554_vm0 = vcmask 1044484  }
0x1ebd   :  { %2851 = vrot.lane.b32.xlu1 %v2850_v7, %s5197_s3  ;;  %vm6555_vm1 = vmmov %vm6554_vm0 }
0x1f2e   :  { %v2846_v61 = vpop.permute.xlu0 %2845 }
0x1f2f   :  { %v2852_v47 = vpop.permute.xlu1 %2851 }
0x1f30   :  { %v2854_v18 = vsel %vm6553_vm9, %v2846_v61, %v2852_v47 }
0x1f31   :  { %v2856_v5 = vrot.slane %v2854_v18, 2 }
0x1f33   :  { %4162 = vmatmul.mubr.msk.f32.vlgmr.msra.gmra.mrb[14].mxu1 %vm232_vm3, %v2856_v5 }
0x1f34   :  { %4452 = vmatpush1.bf16.msra.mxu1 %v5885_v24  ;;  %3380 = vmatprep.mubr.f32.mxu1 %v5196_v0 }
0x1f35   :  { %4454 = vmatprep.subr.bf16.mxu1 %v5888_v8 }
0x1f38   :  { %4456 = vmatpush1.bf16.msra.mxu1 %v5894_v11 }
0x1f39   :  { %4458 = vmatprep.subr.bf16.mxu1 %v5905_v13 }
0x1f3c   :  { %4460 = vmatpush1.bf16.msra.mxu1 %v5907_v52 }
0x1f3d   :  { %4462 = vmatprep.subr.bf16.mxu1 %v5911_v63 }
0x1f40   :  { %4464 = vmatpush1.bf16.msra.mxu1 %v5913_v17 }
0x1f41   :  { %4482 = vmatprep.subr.bf16.mxu1 %v5881_v33 }
0x2006   :  { %v2925_v42 = vpop.f32.mrb[14].mxu1 }
0x2007   :  { %v2932_v53 = vrot.slane %v2925_v42, 6  ;;  %v2927_v1 = vpop.f32.mrb[15].mxu1  ;;  %v2931_v2 = vrot.slane %v2925_v42, 5 }
0x2008   :  { %v3002_v32 = vrot.slane %v2927_v1, 4  ;;  %v3003_v9 = vrot.slane %v2927_v1, 5  ;;  %v2954_v1 = vrot.slane %v6121_v49, 7 }
0x2009   :  { %v2936_v60 = vadd.f32 %v2932_v53, %v5992_v51  ;;  %v2935_v28 = vadd.f32 %v2931_v2, %v5986_v16 }
0x200a   :  { %v3006_v43 = vadd.f32 %v3002_v32, %v5988_v56  ;;  %v3007_v22 = vadd.f32 %v3003_v9, %v5994_v34  ;;  %v2953_v32 = vrot.slane %v6133_v39, 7  ;;  %v3024_v9 = vrot.slane %v6127_v50, 1 }
0x200b   :  { %4878 = vtanh.f32 %v2936_v60  ;;  %v4164_v4 = vmul.f32 -1.442695, %v2936_v60  ;;  %v4163_v27 = vmul.f32 -1.442695, %v2935_v28 }
0x200c   :  { %4880 = vtanh.f32 %v2935_v28  ;;  %v4165_v31 = vmul.f32 -1.442695, %v3006_v43  ;;  %v4166_v38 = vmul.f32 -1.442695, %v3007_v22 }
0x200d   :  { %4882 = vtanh.f32 %v3006_v43 }
0x200e   :  { %4884 = vtanh.f32 %v3007_v22 }
0x200f   :  { %4886 = vpow2.f32 %v4164_v4 }
0x2010   :  { %4888 = vpow2.f32 %v4163_v27 }
0x2011   :  { %4890 = vpow2.f32 %v4165_v31 }
0x2012   :  { %4892 = vpow2.f32 %v4166_v38 }
0x2015   :  { %v4879_v14 = vpop.eup %4878 }
0x2016   :  { %2963 = vrot.lane.b32.xlu0 %v4879_v14, %s5197_s3  ;;  %v4881_v33 = vpop.eup %4880 }
0x2017   :  { %v4883_v25 = vpop.eup %4882 }
0x2018   :  { %3032 = vrot.lane.b32.xlu1 %v4883_v25, %s5197_s3  ;;  %v4885_v15 = vpop.eup %4884 }
0x2019   :  { %v4887_v46 = vpop.eup %4886 }
0x201a   :  { %2961 = vrot.lane.b32.xlu0 %v4881_v33, %s5197_s3  ;;  %v2944_v41 = vadd.f32 1.0, %v4887_v46  ;;  %v4889_v29 = vpop.eup %4888 }
0x201b   :  { %v4891_v62 = vpop.eup %4890  ;;  %v2943_v57 = vadd.f32 1.0, %v4889_v29 }
0x201c   :  { %3034 = vrot.lane.b32.xlu1 %v4885_v15, %s5197_s3  ;;  %4894 = vrcp.f32 %v2944_v41  ;;  %v3014_v44 = vadd.f32 1.0, %v4891_v62  ;;  %v4893_v58 = vpop.eup %4892  ;;  %v3025_v15 = vrot.slane %v6129_v12, 1 }
0x201d   :  { %4896 = vrcp.f32 %v2943_v57  ;;  %v3015_v48 = vadd.f32 1.0, %v4893_v58 }
0x201e   :  { %4898 = vrcp.f32 %v3014_v44 }
0x201f   :  { %4900 = vrcp.f32 %v3015_v48 }
0x2026   :  { %v4895_v35 = vpop.eup %4894 }
0x2027   :  { %v4897_v36 = vpop.eup %4896  ;;  %v2958_v2 = vmul.f32 %v4895_v35, %v2954_v1 }
0x2028   :  { %v4899_v19 = vpop.eup %4898  ;;  %v2957_v43 = vmul.f32 %v4897_v36, %v2953_v32 }
0x2029   :  { %v4901_v5 = vpop.eup %4900  ;;  %v3028_v22 = vmul.f32 %v4899_v19, %v3024_v9 }
0x202a   :  { %v3029_v49 = vmul.f32 %v4901_v5, %v3025_v15 }
0x2088   :  { %v2964_v21 = vpop.permute.xlu0 %2963 }
0x2089   :  { %v2968_v55 = vmul.f32 %v4895_v35, %v2964_v21 }
0x208a   :  { %v3033_v47 = vpop.permute.xlu1 %3032 }
0x208b   :  { %2973 = vrot.lane.b32.xlu0 %v2968_v55, %s5198_s4  ;;  %v3038_v18 = vmul.f32 %v4899_v19, %v3033_v47 }
0x208c   :  { %v2962_v7 = vpop.permute.xlu0 %2961 }
0x208d   :  { %v2967_v61 = vmul.f32 %v4897_v36, %v2962_v7  ;;  %3042 = vrot.lane.b32.xlu1 %v3038_v18, %s5198_s4 }
0x208e   :  { %v3035_v42 = vpop.permute.xlu1 %3034 }
0x208f   :  { %2971 = vrot.lane.b32.xlu0 %v2967_v61, %s5198_s4  ;;  %v3039_v53 = vmul.f32 %v4901_v5, %v3035_v42 }
0x2091   :  { %3044 = vrot.lane.b32.xlu1 %v3039_v53, %s5198_s4 }
0x20fd   :  { %v2974_v60 = vpop.permute.xlu0 %2973 }
0x20fe   :  { %v6181_v28 = vadd.f32 %v2974_v60, %v2958_v2 }
0x20ff   :  { %v3043_v33 = vpop.permute.xlu1 %3042 }
0x2100   :  { %4902 = vtanh.f32 %v6181_v28  ;;  %v6188_v4 = vadd.f32 %v3043_v33, %v3028_v22 }
0x2101   :  { %v2972_v14 = vpop.permute.xlu0 %2971 }
0x2102   :  { %v6185_v25 = vadd.f32 %v2972_v14, %v2957_v43 }
0x2103   :  { %v3045_v39 = vpop.permute.xlu1 %3044 }
0x2104   :  { %4904 = vtanh.f32 %v6185_v25  ;;  %v6192_v27 = vadd.f32 %v3045_v39, %v3029_v49 }
0x2105   :  { %4906 = vtanh.f32 %v6188_v4 }
0x2106   :  { %4908 = vtanh.f32 %v6192_v27 }
0x210a   :  { %v4903_v50 = vpop.eup %4902 }
0x210b   :  { %2985 = vrot.lane.b32.xlu0 %v4903_v50, %s5197_s3 }
0x210e   :  { %v4905_v31 = vpop.eup %4904 }
0x210f   :  { %v4907_v38 = vpop.eup %4906  ;;  %2983 = vrot.lane.b32.xlu0 %v4905_v31, %s5197_s3 }
0x2110   :  { %3054 = vrot.lane.b32.xlu1 %v4907_v38, %s5197_s3  ;;  %v4909_v12 = vpop.eup %4908 }
0x2114   :  { %3056 = vrot.lane.b32.xlu1 %v4909_v12, %s5197_s3 }
0x217d   :  { %v2986_v46 = vpop.permute.xlu0 %2985 }
0x217e   :  { %v6199_v41 = vmul.f32 %v4895_v35, %v2986_v46 }
0x2180   :  { %v3072_v62 = vrot.slane %v6199_v41, 7 }
0x2181   :  { %v2984_v29 = vpop.permute.xlu0 %2983 }
0x2182   :  { %v3055_v57 = vpop.permute.xlu1 %3054  ;;  %v6202_v44 = vmul.f32 %v4897_v36, %v2984_v29 }
0x2183   :  { %v6204_v58 = vmul.f32 %v4899_v19, %v3055_v57 }
0x2184   :  { %v3073_v48 = vsel %vm6554_vm0, %v3072_v62, %v6202_v44  ;;  %vm6556_vm0 = vcmask 1045509  }
0x2185   :  { %3074 = vrot.lane.b32.xlu0 %v3073_v48, %s5198_s4  ;;  %v3077_v55 = vrot.slane %v6204_v58, 1 }
0x2186   :  { %v3057_v21 = vpop.permute.xlu1 %3056 }
0x2187   :  { %v6210_v7 = vmul.f32 %v4901_v5, %v3057_v21 }
0x2189   :  { %v3078_v35 = vsel %vm6555_vm1, %v6210_v7, %v3077_v55  ;;  %vm6557_vm1 = vmmov %vm6556_vm0 }
0x218a   :  { %3079 = vrot.lane.b32.xlu1 %v3078_v35, %s5197_s3 }
0x21f7   :  { %v3075_v47 = vpop.permute.xlu0 %3074 }
0x21fc   :  { %v3080_v36 = vpop.permute.xlu1 %3079 }
0x21fd   :  { %v3082_v19 = vsel %vm6553_vm9, %v3075_v47, %v3080_v36 }
0x21fe   :  { %v3084_v61 = vrot.slane %v3082_v19, 3 }
0x2200   :  { %4167 = vmatmul.mubr.msk.f32.vlgmr.msra.gmra.mrb[16].mxu0 %vm232_vm3, %v3084_v61 }
0x2201   :  { %4468 = vmatpush1.bf16.msra.mxu0 %v5885_v24  ;;  %3609 = vmatprep.mubr.f32.mxu0 %v5196_v0 }
0x2202   :  { %4470 = vmatprep.subr.bf16.mxu0 %v5888_v8 }
0x2205   :  { %4472 = vmatpush1.bf16.msra.mxu0 %v5894_v11 }
0x2206   :  { %4474 = vmatprep.subr.bf16.mxu0 %v5905_v13 }
0x2209   :  { %4476 = vmatpush1.bf16.msra.mxu0 %v5907_v52 }
0x220a   :  { %4478 = vmatprep.subr.bf16.mxu0 %v5911_v63 }
0x220d   :  { %4480 = vmatpush1.bf16.msra.mxu0 %v5913_v17 }
0x22d3   :  { %v3153_v18 = vpop.f32.mrb[16].mxu0 }
0x22d4   :  { %v3160_v5 = vrot.slane %v3153_v18, 5  ;;  %v3155_v42 = vpop.f32.mrb[17].mxu0  ;;  %v3159_v60 = vrot.slane %v3153_v18, 4 }
0x22d5   :  { %v3230_v1 = vrot.slane %v3155_v42, 5  ;;  %v3231_v2 = vrot.slane %v3155_v42, 6 }
0x22d6   :  { %v3164_v53 = vadd.f32 %v3160_v5, %v5992_v51  ;;  %v3163_v43 = vadd.f32 %v3159_v60, %v5986_v16  ;;  %v3182_v60 = vrot.slane %v6181_v28, 7 }
0x22d7   :  { %v3234_v32 = vadd.f32 %v3230_v1, %v5988_v56  ;;  %v3235_v9 = vadd.f32 %v3231_v2, %v5994_v34 }
0x22d8   :  { %4910 = vtanh.f32 %v3164_v53  ;;  %v4169_v49 = vmul.f32 -1.442695, %v3164_v53  ;;  %v4168_v31 = vmul.f32 -1.442695, %v3163_v43 }
0x22d9   :  { %4912 = vtanh.f32 %v3234_v32  ;;  %v4170_v39 = vmul.f32 -1.442695, %v3234_v32  ;;  %v4171_v50 = vmul.f32 -1.442695, %v3235_v9 }
0x22da   :  { %4914 = vtanh.f32 %v3235_v9 }
0x22db   :  { %4916 = vtanh.f32 %v3163_v43 }
0x22dc   :  { %4918 = vpow2.f32 %v4169_v49 }
0x22dd   :  { %4920 = vpow2.f32 %v4170_v39  ;;  %v3181_v39 = vrot.slane %v6185_v25, 7 }
0x22de   :  { %4922 = vpow2.f32 %v4171_v50 }
0x22df   :  { %4924 = vpow2.f32 %v4168_v31 }
0x22e2   :  { %v4911_v22 = vpop.eup %4910 }
0x22e3   :  { %3191 = vrot.lane.b32.xlu0 %v4911_v22, %s5197_s3  ;;  %v4913_v14 = vpop.eup %4912  ;;  %v3252_v22 = vrot.slane %v6188_v4, 1 }
0x22e4   :  { %v4915_v33 = vpop.eup %4914  ;;  %3260 = vrot.lane.b32.xlu1 %v4913_v14, %s5197_s3  ;;  %v3253_v14 = vrot.slane %v6192_v27, 1 }
0x22e5   :  { %v4917_v15 = vpop.eup %4916 }
0x22e6   :  { %v4919_v38 = vpop.eup %4918 }
0x22e7   :  { %3262 = vrot.lane.b32.xlu0 %v4915_v33, %s5197_s3  ;;  %v3172_v12 = vadd.f32 1.0, %v4919_v38  ;;  %v4921_v46 = vpop.eup %4920 }
0x22e8   :  { %3189 = vrot.lane.b32.xlu1 %v4917_v15, %s5197_s3  ;;  %v4923_v29 = vpop.eup %4922  ;;  %v3242_v62 = vadd.f32 1.0, %v4921_v46 }
0x22e9   :  { %4926 = vrcp.f32 %v3172_v12  ;;  %v4925_v57 = vpop.eup %4924  ;;  %v3243_v48 = vadd.f32 1.0, %v4923_v29 }
0x22ea   :  { %v3171_v21 = vadd.f32 1.0, %v4925_v57  ;;  %4928 = vrcp.f32 %v3242_v62 }
0x22eb   :  { %4930 = vrcp.f32 %v3243_v48 }
0x22ec   :  { %4932 = vrcp.f32 %v3171_v21 }
0x22f3   :  { %v4927_v55 = vpop.eup %4926 }
0x22f4   :  { %v4929_v36 = vpop.eup %4928  ;;  %v3186_v32 = vmul.f32 %v4927_v55, %v3182_v60 }
0x22f5   :  { %v4931_v61 = vpop.eup %4930  ;;  %v3256_v33 = vmul.f32 %v4929_v36, %v3252_v22 }
0x22f6   :  { %v4933_v53 = vpop.eup %4932  ;;  %v3257_v49 = vmul.f32 %v4931_v61, %v3253_v14 }
0x22f7   :  { %v3185_v28 = vmul.f32 %v4933_v53, %v3181_v39 }
0x2355   :  { %v3192_v35 = vpop.permute.xlu0 %3191 }
0x2356   :  { %v3196_v47 = vmul.f32 %v4927_v55, %v3192_v35  ;;  %v3261_v19 = vpop.permute.xlu1 %3260 }
0x2357   :  { %v3266_v18 = vmul.f32 %v4929_v36, %v3261_v19 }
0x2358   :  { %3201 = vrot.lane.b32.xlu0 %v3196_v47, %s5198_s4 }
0x2359   :  { %v3263_v5 = vpop.permute.xlu0 %3262  ;;  %3270 = vrot.lane.b32.xlu1 %v3266_v18, %s5198_s4 }
0x235a   :  { %v3267_v42 = vmul.f32 %v4931_v61, %v3263_v5  ;;  %v3190_v1 = vpop.permute.xlu1 %3189 }
0x235b   :  { %v3195_v2 = vmul.f32 %v4933_v53, %v3190_v1 }
0x235c   :  { %3272 = vrot.lane.b32.xlu0 %v3267_v42, %s5198_s4 }
0x235d   :  { %3199 = vrot.lane.b32.xlu1 %v3195_v2, %s5198_s4 }
0x23ca   :  { %v3202_v9 = vpop.permute.xlu0 %3201 }
0x23cb   :  { %v6238_v43 = vadd.f32 %v3202_v9, %v3186_v32  ;;  %v3271_v15 = vpop.permute.xlu1 %3270 }
0x23cc   :  { %v6244_v50 = vadd.f32 %v3271_v15, %v3256_v33 }
0x23cd   :  { %4934 = vtanh.f32 %v6238_v43 }
0x23ce   :  { %v3273_v31 = vpop.permute.xlu0 %3272  ;;  %4936 = vtanh.f32 %v6244_v50 }
0x23cf   :  { %v6246_v38 = vadd.f32 %v3273_v31, %v3257_v49  ;;  %v3200_v4 = vpop.permute.xlu1 %3199 }
0x23d0   :  { %v6250_v12 = vadd.f32 %v3200_v4, %v3185_v28 }
0x23d1   :  { %4938 = vtanh.f32 %v6246_v38 }
0x23d2   :  { %4940 = vtanh.f32 %v6250_v12 }
0x23d7   :  { %v4935_v27 = vpop.eup %4934 }
0x23d8   :  { %3213 = vrot.lane.b32.xlu0 %v4935_v27, %s5197_s3  ;;  %v4937_v46 = vpop.eup %4936 }
0x23d9   :  { %3282 = vrot.lane.b32.xlu1 %v4937_v46, %s5197_s3 }
0x23db   :  { %v4939_v25 = vpop.eup %4938 }
0x23dc   :  { %3284 = vrot.lane.b32.xlu0 %v4939_v25, %s5197_s3  ;;  %v4941_v29 = vpop.eup %4940 }
0x23dd   :  { %3211 = vrot.lane.b32.xlu1 %v4941_v29, %s5197_s3 }
0x244a   :  { %v3214_v62 = vpop.permute.xlu0 %3213 }
0x244b   :  { %v3283_v57 = vpop.permute.xlu1 %3282  ;;  %v6257_v48 = vmul.f32 %v4927_v55, %v3214_v62 }
0x244c   :  { %v6259_v21 = vmul.f32 %v4929_v36, %v3283_v57 }
0x244d   :  { %v3300_v42 = vrot.slane %v6257_v48, 7 }
0x244e   :  { %v3285_v35 = vpop.permute.xlu0 %3284  ;;  %v3305_v19 = vrot.slane %v6259_v21, 7 }
0x244f   :  { %v6261_v47 = vmul.f32 %v4931_v61, %v3285_v35  ;;  %v3212_v5 = vpop.permute.xlu1 %3211 }
0x2450   :  { %v6266_v1 = vmul.f32 %v4933_v53, %v3212_v5 }
0x2451   :  { %v3306_v18 = vrot.slane %v6261_v47, 6 }
0x2452   :  { %v3301_v55 = vsel %vm6557_vm1, %v3300_v42, %v6266_v1 }
0x2453   :  { %v3307_v2 = vsel %vm6556_vm0, %v3306_v18, %v3305_v19  ;;  %3302 = vrot.lane.b32.xlu0 %v3301_v55, %s5198_s4  ;;  %vm6558_vm0 = vcmask 1046534  }
0x2454   :  { %3308 = vrot.lane.b32.xlu1 %v3307_v2, %s5197_s3  ;;  %vm6559_vm1 = vmmov %vm6558_vm0 }
0x24c5   :  { %v3303_v61 = vpop.permute.xlu0 %3302 }
0x24c6   :  { %v3309_v36 = vpop.permute.xlu1 %3308 }
0x24c7   :  { %v3311_v60 = vsel %vm6553_vm9, %v3303_v61, %v3309_v36 }
0x24c8   :  { %v3313_v32 = vrot.slane %v3311_v60, 4 }
0x24ca   :  { %4172 = vmatmul.mubr.msk.f32.vlgmr.msra.gmra.mrb[16].mxu1 %vm232_vm3, %v3313_v32 }
0x24cb   :  { %4484 = vmatpush1.bf16.msra.mxu1 %v5885_v24  ;;  %3837 = vmatprep.mubr.f32.mxu1 %v5196_v0 }
0x24cc   :  { %4486 = vmatprep.subr.bf16.mxu1 %v5888_v8 }
0x24cf   :  { %4488 = vmatpush1.bf16.msra.mxu1 %v5894_v11 }
0x24d0   :  { %4490 = vmatprep.subr.bf16.mxu1 %v5905_v13 }
0x24d3   :  { %4492 = vmatpush1.bf16.msra.mxu1 %v5907_v52 }
0x24d4   :  { %4494 = vmatprep.subr.bf16.mxu1 %v5911_v63 }
0x24d7   :  { %4496 = vmatpush1.bf16.msra.mxu1 %v5913_v17 }
0x259d   :  { %v3382_v53 = vpop.f32.mrb[16].mxu1 }
0x259e   :  { %v3389_v9 = vrot.slane %v3382_v53, 4  ;;  %v3384_v22 = vpop.f32.mrb[17].mxu1  ;;  %v3388_v0 = vrot.slane %v3382_v53, 3 }
0x259f   :  { %v3459_v24 = vrot.slane %v3384_v22, 6  ;;  %v3460_v33 = vrot.slane %v3384_v22, 7  ;;  %v3411_v22 = vrot.slane %v6238_v43, 7 }
0x25a0   :  { %v3393_v14 = vadd.f32 %v3389_v9, %v5992_v51  ;;  %v3392_v13 = vadd.f32 %v3388_v0, %v5986_v16  ;;  %v3481_v0 = vrot.slane %v6244_v50, 1 }
0x25a1   :  { %v3463_v8 = vadd.f32 %v3459_v24, %v5988_v56  ;;  %v3464_v11 = vadd.f32 %v3460_v33, %v5994_v34 }
0x25a2   :  { %4942 = vtanh.f32 %v3393_v14  ;;  %v4174_v49 = vmul.f32 -1.442695, %v3393_v14  ;;  %v4173_v28 = vmul.f32 -1.442695, %v3392_v13 }
0x25a3   :  { %4944 = vtanh.f32 %v3463_v8  ;;  %v4175_v39 = vmul.f32 -1.442695, %v3463_v8  ;;  %v4176_v31 = vmul.f32 -1.442695, %v3464_v11  ;;  %v3482_v8 = vrot.slane %v6246_v38, 1 }
0x25a4   :  { %4946 = vtanh.f32 %v3464_v11 }
0x25a5   :  { %4948 = vtanh.f32 %v3392_v13 }
0x25a6   :  { %4950 = vpow2.f32 %v4174_v49 }
0x25a7   :  { %4952 = vpow2.f32 %v4175_v39 }
0x25a8   :  { %4954 = vpow2.f32 %v4176_v31 }
0x25a9   :  { %4956 = vpow2.f32 %v4173_v28 }
0x25ac   :  { %v4943_v52 = vpop.eup %4942 }
0x25ad   :  { %3420 = vrot.lane.b32.xlu0 %v4943_v52, %s5197_s3  ;;  %v4945_v63 = vpop.eup %4944 }
0x25ae   :  { %v4947_v17 = vpop.eup %4946  ;;  %3489 = vrot.lane.b32.xlu1 %v4945_v63, %s5197_s3  ;;  %v3410_v63 = vrot.slane %v6250_v12, 7 }
0x25af   :  { %v4949_v15 = vpop.eup %4948 }
0x25b0   :  { %v4951_v4 = vpop.eup %4950 }
0x25b1   :  { %3491 = vrot.lane.b32.xlu0 %v4947_v17, %s5197_s3  ;;  %v3401_v27 = vadd.f32 1.0, %v4951_v4  ;;  %v4953_v46 = vpop.eup %4952 }
0x25b2   :  { %3418 = vrot.lane.b32.xlu1 %v4949_v15, %s5197_s3  ;;  %v4955_v25 = vpop.eup %4954  ;;  %v3471_v29 = vadd.f32 1.0, %v4953_v46 }
0x25b3   :  { %4958 = vrcp.f32 %v3401_v27  ;;  %v4957_v62 = vpop.eup %4956  ;;  %v3472_v57 = vadd.f32 1.0, %v4955_v25 }
0x25b4   :  { %v3400_v35 = vadd.f32 1.0, %v4957_v62  ;;  %4960 = vrcp.f32 %v3471_v29 }
0x25b5   :  { %4962 = vrcp.f32 %v3472_v57 }
0x25b6   :  { %4964 = vrcp.f32 %v3400_v35 }
0x25bd   :  { %v4959_v19 = vpop.eup %4958 }
0x25be   :  { %v4961_v42 = vpop.eup %4960  ;;  %v3415_v14 = vmul.f32 %v4959_v19, %v3411_v22 }
0x25bf   :  { %v4963_v55 = vpop.eup %4962  ;;  %v3485_v11 = vmul.f32 %v4961_v42, %v3481_v0 }
0x25c0   :  { %v4965_v32 = vpop.eup %4964  ;;  %v3486_v52 = vmul.f32 %v4963_v55, %v3482_v8 }
0x25c1   :  { %v3414_v43 = vmul.f32 %v4965_v32, %v3410_v63 }
0x261f   :  { %v3421_v18 = vpop.permute.xlu0 %3420 }
0x2620   :  { %v3425_v5 = vmul.f32 %v4959_v19, %v3421_v18  ;;  %v3490_v2 = vpop.permute.xlu1 %3489 }
0x2621   :  { %v3495_v36 = vmul.f32 %v4961_v42, %v3490_v2 }
0x2622   :  { %3430 = vrot.lane.b32.xlu0 %v3425_v5, %s5198_s4 }
0x2623   :  { %v3492_v61 = vpop.permute.xlu0 %3491  ;;  %3499 = vrot.lane.b32.xlu1 %v3495_v36, %s5198_s4 }
0x2624   :  { %v3496_v60 = vmul.f32 %v4963_v55, %v3492_v61  ;;  %v3419_v53 = vpop.permute.xlu1 %3418 }
0x2625   :  { %v3424_v9 = vmul.f32 %v4965_v32, %v3419_v53 }
0x2626   :  { %3501 = vrot.lane.b32.xlu0 %v3496_v60, %s5198_s4 }
0x2627   :  { %3428 = vrot.lane.b32.xlu1 %v3424_v9, %s5198_s4 }
0x2694   :  { %v3431_v24 = vpop.permute.xlu0 %3430 }
0x2695   :  { %v6296_v33 = vadd.f32 %v3431_v24, %v3415_v14  ;;  %v3500_v13 = vpop.permute.xlu1 %3499 }
0x2696   :  { %v6302_v17 = vadd.f32 %v3500_v13, %v3485_v11 }
0x2697   :  { %4966 = vtanh.f32 %v6296_v33 }
0x2698   :  { %v3502_v15 = vpop.permute.xlu0 %3501  ;;  %4968 = vtanh.f32 %v6302_v17 }
0x2699   :  { %v6304_v49 = vadd.f32 %v3502_v15, %v3486_v52  ;;  %v3429_v50 = vpop.permute.xlu1 %3428 }
0x269a   :  { %v6308_v39 = vadd.f32 %v3429_v50, %v3414_v43 }
0x269b   :  { %4970 = vtanh.f32 %v6304_v49 }
0x269c   :  { %4972 = vtanh.f32 %v6308_v39 }
0x26a1   :  { %v4967_v38 = vpop.eup %4966 }
0x26a2   :  { %3442 = vrot.lane.b32.xlu0 %v4967_v38, %s5197_s3  ;;  %v4969_v31 = vpop.eup %4968 }
0x26a3   :  { %3511 = vrot.lane.b32.xlu1 %v4969_v31, %s5197_s3 }
0x26a5   :  { %v4971_v12 = vpop.eup %4970 }
0x26a6   :  { %3513 = vrot.lane.b32.xlu0 %v4971_v12, %s5197_s3  ;;  %v4973_v28 = vpop.eup %4972 }
0x26a7   :  { %3440 = vrot.lane.b32.xlu1 %v4973_v28, %s5197_s3 }
0x2714   :  { %v3443_v4 = vpop.permute.xlu0 %3442 }
0x2715   :  { %v3512_v27 = vpop.permute.xlu1 %3511  ;;  %v6315_v46 = vmul.f32 %v4959_v19, %v3443_v4 }
0x2716   :  { %v6317_v25 = vmul.f32 %v4961_v42, %v3512_v27 }
0x2717   :  { %v3529_v5 = vrot.slane %v6315_v46, 7 }
0x2718   :  { %v3514_v29 = vpop.permute.xlu0 %3513  ;;  %v3534_v57 = vrot.slane %v6317_v25, 5 }
0x2719   :  { %v6319_v62 = vmul.f32 %v4963_v55, %v3514_v29  ;;  %v3441_v18 = vpop.permute.xlu1 %3440 }
0x271a   :  { %v6324_v2 = vmul.f32 %v4965_v32, %v3441_v18 }
0x271b   :  { %v3535_v35 = vrot.slane %v6319_v62, 4 }
0x271c   :  { %v3530_v19 = vsel %vm6559_vm1, %v3529_v5, %v6324_v2 }
0x271d   :  { %v3536_v36 = vsel %vm6558_vm0, %v3535_v35, %v3534_v57  ;;  %3531 = vrot.lane.b32.xlu0 %v3530_v19, %s5198_s4  ;;  %vm6560_vm0 = vcmask 1047559  }
0x271e   :  { %3537 = vrot.lane.b32.xlu1 %v3536_v36, %s5197_s3  ;;  %vm6561_vm1 = vmmov %vm6560_vm0 }
0x278f   :  { %v3532_v55 = vpop.permute.xlu0 %3531 }
0x2790   :  { %v3538_v42 = vpop.permute.xlu1 %3537 }
0x2791   :  { %v3540_v61 = vsel %vm6553_vm9, %v3532_v55, %v3538_v42 }
0x2792   :  { %v3542_v60 = vrot.slane %v3540_v61, 5 }
0x2794   :  { %4177 = vmatmul.mubr.msk.f32.vlgmr.msra.gmra.mrb[18].mxu0 %vm232_vm3, %v3542_v60 }
0x2867   :  { %v3611_v53 = vpop.f32.mrb[18].mxu0 }
0x2868   :  { %v3618_v9 = vrot.slane %v3611_v53, 3  ;;  %v3613_v32 = vpop.f32.mrb[19].mxu0  ;;  %v3617_v0 = vrot.slane %v3611_v53, 2 }
0x2869   :  { %v3688_v14 = vrot.slane %v3613_v32, 7  ;;  %v3692_v24 = vadd.f32 %v3613_v32, %v5994_v34 }
0x286a   :  { %v3622_v22 = vadd.f32 %v3618_v9, %v5992_v51  ;;  %v3621_v11 = vadd.f32 %v3617_v0, %v5986_v16 }
0x286b   :  { %v3691_v8 = vadd.f32 %v3688_v14, %v5988_v56  ;;  %v4181_v50 = vmul.f32 -1.442695, %v3692_v24 }
0x286c   :  { %4974 = vtanh.f32 %v3622_v22  ;;  %v4179_v43 = vmul.f32 -1.442695, %v3622_v22  ;;  %v4178_v31 = vmul.f32 -1.442695, %v3621_v11 }
0x286d   :  { %4976 = vtanh.f32 %v3692_v24  ;;  %v4180_v38 = vmul.f32 -1.442695, %v3691_v8  ;;  %v3640_v24 = vrot.slane %v6296_v33, 7 }
0x286e   :  { %4978 = vtanh.f32 %v3691_v8 }
0x286f   :  { %4980 = vtanh.f32 %v3621_v11  ;;  %v3710_v11 = vrot.slane %v6304_v49, 1 }
0x2870   :  { %4982 = vpow2.f32 %v4179_v43 }
0x2871   :  { %4984 = vpow2.f32 %v4181_v50 }
0x2872   :  { %4986 = vpow2.f32 %v4180_v38 }
0x2873   :  { %4988 = vpow2.f32 %v4178_v31  ;;  %v3639_v31 = vrot.slane %v6308_v39, 7 }
0x2876   :  { %v4975_v13 = vpop.eup %4974 }
0x2877   :  { %3649 = vrot.lane.b32.xlu0 %v4975_v13, %s5197_s3  ;;  %v4977_v52 = vpop.eup %4976 }
0x2878   :  { %v4979_v63 = vpop.eup %4978 }
0x2879   :  { %3717 = vrot.lane.b32.xlu1 %v4979_v63, %s5197_s3  ;;  %v4981_v15 = vpop.eup %4980 }
0x287a   :  { %v4983_v12 = vpop.eup %4982 }
0x287b   :  { %3719 = vrot.lane.b32.xlu0 %v4977_v52, %s5197_s3  ;;  %v3630_v28 = vadd.f32 1.0, %v4983_v12  ;;  %v4985_v4 = vpop.eup %4984  ;;  %v3709_v52 = vrot.slane %v6302_v17, 1 }
0x287c   :  { %v4987_v27 = vpop.eup %4986  ;;  %v3700_v29 = vadd.f32 1.0, %v4985_v4 }
0x287d   :  { %3647 = vrot.lane.b32.xlu1 %v4981_v15, %s5197_s3  ;;  %4990 = vrcp.f32 %v3630_v28  ;;  %v3699_v57 = vadd.f32 1.0, %v4987_v27  ;;  %v4989_v35 = vpop.eup %4988 }
0x287e   :  { %4992 = vrcp.f32 %v3700_v29  ;;  %v3629_v18 = vadd.f32 1.0, %v4989_v35 }
0x287f   :  { %4994 = vrcp.f32 %v3699_v57 }
0x2880   :  { %4996 = vrcp.f32 %v3629_v18 }
0x2887   :  { %v4991_v5 = vpop.eup %4990 }
0x2888   :  { %v4993_v42 = vpop.eup %4992  ;;  %v3644_v0 = vmul.f32 %v4991_v5, %v3640_v24 }
0x2889   :  { %v4995_v61 = vpop.eup %4994  ;;  %v3714_v63 = vmul.f32 %v4993_v42, %v3710_v11 }
0x288a   :  { %v4997_v32 = vpop.eup %4996  ;;  %v3713_v15 = vmul.f32 %v4995_v61, %v3709_v52 }
0x288b   :  { %v3643_v33 = vmul.f32 %v4997_v32, %v3639_v31 }
0x28e9   :  { %v3650_v36 = vpop.permute.xlu0 %3649 }
0x28ea   :  { %v3654_v19 = vmul.f32 %v4991_v5, %v3650_v36 }
0x28eb   :  { %v3718_v60 = vpop.permute.xlu1 %3717 }
0x28ec   :  { %3659 = vrot.lane.b32.xlu0 %v3654_v19, %s5198_s4  ;;  %v3723_v9 = vmul.f32 %v4995_v61, %v3718_v60 }
0x28ed   :  { %v3720_v55 = vpop.permute.xlu0 %3719 }
0x28ee   :  { %v3724_v53 = vmul.f32 %v4993_v42, %v3720_v55  ;;  %3727 = vrot.lane.b32.xlu1 %v3723_v9, %s5198_s4 }
0x28ef   :  { %v3648_v22 = vpop.permute.xlu1 %3647 }
0x28f0   :  { %3729 = vrot.lane.b32.xlu0 %v3724_v53, %s5198_s4  ;;  %v3653_v14 = vmul.f32 %v4997_v32, %v3648_v22 }
0x28f2   :  { %3657 = vrot.lane.b32.xlu1 %v3653_v14, %s5198_s4 }
0x295e   :  { %v3660_v8 = vpop.permute.xlu0 %3659 }
0x295f   :  { %v6347_v13 = vadd.f32 %v3660_v8, %v3644_v0 }
0x2960   :  { %v3728_v50 = vpop.permute.xlu1 %3727 }
0x2961   :  { %4998 = vtanh.f32 %v6347_v13  ;;  %v6354_v12 = vadd.f32 %v3728_v50, %v3713_v15 }
0x2962   :  { %v3730_v43 = vpop.permute.xlu0 %3729 }
0x2963   :  { %v6351_v38 = vadd.f32 %v3730_v43, %v3714_v63 }
0x2964   :  { %v3658_v49 = vpop.permute.xlu1 %3657 }
0x2965   :  { %5000 = vtanh.f32 %v6351_v38  ;;  %v6358_v28 = vadd.f32 %v3658_v49, %v3643_v33 }
0x2966   :  { %5002 = vtanh.f32 %v6354_v12 }
0x2967   :  { %5004 = vtanh.f32 %v6358_v28 }
0x296b   :  { %v4999_v17 = vpop.eup %4998 }
0x296c   :  { %3671 = vrot.lane.b32.xlu0 %v4999_v17, %s5197_s3 }
0x296f   :  { %v5001_v4 = vpop.eup %5000 }
0x2970   :  { %v5003_v27 = vpop.eup %5002  ;;  %3741 = vrot.lane.b32.xlu0 %v5001_v4, %s5197_s3 }
0x2971   :  { %3739 = vrot.lane.b32.xlu1 %v5003_v27, %s5197_s3  ;;  %v5005_v39 = vpop.eup %5004 }
0x2975   :  { %3669 = vrot.lane.b32.xlu1 %v5005_v39, %s5197_s3 }
0x29de   :  { %v3672_v29 = vpop.permute.xlu0 %3671 }
0x29df   :  { %v6367_v36 = vmul.f32 %v4991_v5, %v3672_v29 }
0x29e1   :  { %v3757_v9 = vrot.slane %v6367_v36, 7 }
0x29e2   :  { %v3742_v57 = vpop.permute.xlu0 %3741 }
0x29e3   :  { %v3740_v35 = vpop.permute.xlu1 %3739  ;;  %v6365_v18 = vmul.f32 %v4993_v42, %v3742_v57 }
0x29e4   :  { %v6369_v19 = vmul.f32 %v4995_v61, %v3740_v35 }
0x29e5   :  { %v3763_v55 = vrot.slane %v6365_v18, 2 }
0x29e6   :  { %v3762_v60 = vrot.slane %v6369_v19, 3 }
0x29e7   :  { %v3670_v53 = vpop.permute.xlu1 %3669 }
0x29e8   :  { %v6374_v22 = vmul.f32 %v4997_v32, %v3670_v53  ;;  %v3764_v14 = vsel %vm6560_vm0, %v3763_v55, %v3762_v60  ;;  %vm6562_vm0 = vcmask 257027  }
0x29e9   :  { %3765 = vrot.lane.b32.xlu1 %v3764_v14, %s5197_s3 }
0x29ea   :  { %v3758_v42 = vsel %vm6561_vm1, %v3757_v9, %v6374_v22  ;;  %vm6563_vm1 = vcmask 520452  }
0x29eb   :  { %3759 = vrot.lane.b32.xlu0 %v3758_v42, %s5198_s4 }
0x2a5b   :  { %v3766_v5 = vpop.permute.xlu1 %3765 }
0x2a5d   :  { %v3760_v61 = vpop.permute.xlu0 %3759 }
0x2a5e   :  { %v3768_v24 = vsel %vm6553_vm9, %v3760_v61, %v3766_v5  ;;  %vm6564_vm9 = vmmov %vm6562_vm0 }
0x2a5f   :  { %v3770_v0 = vrot.slane %v3768_v24, 6 }
0x2a61   :  { %4182 = vmatmul.mubr.msk.f32.vlgmr.msra.gmra.mrb[18].mxu1 %vm232_vm3, %v3770_v0 }
0x2b34   :  { %v3839_v8 = vpop.f32.mrb[18].mxu1 }
0x2b35   :  { %v3845_v11 = vrot.slane %v3839_v8, 1  ;;  %v3846_v32 = vrot.slane %v3839_v8, 2  ;;  %v3841_v52 = vpop.f32.mrb[19].mxu1 }
0x2b36   :  { %v3919_v63 = vadd.f32 %v3841_v52, %v5988_v56  ;;  %v3916_v43 = vrot.slane %v3841_v52, 1 }
0x2b37   :  { %v3849_v15 = vadd.f32 %v3845_v11, %v5986_v16  ;;  %v3850_v50 = vadd.f32 %v3846_v32, %v5992_v51 }
0x2b38   :  { %5006 = vtanh.f32 %v3919_v63  ;;  %v3920_v31 = vadd.f32 %v3916_v43, %v5994_v34  ;;  %v4185_v16 = vmul.f32 -1.442695, %v3919_v63  ;;  %v3867_v43 = vrot.slane %v6358_v28, 7 }
0x2b39   :  { %5008 = vtanh.f32 %v3849_v15  ;;  %v4183_v4 = vmul.f32 -1.442695, %v3849_v15  ;;  %v4184_v51 = vmul.f32 -1.442695, %v3850_v50  ;;  %v3937_v15 = vrot.slane %v6354_v12, 1 }
0x2b3a   :  { %5010 = vtanh.f32 %v3850_v50  ;;  %v4186_v34 = vmul.f32 -1.442695, %v3920_v31 }
0x2b3b   :  { %5012 = vtanh.f32 %v3920_v31 }
0x2b3c   :  { %5014 = vpow2.f32 %v4185_v16 }
0x2b3d   :  { %5016 = vpow2.f32 %v4183_v4 }
0x2b3e   :  { %5018 = vpow2.f32 %v4184_v51 }
0x2b3f   :  { %5020 = vpow2.f32 %v4186_v34 }
0x2b42   :  { %v5007_v33 = vpop.eup %5006 }
0x2b43   :  { %v5009_v49 = vpop.eup %5008  ;;  %3945 = vrot.lane.b32.xlu1 %v5007_v33, %s5197_s3 }
0x2b44   :  { %3875 = vrot.lane.b32.xlu0 %v5009_v49, %s5197_s3  ;;  %v5011_v17 = vpop.eup %5010 }
0x2b45   :  { %v5013_v56 = vpop.eup %5012 }
0x2b46   :  { %v5015_v27 = vpop.eup %5014 }
0x2b47   :  { %3947 = vrot.lane.b32.xlu1 %v5013_v56, %s5197_s3  ;;  %v5017_v39 = vpop.eup %5016  ;;  %v3927_v29 = vadd.f32 1.0, %v5015_v27  ;;  %v3868_v56 = vrot.slane %v6347_v13, 7 }
0x2b48   :  { %3877 = vrot.lane.b32.xlu0 %v5011_v17, %s5197_s3  ;;  %v3857_v57 = vadd.f32 1.0, %v5017_v39  ;;  %v5019_v35 = vpop.eup %5018 }
0x2b49   :  { %v5021_v55 = vpop.eup %5020  ;;  %5022 = vrcp.f32 %v3927_v29  ;;  %v3858_v60 = vadd.f32 1.0, %v5019_v35 }
0x2b4a   :  { %5024 = vrcp.f32 %v3857_v57  ;;  %v3928_v53 = vadd.f32 1.0, %v5021_v55 }
0x2b4b   :  { %5026 = vrcp.f32 %v3858_v60 }
0x2b4c   :  { %5028 = vrcp.f32 %v3928_v53 }
0x2b53   :  { %v6391_v9 = vpop.eup %5022 }
0x2b54   :  { %v6393_v42 = vpop.eup %5024  ;;  %v3941_v50 = vmul.f32 %v6391_v9, %v3937_v15 }
0x2b55   :  { %v6399_v0 = vpop.eup %5026  ;;  %v3871_v33 = vmul.f32 %v6393_v42, %v3867_v43 }
0x2b56   :  { %v6402_v32 = vpop.eup %5028 }
0x2bb5   :  { %v3946_v14 = vpop.permute.xlu1 %3945 }
0x2bb6   :  { %v3951_v5 = vmul.f32 %v6391_v9, %v3946_v14  ;;  %v3876_v61 = vpop.permute.xlu0 %3875 }
0x2bb7   :  { %v3881_v24 = vmul.f32 %v6393_v42, %v3876_v61 }
0x2bb8   :  { %3955 = vrot.lane.b32.xlu1 %v3951_v5, %s5198_s4 }
0x2bb9   :  { %3885 = vrot.lane.b32.xlu0 %v3881_v24, %s5198_s4  ;;  %v3948_v52 = vpop.permute.xlu1 %3947 }
0x2bba   :  { %v3878_v8 = vpop.permute.xlu0 %3877  ;;  %v3952_v63 = vmul.f32 %v6402_v32, %v3948_v52 }
0x2bbb   :  { %v3882_v11 = vmul.f32 %v6399_v0, %v3878_v8 }
0x2bbc   :  { %3957 = vrot.lane.b32.xlu1 %v3952_v63, %s5198_s4 }
0x2bbd   :  { %3887 = vrot.lane.b32.xlu0 %v3882_v11, %s5198_s4 }
0x2bc0   :  { %2379 = vrot.lane.b32.xlu1 %v6026_v40, %s5197_s3  ;;  %v3872_v40 = vmul.f32 %v6399_v0, %v3868_v56 }
0x2bc1   :  { %2314 = vrot.lane.b32.xlu0 %v6024_v37, %s5198_s4  ;;  %v3938_v37 = vrot.slane %v6351_v38, 1 }
0x2bc3   :  { %v3942_v12 = vmul.f32 %v6402_v32, %v3938_v37 }
0x2c2a   :  { %v3956_v31 = vpop.permute.xlu1 %3955 }
0x2c2b   :  { %v3961_v49 = vadd.f32 %v3956_v31, %v3941_v50  ;;  %v3886_v17 = vpop.permute.xlu0 %3885 }
0x2c2c   :  { %v3891_v16 = vadd.f32 %v3886_v17, %v3871_v33 }
0x2c2d   :  { %5030 = vtanh.f32 %v3961_v49 }
0x2c2e   :  { %5032 = vtanh.f32 %v3891_v16  ;;  %v3958_v51 = vpop.permute.xlu1 %3957 }
0x2c2f   :  { %v3888_v4 = vpop.permute.xlu0 %3887  ;;  %v3962_v34 = vadd.f32 %v3958_v51, %v3942_v12 }
0x2c30   :  { %v3892_v28 = vadd.f32 %v3888_v4, %v3872_v40  ;;  %v4187_v40 = vld [vmem:[%s6534_s8] ss:$0 sm:$0xff] }
0x2c32   :  { %5034 = vtanh.f32 %v3892_v28  ;;  %v2380_v39 = vpop.permute.xlu1 %2379 }
0x2c33   :  { %v2315_v27 = vpop.permute.xlu0 %2314  ;;  %5036 = vtanh.f32 %v3962_v34  ;;  %2385 = vst.msk [vmem:[#allocation2] sm:$0x80] %vm435_vm11, %v2380_v39 }
0x2c34   :  { %2320 = vst.msk [vmem:[#allocation2] sm:$0x1] %vm369_vm10, %v2315_v27 }
0x2c37   :  { %v5031_v13 = vpop.eup %5030 }
0x2c38   :  { %v5033_v29 = vpop.eup %5032  ;;  %3967 = vrot.lane.b32.xlu1 %v5031_v13, %s5197_s3 }
0x2c39   :  { %3897 = vrot.lane.b32.xlu0 %v5033_v29, %s5197_s3 }
0x2c3c   :  { %v5035_v38 = vpop.eup %5034 }
0x2c3d   :  { %3899 = vrot.lane.b32.xlu0 %v5035_v38, %s5197_s3  ;;  %v5037_v57 = vpop.eup %5036 }
0x2c3e   :  { %3969 = vrot.lane.b32.xlu1 %v5037_v57, %s5197_s3 }
0x2c41   :  { %2535 = vrot.lane.b32.xlu0 %v6090_v20, %s5198_s4 }
0x2c42   :  { %2606 = vrot.lane.b32.xlu1 %v6083_v6, %s5197_s3  ;;  %v3989_v6 = vld [vmem:[#allocation11 + $0x10] sm:$0xff] }
0x2c45   :  { %2764 = vrot.lane.b32.xlu0 %v6149_v23, %s5198_s4 }
0x2c46   :  { %2835 = vrot.lane.b32.xlu1 %v6142_v45, %s5197_s3  ;;  %v3992_v45 = vld [vmem:[#allocation11 + $0x28] sm:$0xff] }
0x2c49   :  { %2993 = vrot.lane.b32.xlu0 %v6202_v44, %s5198_s4 }
0x2c4a   :  { %3064 = vrot.lane.b32.xlu1 %v6204_v58, %s5197_s3 }
0x2c4d   :  { %2316 = vrot.lane.b32.xlu0 %v6022_v30, %s5198_s4  ;;  %v3987_v30 = vld [vmem:[#allocation11] sm:$0xff] }
0x2c4e   :  { %2381 = vrot.lane.b32.xlu1 %v6029_v10, %s5197_s3  ;;  %v3988_v10 = vld [vmem:[#allocation11 + $0x8] sm:$0xff] }
0x2c51   :  { %2537 = vrot.lane.b32.xlu0 %v6081_v54, %s5198_s4  ;;  %v4497_v54 = vpack.c.bf16 %v3988_v10, %v3987_v30 }
0x2c52   :  { %2608 = vrot.lane.b32.xlu1 %v6085_v3, %s5197_s3  ;;  %v3990_v3 = vld [vmem:[#allocation11 + $0x18] sm:$0xff] }
0x2c53   :  { %4498 = vmatprep.subr.bf16.mxu0 %v4497_v54  ;;  %v4501_v20 = vpack.c.bf16 %v3990_v3, %v3989_v6 }
0x2c54   :  { %4500 = vmatpush3.bf16.msra.mxu0 %v4497_v54 }
0x2c55   :  { %2766 = vrot.lane.b32.xlu0 %v6140_v26, %s5198_s4  ;;  %4502 = vmatprep.subr.bf16.mxu0 %v4501_v20  ;;  %v3991_v26 = vld [vmem:[#allocation11 + $0x20] sm:$0xff] }
0x2c56   :  { %2837 = vrot.lane.b32.xlu1 %v6144_v59, %s5197_s3  ;;  %v3993_v59 = vld [vmem:[#allocation11 + $0x30] sm:$0xff]  ;;  %v4505_v23 = vpack.c.bf16 %v3992_v45, %v3991_v26 }
0x2c58   :  { %4504 = vmatpush3.bf16.msra.mxu0 %v4501_v20 }
0x2c59   :  { %2995 = vrot.lane.b32.xlu0 %v6199_v41, %s5198_s4  ;;  %v3994_v41 = vld [vmem:[#allocation11 + $0x38] sm:$0xff]  ;;  %4506 = vmatprep.subr.bf16.mxu0 %v4505_v23 }
0x2c5a   :  { %3066 = vrot.lane.b32.xlu1 %v6210_v7, %s5197_s3  ;;  %v4509_v44 = vpack.c.bf16 %v3994_v41, %v3993_v59 }
0x2c5c   :  { %4508 = vmatpush3.bf16.msra.mxu0 %v4505_v23 }
0x2c5d   :  { %3221 = vrot.lane.b32.xlu0 %v6266_v1, %s5198_s4  ;;  %4510 = vmatprep.subr.bf16.mxu0 %v4509_v44 }
0x2c5e   :  { %3292 = vrot.lane.b32.xlu1 %v6259_v21, %s5197_s3 }
0x2c60   :  { %4512 = vmatpush3.bf16.msra.mxu0 %v4509_v44 }
0x2c61   :  { %3450 = vrot.lane.b32.xlu0 %v6324_v2, %s5198_s4 }
0x2c62   :  { %3521 = vrot.lane.b32.xlu1 %v6317_v25, %s5197_s3 }
0x2c65   :  { %3679 = vrot.lane.b32.xlu0 %v6374_v22, %s5198_s4 }
0x2c66   :  { %3749 = vrot.lane.b32.xlu1 %v6369_v19, %s5197_s3 }
0x2c69   :  { %3223 = vrot.lane.b32.xlu0 %v6257_v48, %s5198_s4 }
0x2c6a   :  { %3294 = vrot.lane.b32.xlu1 %v6261_v47, %s5197_s3 }
0x2c6d   :  { %3452 = vrot.lane.b32.xlu0 %v6315_v46, %s5198_s4 }
0x2c6e   :  { %3523 = vrot.lane.b32.xlu1 %v6319_v62, %s5197_s3 }
0x2c71   :  { %3681 = vrot.lane.b32.xlu0 %v6367_v36, %s5198_s4 }
0x2c72   :  { %3751 = vrot.lane.b32.xlu1 %v6365_v18, %s5197_s3 }
0x2caa   :  { %v3968_v58 = vpop.permute.xlu1 %3967 }
0x2cab   :  { %v3973_v7 = vmul.f32 %v6391_v9, %v3968_v58  ;;  %v3898_v48 = vpop.permute.xlu0 %3897 }
0x2cac   :  { %v3903_v21 = vmul.f32 %v6393_v42, %v3898_v48 }
0x2cad   :  { %3977 = vrot.lane.b32.xlu1 %v3973_v7, %s5197_s3 }
0x2cae   :  { %3907 = vrot.lane.b32.xlu0 %v3903_v21, %s5198_s4 }
0x2caf   :  { %v3900_v47 = vpop.permute.xlu0 %3899 }
0x2cb0   :  { %v3904_v1 = vmul.f32 %v6399_v0, %v3900_v47  ;;  %v3970_v46 = vpop.permute.xlu1 %3969 }
0x2cb1   :  { %v3974_v25 = vmul.f32 %v6402_v32, %v3970_v46 }
0x2cb2   :  { %3909 = vrot.lane.b32.xlu0 %v3904_v1, %s5198_s4 }
0x2cb3   :  { %v2536_v62 = vpop.permute.xlu0 %2535  ;;  %3979 = vrot.lane.b32.xlu1 %v3974_v25, %s5197_s3 }
0x2cb4   :  { %2541 = vst.msk [vmem:[#allocation2] sm:$0x2] %vm594_vm12, %v2536_v62  ;;  %v2607_v2 = vpop.permute.xlu1 %2606 }
0x2cb5   :  { %2612 = vst.msk [vmem:[#allocation2] sm:$0x40] %vm666_vm13, %v2607_v2 }
0x2cb7   :  { %v2765_v18 = vpop.permute.xlu0 %2764 }
0x2cb8   :  { %2770 = vst.msk [vmem:[#allocation2] sm:$0x4] %vm826_vm14, %v2765_v18  ;;  %v2836_v36 = vpop.permute.xlu1 %2835 }
0x2cb9   :  { %2841 = vst.msk [vmem:[#allocation2] sm:$0x20] %vm898_vm15, %v2836_v36 }
0x2cbb   :  { %v2994_v19 = vpop.permute.xlu0 %2993 }
0x2cbc   :  { %2999 = vst.msk [vmem:[#allocation2] sm:$0x8] %vm6562_vm0, %v2994_v19  ;;  %v3065_v22 = vpop.permute.xlu1 %3064 }
0x2cbd   :  { %3070 = vst.msk [vmem:[#allocation2] sm:$0x10] %vm6563_vm1, %v3065_v22 }
0x2cbf   :  { %v2317_v35 = vpop.permute.xlu0 %2316 }
0x2cc0   :  { %2321 = vst.msk [vmem:[#allocation2 + $0x8] sm:$0x1] %vm369_vm10, %v2317_v35  ;;  %v2382_v55 = vpop.permute.xlu1 %2381  ;;  %vm6565_vm10 = vmmov %vm6563_vm1 }
0x2cc1   :  { %2386 = vst.msk [vmem:[#allocation2 + $0x8] sm:$0x80] %vm435_vm11, %v2382_v55  ;;  %vm6566_vm11 = vcmask 516352  }
0x2cc3   :  { %v2538_v60 = vpop.permute.xlu0 %2537 }
0x2cc4   :  { %2542 = vst.msk [vmem:[#allocation2 + $0x8] sm:$0x2] %vm594_vm12, %v2538_v60  ;;  %v2609_v53 = vpop.permute.xlu1 %2608 }
0x2cc5   :  { %2613 = vst.msk [vmem:[#allocation2 + $0x8] sm:$0x40] %vm666_vm13, %v2609_v53 }
0x2cc7   :  { %v2767_v9 = vpop.permute.xlu0 %2766 }
0x2cc8   :  { %2771 = vst.msk [vmem:[#allocation2 + $0x8] sm:$0x4] %vm826_vm14, %v2767_v9  ;;  %v2838_v14 = vpop.permute.xlu1 %2837 }
0x2cc9   :  { %2842 = vst.msk [vmem:[#allocation2 + $0x8] sm:$0x20] %vm898_vm15, %v2838_v14 }
0x2ccb   :  { %v2996_v42 = vpop.permute.xlu0 %2995 }
0x2ccc   :  { %3000 = vst.msk [vmem:[#allocation2 + $0x8] sm:$0x8] %vm6564_vm9, %v2996_v42  ;;  %v3067_v5 = vpop.permute.xlu1 %3066 }
0x2ccd   :  { %3071 = vst.msk [vmem:[#allocation2 + $0x8] sm:$0x10] %vm6565_vm10, %v3067_v5 }
0x2ccf   :  { %v3222_v61 = vpop.permute.xlu0 %3221 }
0x2cd0   :  { %3227 = vst.msk [vmem:[#allocation2] sm:$0x10] %vm1289_vm8, %v3222_v61  ;;  %v3293_v24 = vpop.permute.xlu1 %3292 }
0x2cd1   :  { %3298 = vst.msk [vmem:[#allocation2] sm:$0x8] %vm1361_vm7, %v3293_v24 }
0x2cd3   :  { %v3451_v0 = vpop.permute.xlu0 %3450 }
0x2cd4   :  { %3456 = vst.msk [vmem:[#allocation2] sm:$0x20] %vm1521_vm6, %v3451_v0  ;;  %v3522_v8 = vpop.permute.xlu1 %3521 }
0x2cd5   :  { %3527 = vst.msk [vmem:[#allocation2] sm:$0x4] %vm1593_vm5, %v3522_v8 }
0x2cd7   :  { %v3680_v11 = vpop.permute.xlu0 %3679 }
0x2cd8   :  { %3685 = vst.msk [vmem:[#allocation2] sm:$0x40] %vm1753_vm4, %v3680_v11  ;;  %v3750_v32 = vpop.permute.xlu1 %3749 }
0x2cd9   :  { %3755 = vst.msk [vmem:[#allocation2] sm:$0x2] %vm1824_vm2, %v3750_v32 }
0x2cdb   :  { %v3224_v52 = vpop.permute.xlu0 %3223 }
0x2cdc   :  { %3228 = vst.msk [vmem:[#allocation2 + $0x8] sm:$0x10] %vm1289_vm8, %v3224_v52  ;;  %v3295_v63 = vpop.permute.xlu1 %3294  ;;  %vm6567_vm8 = vcmask 261127  }
0x2cdd   :  { %3299 = vst.msk [vmem:[#allocation2 + $0x8] sm:$0x8] %vm1361_vm7, %v3295_v63  ;;  %vm6568_vm7 = vmmov %vm6567_vm8 }
0x2cdf   :  { %v3453_v15 = vpop.permute.xlu0 %3452 }
0x2ce0   :  { %3457 = vst.msk [vmem:[#allocation2 + $0x8] sm:$0x20] %vm1521_vm6, %v3453_v15  ;;  %v3524_v43 = vpop.permute.xlu1 %3523  ;;  %vm6569_vm6 = vmmov %vm6566_vm11 }
0x2ce1   :  { %3528 = vst.msk [vmem:[#allocation2 + $0x8] sm:$0x4] %vm1593_vm5, %v3524_v43 }
0x2ce3   :  { %v3682_v50 = vpop.permute.xlu0 %3681 }
0x2ce4   :  { %3686 = vst.msk [vmem:[#allocation2 + $0x8] sm:$0x40] %vm1753_vm4, %v3682_v50  ;;  %v3752_v31 = vpop.permute.xlu1 %3751 }
0x2ce5   :  { %3756 = vst.msk [vmem:[#allocation2 + $0x8] sm:$0x2] %vm1824_vm2, %v3752_v31 }
0x2d1f   :  { %v3978_v33 = vpop.permute.xlu1 %3977 }
0x2d20   :  { %3983 = vst.msk [vmem:[#allocation2] sm:$0x1] %vm6566_vm11, %v3978_v33  ;;  %v3908_v49 = vpop.permute.xlu0 %3907 }
0x2d21   :  { %3913 = vst.msk [vmem:[#allocation2] sm:$0x80] %vm6567_vm8, %v3908_v49 }
0x2d24   :  { %v3910_v17 = vpop.permute.xlu0 %3909 }
0x2d25   :  { %3914 = vst.msk [vmem:[#allocation2 + $0x8] sm:$0x80] %vm6568_vm7, %v3910_v17  ;;  %v3980_v56 = vpop.permute.xlu1 %3979 }
0x2d26   :  { %3984 = vst.msk [vmem:[#allocation2 + $0x8] sm:$0x1] %vm6569_vm6, %v3980_v56 }
0x2d28   :  { %v3985_v16 = vld [vmem:[#allocation2] sm:$0xff] }
0x2d29   :  { %4218 = vmatprep.mubr.msk.f32.mxu0 %vm232_vm3, %v3985_v16 }
0x2d2d   :  { %v3986_v37 = vld [vmem:[#allocation2 + $0x8] sm:$0xff] }
0x2d2e   :  { %4219 = vmatmul.mubr.msk.f32.vlgmr.msra.gmra.mrb[20].mxu0 %vm232_vm3, %v3986_v37 }
0x2e01   :  { %v4220_v4 = vpop.f32.mrb[20].mxu0 }
0x2e02   :  { %v4080_v12 = vadd.f32 %v4220_v4, %v4187_v40  ;;  %v4074_v28 = vpop.f32.mrb[21].mxu0 }
0x2e03   :  { %v4075_v51 = vadd.f32 %v4187_v40, %v4074_v28 }
0x2e04   :  { %v4191_v34 = vmul.f32 -1.442695, %v4080_v12 }
0x2e05   :  { %v4190_v27 = vmul.f32 -1.442695, %v4075_v51 }
0x2e06   :  { %5038 = vpow2.f32 %v4191_v34 }
0x2e07   :  { %5040 = vpow2.f32 %v4190_v27 }
0x2e10   :  { %v5039_v39 = vpop.eup %5038 }
0x2e11   :  { %v5041_v13 = vpop.eup %5040  ;;  %v4090_v29 = vadd.f32 1.0, %v5039_v39 }
0x2e12   :  { %v4089_v38 = vadd.f32 1.0, %v5041_v13 }
0x2e13   :  { %5042 = vrcp.f32 %v4090_v29 }
0x2e14   :  { %5044 = vrcp.f32 %v4089_v38 }
0x2e1d   :  { %v5043_v57 = vpop.eup %5042 }
0x2e1e   :  { %v5045_v30 = vpop.eup %5044  ;;  %4096 = vst [vmem:[%s6535_s9 + $0x8] sm:$0xff] %v5043_v57 }
0x2e1f   :  { %4095 = vst [vmem:[%s6535_s9] sm:$0xff] %v5045_v30 }
0x2e20   :  { %4101 = vsyncpa [#allocation4], 1 }
0x2e21   :  { %4102 = vsyncpa [#allocation6], 1 }
0x2e22   :  { %4103 = vsyncpa [#allocation9], 1 }
0x2e23   :  { %4104 = vsyncpa [#allocation12], 1 }

</bundles_post_ra>
